<compile_context>
chip_gen: v7x
topology: tpu7x:2x2x1
jax: 0.10.0
libtpu: 0.0.40
codegen_flags: <defaults>
</compile_context>

<pallas_src>
import functools

import jax
import jax.numpy as jnp
import numpy as np
from jax.experimental import pallas as pl
from jax.experimental.pallas import tpu as pltpu

HIDDEN = 256            # hidden_channels
EMB = 32                # embedding_dim
EMB_PAD = 128           # lane-dense padded output width
CONV_CHANNELS = [2, 32, 64, 128, HIDDEN]
BN_EPS = 1e-5


# --------------------------------------------------------------------------- #
# Kernel: one grid step == one block of b_blk batch elements, fully fused.
# The conv stack + pooling run chunk-by-chunk (cb batch elements per chunk) so
# live intermediates stay bounded; the head runs once per grid step.
# --------------------------------------------------------------------------- #
def _pce_kernel(x_ref,
                w1_ref, s1_ref,              # layer-1 weight (f32) + BN shift
                w2_ref, s2_ref,
                w3_ref, s3_ref,
                w4_ref, s4_ref,
                wh1_ref, bh1_ref,            # head Linear1 (1/N folded in)
                wh2_ref, bh2_ref,            # head Linear2 zero-padded to EMB_PAD
                out_ref,
                pooled_ref,                  # VMEM scratch (n_chunks, cb, HIDDEN)
                *, n_pts, cb, n_chunks, compute_dtype):
    rows = cb * n_pts

    def conv_bn_relu(h_in, w_ref, s_ref):
        acc = jnp.dot(h_in.astype(compute_dtype), w_ref[...],
                      preferred_element_type=jnp.float32)
        return jnp.maximum(acc + s_ref[...], 0.0)        # f32 epilogue

    # ---- conv stack + pooled SUM, one chunk of `cb` batch elements at a time ----
    @pl.loop(0, n_chunks)
    def _(c):
        b0 = pl.multiple_of(c * cb, cb)
        xc = x_ref[pl.ds(b0, cb), :, :].reshape(rows, 2)         # (rows, 2) f32
        # layer 1 on the MXU (K=2 matmul is ~free; avoids cross-lane broadcasts)
        h = jnp.maximum(
            jnp.dot(xc, w1_ref[...], preferred_element_type=jnp.float32)
            + s1_ref[...], 0.0)                                  # (rows, 32)
        h = conv_bn_relu(h, w2_ref, s2_ref)                      # (rows, 64)
        h = conv_bn_relu(h, w3_ref, s3_ref)                      # (rows, 128)
        h = conv_bn_relu(h, w4_ref, s4_ref)                      # (rows, 256)
        # AdaptiveAvgPool1d(1): SUM over points (the 1/N is folded into wh1)
        pooled_ref[c] = jnp.sum(h.reshape(cb, n_pts, HIDDEN), axis=1)

    pooled = pooled_ref[...].reshape(n_chunks * cb, HIDDEN)       # (b_blk, 256) f32

    # ---- head: Linear(256,128) + ReLU + Dropout(eval: identity) + Linear --------
    z = jnp.maximum(
        jnp.dot(pooled.astype(compute_dtype), wh1_ref[...],
                preferred_element_type=jnp.float32) + bh1_ref[...], 0.0)
    out = jnp.dot(z.astype(compute_dtype), wh2_ref[...],
                  preferred_element_type=jnp.float32) + bh2_ref[...]  # (b_blk, EMB_PAD)

    out_ref[...] = out[None].astype(out_ref.dtype)                # (1, b_blk, EMB_PAD)


# --------------------------------------------------------------------------- #
# Parameter preparation
# --------------------------------------------------------------------------- #
def make_params(key):
    """Raw module-like parameters: per conv layer (w, gamma, beta, mean, var); head."""
    keys = jax.random.split(key, 24)
    ki = iter(keys)
    convs = []
    for c_in, c_out in zip(CONV_CHANNELS[:-1], CONV_CHANNELS[1:]):
        # Conv1d weight (c_out, c_in, 1) stored as (c_in, c_out)
        w = jax.random.normal(next(ki), (c_in, c_out), jnp.float32) * 0.1
        gamma = 1.0 + 0.1 * jax.random.normal(next(ki), (c_out,), jnp.float32)
        beta = 0.1 * jax.random.normal(next(ki), (c_out,), jnp.float32)
        r_mean = 0.1 * jax.random.normal(next(ki), (c_out,), jnp.float32)
        r_var = jnp.abs(jax.random.normal(next(ki), (c_out,), jnp.float32)) + 0.5
        convs.append((w, gamma, beta, r_mean, r_var))
    wh1 = jax.random.normal(next(ki), (HIDDEN, 128), jnp.float32) * 0.05
    bh1 = 0.1 * jax.random.normal(next(ki), (1, 128), jnp.float32)
    wh2 = jax.random.normal(next(ki), (128, EMB), jnp.float32) * 0.05
    bh2 = 0.1 * jax.random.normal(next(ki), (1, EMB), jnp.float32)
    return convs, (wh1, bh1, wh2, bh2)


def fold_bn_params(raw):
    """Fold eval-mode BatchNorm into the conv weights (scale) and a shift."""
    convs, head = raw
    folded = []
    for (w, gamma, beta, r_mean, r_var) in convs:
        scale = gamma / jnp.sqrt(r_var + BN_EPS)
        folded.append((w * scale[None, :], (beta - r_mean * scale)[None, :]))
    return folded, head


def _prepare_kernel_params(folded_convs, head, compute_dtype, n_pts):
    (w1, s1), (w2, s2), (w3, s3), (w4, s4) = folded_convs
    wh1, bh1, wh2, bh2 = head
    # Mean pooling is computed as a SUM in-kernel; fold the 1/N scale here (exact).
    wh1 = wh1 * (1.0 / float(n_pts))
    # Pad head Linear2 to EMB_PAD output lanes (lane-dense store; extra cols are 0).
    wh2p = jnp.zeros((wh2.shape[0], EMB_PAD), jnp.float32).at[:, :EMB].set(wh2)
    bh2p = jnp.zeros((1, EMB_PAD), jnp.float32).at[:, :EMB].set(bh2)

    # NOTE: BN scale is folded into the weight *before* the bf16 cast; biases /
    # shifts stay f32. If accuracy ever tightens, apply the scale in the f32
    # epilogue instead of folding it into the bf16 weight.
    cast = lambda w: w.astype(compute_dtype)
    f32 = lambda b: b.astype(jnp.float32)
    return [f32(w1), f32(s1),            # layer-1 stays f32 (K=2 MXU pass is ~free)
            cast(w2), f32(s2),
            cast(w3), f32(s3),
            cast(w4), f32(s4),
            cast(wh1), f32(bh1),
            cast(wh2p), f32(bh2p)]


# --------------------------------------------------------------------------- #
# Blocking heuristics
# --------------------------------------------------------------------------- #
def _round_up(x, m):
    return ((x + m - 1) // m) * m


def _choose_blocking(B, n_pts, b_blk=None):
    """Pick the batch block (b_blk) and in-kernel chunk (cb) sizes."""
    if b_blk is None:
        # Cap b_blk so the lane-padded (b_blk, N, 128-lane) f32 input tile stays
        # ~4 MiB per pipeline buffer — comfortably inside a 48 MiB scoped-VMEM
        # budget (v7x-safe), and big enough to amortize per-grid-step overhead.
        cap = max(8, min(64, (4 << 20) // max(1, n_pts * 128 * 4)))
        cap = max(8, (cap // 8) * 8)
        if B <= cap:
            b_blk = _round_up(B, 8) if B > 8 else B          # tiny B: single block
        else:
            num_blocks = pl.cdiv(B, cap)
            if num_blocks % 2:
                num_blocks += 1          # even #blocks: keep both v7x TCs busy
            b_blk = _round_up(pl.cdiv(B, num_blocks), 8)     # minimise padded rows
    b_blk = max(1, int(b_blk))

    # In-kernel chunk: ~1K activation rows per chunk, cb must divide b_blk and be
    # either b_blk itself, a multiple of 8 (aligned scratch tiles / free reshape),
    # or 1 (large point counts).
    target_cb = max(1, 1024 // max(1, n_pts))
    if target_cb >= b_blk:
        cb = b_blk
    elif target_cb >= 8 and b_blk % 8 == 0:
        cb = 8 * (target_cb // 8)
        while b_blk % cb:
            cb -= 8
        cb = max(8, cb)
    else:
        cb = 1
    return b_blk, cb


# --------------------------------------------------------------------------- #
# Wrapper
# --------------------------------------------------------------------------- #
def point_cloud_embedding(x_ncl, folded_convs, head, *, b_blk=None,
                          compute_dtype=jnp.bfloat16):
    """x_ncl: (B, 2, N) float32 (PyTorch NCL layout).  Returns (B, EMB) float32."""
    B, C, N = x_ncl.shape
    assert C == 2
    x_bnc = jnp.transpose(x_ncl, (0, 2, 1)).astype(jnp.float32)   # (B, N, 2)

    b_blk, cb = _choose_blocking(B, N, b_blk)
    n_chunks = b_blk // cb
    num_blocks = pl.cdiv(B, b_blk)
    b_pad = num_blocks * b_blk
    if b_pad != B:
        # Padded rows run the full pipeline (garbage values) and are sliced off below.
        x_bnc = jnp.pad(x_bnc, ((0, b_pad - B), (0, 0), (0, 0)))

    kparams = _prepare_kernel_params(folded_convs, head, compute_dtype, N)

    in_specs = [pl.BlockSpec((b_blk, N, 2), lambda i: (i, 0, 0))]
    # Weights/shifts: full-array blocks at a constant index -> DMA'd once, held in
    # VMEM. (Default double-buffering costs ~0.5 MiB; acceptable.)
    in_specs += [pl.BlockSpec(p.shape, lambda i, nd=p.ndim: (0,) * nd)
                 for p in kparams]

    flops = int(b_pad) * (N * 2 * (2 * 32 + 32 * 64 + 64 * 128 + 128 * HIDDEN)
                          + 2 * (HIDDEN * 128 + 128 * EMB_PAD))
    bytes_accessed = int(x_bnc.size * x_bnc.dtype.itemsize
                         + sum(int(p.size) * p.dtype.itemsize for p in kparams)
                         + b_pad * EMB_PAD * 4)

    out = pl.pallas_call(
        functools.partial(_pce_kernel, n_pts=N, cb=cb, n_chunks=n_chunks,
                          compute_dtype=compute_dtype),
        out_shape=jax.ShapeDtypeStruct((num_blocks, b_blk, EMB_PAD), jnp.float32),
        grid_spec=pltpu.PrefetchScalarGridSpec(
            num_scalar_prefetch=0,
            grid=(num_blocks,),
            in_specs=in_specs,
            out_specs=pl.BlockSpec((1, b_blk, EMB_PAD), lambda i: (i, 0, 0)),
            scratch_shapes=[pltpu.VMEM((n_chunks, cb, HIDDEN), jnp.float32)],
        ),
        compiler_params=pltpu.CompilerParams(
            dimension_semantics=("parallel",),
            # > v5e(16 MiB)/v6e(32 MiB) scoped defaults, ~25% headroom on v7x (64 MiB/TC)
            vmem_limit_bytes=48 * 1024 * 1024),
        cost_estimate=pl.CostEstimate(flops=flops, transcendentals=0,
                                      bytes_accessed=bytes_accessed),
    )(x_bnc, *kparams)

    return out.reshape(b_pad, EMB_PAD)[:B, :EMB]


# --------------------------------------------------------------------------- #
# Pure-JAX reference (eval-mode forward)
# --------------------------------------------------------------------------- #
def reference_forward(x_bnc, folded_convs, head):
    h = x_bnc
    for w, b in folded_convs:
        h = jnp.maximum(jnp.einsum("bnc,cd->bnd", h, w) + b, 0.0)
    pooled = jnp.mean(h, axis=1)                      # (B, HIDDEN)
    wh1, bh1, wh2, bh2 = head
    z = jnp.maximum(pooled @ wh1 + bh1, 0.0)          # Dropout is identity (eval)
    return z @ wh2 + bh2


if __name__ == "__main__":
    key = jax.random.PRNGKey(0)
    k_x, k_p = jax.random.split(key)

    B, N = 20, 128
    # PyTorch input layout (B, 2, N)
    x_ncl = jax.random.normal(k_x, (B, 2, N), jnp.float32)

    raw = make_params(k_p)
    folded_convs, head = fold_bn_params(raw)
    ref = reference_forward(jnp.transpose(x_ncl, (0, 2, 1)), folded_convs, head)

    # f32 path, explicit b_blk=16: exercises multi-block grid (2 blocks), batch
    # padding, and the in-kernel multi-chunk accumulator (cb=8 -> 2 chunks/step).
    out_f32 = point_cloud_embedding(x_ncl, folded_convs, head, b_blk=16,
                                    compute_dtype=jnp.float32)
    out_f32 = jax.block_until_ready(out_f32)
    np.testing.assert_allclose(np.asarray(out_f32), np.asarray(ref),
                               rtol=1e-4, atol=1e-4)
    assert out_f32.shape == (B, EMB)

    # Default path: auto b_blk (24, single block, 3 chunks), bf16 MXU operands
    # with f32 accumulation/epilogue — looser tolerance.
    out_def = point_cloud_embedding(x_ncl, folded_convs, head)
    out_def = jax.block_until_ready(out_def)
    np.testing.assert_allclose(np.asarray(out_def), np.asarray(ref),
                               rtol=5e-2, atol=5e-2)
    assert out_def.shape == (B, EMB)

    print("KERNEL_OK")
</pallas_src>

<mosaic_0001>
module attributes {stable_mosaic.version = 11 : i64} {
  func.func @_pce_kernel(%arg0: i32, %arg1: memref<16x128x2xf32, #tpu.memory_space<vmem>>, %arg2: memref<2x32xf32, #tpu.memory_space<vmem>>, %arg3: memref<1x32xf32, #tpu.memory_space<vmem>>, %arg4: memref<32x64xf32, #tpu.memory_space<vmem>>, %arg5: memref<1x64xf32, #tpu.memory_space<vmem>>, %arg6: memref<64x128xf32, #tpu.memory_space<vmem>>, %arg7: memref<1x128xf32, #tpu.memory_space<vmem>>, %arg8: memref<128x256xf32, #tpu.memory_space<vmem>>, %arg9: memref<1x256xf32, #tpu.memory_space<vmem>>, %arg10: memref<256x128xf32, #tpu.memory_space<vmem>>, %arg11: memref<1x128xf32, #tpu.memory_space<vmem>>, %arg12: memref<128x128xf32, #tpu.memory_space<vmem>>, %arg13: memref<1x128xf32, #tpu.memory_space<vmem>>, %arg14: memref<1x16x128xf32, #tpu.memory_space<vmem>>, %arg15: memref<2x8x256xf32, #tpu.memory_space<vmem>>) attributes {dimension_semantics = [#tpu.dimension_semantics<parallel>], iteration_bounds = array<i64: 2>, scalar_prefetch = 0 : i64, scratch_operands = 1 : i64, tpu.core_type = #tpu.core_type<tc>, window_params = [{transform_indices = @transform_0, window_bounds = array<i64: 16, 128, 2>}, {pipeline_mode = #tpu.pipeline_mode<synchronous>, transform_indices = @transform_1, window_bounds = array<i64: 2, 32>}, {pipeline_mode = #tpu.pipeline_mode<synchronous>, transform_indices = @transform_2, window_bounds = array<i64: 1, 32>}, {pipeline_mode = #tpu.pipeline_mode<synchronous>, transform_indices = @transform_3, window_bounds = array<i64: 32, 64>}, {pipeline_mode = #tpu.pipeline_mode<synchronous>, transform_indices = @transform_4, window_bounds = array<i64: 1, 64>}, {pipeline_mode = #tpu.pipeline_mode<synchronous>, transform_indices = @transform_5, window_bounds = array<i64: 64, 128>}, {pipeline_mode = #tpu.pipeline_mode<synchronous>, transform_indices = @transform_6, window_bounds = array<i64: 1, 128>}, {pipeline_mode = #tpu.pipeline_mode<synchronous>, transform_indices = @transform_7, window_bounds = array<i64: 128, 256>}, {pipeline_mode = #tpu.pipeline_mode<synchronous>, transform_indices = @transform_8, window_bounds = array<i64: 1, 256>}, {pipeline_mode = #tpu.pipeline_mode<synchronous>, transform_indices = @transform_9, window_bounds = array<i64: 256, 128>}, {pipeline_mode = #tpu.pipeline_mode<synchronous>, transform_indices = @transform_10, window_bounds = array<i64: 1, 128>}, {pipeline_mode = #tpu.pipeline_mode<synchronous>, transform_indices = @transform_11, window_bounds = array<i64: 128, 128>}, {pipeline_mode = #tpu.pipeline_mode<synchronous>, transform_indices = @transform_12, window_bounds = array<i64: 1, 128>}, {transform_indices = @transform_13, window_bounds = array<i64: 1, 16, 128>}]} {
    %c0_i32 = arith.constant 0 : i32
    %c2_i32 = arith.constant 2 : i32
    %0 = arith.addi %c0_i32, %c2_i32 : i32
    %c1_i32 = arith.constant 1 : i32
    scf.for %arg16 = %c0_i32 to %0 step %c1_i32  : i32 {
      %c1_i32_16 = arith.constant 1 : i32
      %17 = arith.muli %arg16, %c1_i32_16 : i32
      %c0_i32_17 = arith.constant 0 : i32
      %18 = arith.addi %c0_i32_17, %17 : i32
      %c8_i32 = arith.constant 8 : i32
      %19 = arith.muli %18, %c8_i32 : i32
      %20 = tpu.assume_multiple %19, 8 : i32
      %21 = arith.index_cast %20 : i32 to index
      %c0_18 = arith.constant 0 : index
      %c0_19 = arith.constant 0 : index
      %22 = vector.load %arg1[%21, %c0_18, %c0_19] : memref<16x128x2xf32, #tpu.memory_space<vmem>>, vector<8x128x2xf32>
      %23 = vector.shape_cast %22 : vector<8x128x2xf32> to vector<1024x2xf32>
      %c0_20 = arith.constant 0 : index
      %c0_21 = arith.constant 0 : index
      %24 = vector.load %arg2[%c0_20, %c0_21] : memref<2x32xf32, #tpu.memory_space<vmem>>, vector<2x32xf32>
      %cst_22 = arith.constant dense<0.000000e+00> : vector<1024x32xf32>
      %25 = tpu.matmul %23, %24, %cst_22 {dimension_numbers = #tpu.dot_dimension_numbers<[1], [0], [0], [1], [0, 0, 1, 1], [], []>} : vector<1024x2xf32>, vector<2x32xf32>, vector<1024x32xf32> -> vector<1024x32xf32>
      %c0_23 = arith.constant 0 : index
      %c0_24 = arith.constant 0 : index
      %26 = vector.load %arg3[%c0_23, %c0_24] : memref<1x32xf32, #tpu.memory_space<vmem>>, vector<1x32xf32>
      %27 = vector.broadcast %26 : vector<1x32xf32> to vector<1024x32xf32>
      %28 = arith.addf %25, %27 : vector<1024x32xf32>
      %cst_25 = arith.constant 0.000000e+00 : f32
      %29 = vector.broadcast %cst_25 : f32 to vector<1024x32xf32>
      %30 = arith.maximumf %28, %29 : vector<1024x32xf32>
      %c0_26 = arith.constant 0 : index
      %c0_27 = arith.constant 0 : index
      %31 = vector.load %arg4[%c0_26, %c0_27] : memref<32x64xf32, #tpu.memory_space<vmem>>, vector<32x64xf32>
      %cst_28 = arith.constant dense<0.000000e+00> : vector<1024x64xf32>
      %32 = tpu.matmul %30, %31, %cst_28 {dimension_numbers = #tpu.dot_dimension_numbers<[1], [0], [0], [1], [0, 0, 1, 1], [], []>} : vector<1024x32xf32>, vector<32x64xf32>, vector<1024x64xf32> -> vector<1024x64xf32>
      %c0_29 = arith.constant 0 : index
      %c0_30 = arith.constant 0 : index
      %33 = vector.load %arg5[%c0_29, %c0_30] : memref<1x64xf32, #tpu.memory_space<vmem>>, vector<1x64xf32>
      %34 = vector.broadcast %33 : vector<1x64xf32> to vector<1024x64xf32>
      %35 = arith.addf %32, %34 : vector<1024x64xf32>
      %cst_31 = arith.constant 0.000000e+00 : f32
      %36 = vector.broadcast %cst_31 : f32 to vector<1024x64xf32>
      %37 = arith.maximumf %35, %36 : vector<1024x64xf32>
      %c0_32 = arith.constant 0 : index
      %c0_33 = arith.constant 0 : index
      %38 = vector.load %arg6[%c0_32, %c0_33] : memref<64x128xf32, #tpu.memory_space<vmem>>, vector<64x128xf32>
      %cst_34 = arith.constant dense<0.000000e+00> : vector<1024x128xf32>
      %39 = tpu.matmul %37, %38, %cst_34 {dimension_numbers = #tpu.dot_dimension_numbers<[1], [0], [0], [1], [0, 0, 1, 1], [], []>} : vector<1024x64xf32>, vector<64x128xf32>, vector<1024x128xf32> -> vector<1024x128xf32>
      %c0_35 = arith.constant 0 : index
      %c0_36 = arith.constant 0 : index
      %40 = vector.load %arg7[%c0_35, %c0_36] : memref<1x128xf32, #tpu.memory_space<vmem>>, vector<1x128xf32>
      %41 = vector.broadcast %40 : vector<1x128xf32> to vector<1024x128xf32>
      %42 = arith.addf %39, %41 : vector<1024x128xf32>
      %cst_37 = arith.constant 0.000000e+00 : f32
      %43 = vector.broadcast %cst_37 : f32 to vector<1024x128xf32>
      %44 = arith.maximumf %42, %43 : vector<1024x128xf32>
      %c0_38 = arith.constant 0 : index
      %c0_39 = arith.constant 0 : index
      %45 = vector.load %arg8[%c0_38, %c0_39] : memref<128x256xf32, #tpu.memory_space<vmem>>, vector<128x256xf32>
      %cst_40 = arith.constant dense<0.000000e+00> : vector<1024x256xf32>
      %46 = tpu.matmul %44, %45, %cst_40 {dimension_numbers = #tpu.dot_dimension_numbers<[1], [0], [0], [1], [0, 0, 1, 1], [], []>} : vector<1024x128xf32>, vector<128x256xf32>, vector<1024x256xf32> -> vector<1024x256xf32>
      %c0_41 = arith.constant 0 : index
      %c0_42 = arith.constant 0 : index
      %47 = vector.load %arg9[%c0_41, %c0_42] : memref<1x256xf32, #tpu.memory_space<vmem>>, vector<1x256xf32>
      %48 = vector.broadcast %47 : vector<1x256xf32> to vector<1024x256xf32>
      %49 = arith.addf %46, %48 : vector<1024x256xf32>
      %cst_43 = arith.constant 0.000000e+00 : f32
      %50 = vector.broadcast %cst_43 : f32 to vector<1024x256xf32>
      %51 = arith.maximumf %49, %50 : vector<1024x256xf32>
      %52 = vector.shape_cast %51 : vector<1024x256xf32> to vector<8x128x256xf32>
      %cst_44 = arith.constant dense<0.000000e+00> : vector<8x256xf32>
      %53 = vector.multi_reduction <add>, %52, %cst_44 [1] : vector<8x128x256xf32> to vector<8x256xf32>
      %54 = arith.index_cast %18 : i32 to index
      %c0_45 = arith.constant 0 : index
      %c0_46 = arith.constant 0 : index
      %55 = vector.load %arg15[%54, %c0_45, %c0_46] : memref<2x8x256xf32, #tpu.memory_space<vmem>>, vector<1x8x256xf32>
      %56 = vector.shape_cast %55 : vector<1x8x256xf32> to vector<8x256xf32>
      %57 = vector.shape_cast %53 : vector<8x256xf32> to vector<1x8x256xf32>
      tpu.vector_store %arg15[%54, %c0_45, %c0_46], %57 {strides = array<i32>} : memref<2x8x256xf32, #tpu.memory_space<vmem>>, vector<1x8x256xf32>,
    }
    %c2_i32_0 = arith.constant 2 : i32
    %c0 = arith.constant 0 : index
    %c0_1 = arith.constant 0 : index
    %c0_2 = arith.constant 0 : index
    %1 = vector.load %arg15[%c0, %c0_1, %c0_2] : memref<2x8x256xf32, #tpu.memory_space<vmem>>, vector<2x8x256xf32>
    %2 = vector.shape_cast %1 : vector<2x8x256xf32> to vector<16x256xf32>
    %c0_3 = arith.constant 0 : index
    %c0_4 = arith.constant 0 : index
    %3 = vector.load %arg10[%c0_3, %c0_4] : memref<256x128xf32, #tpu.memory_space<vmem>>, vector<256x128xf32>
    %cst = arith.constant dense<0.000000e+00> : vector<16x128xf32>
    %4 = tpu.matmul %2, %3, %cst {dimension_numbers = #tpu.dot_dimension_numbers<[1], [0], [0], [1], [0, 0, 1, 1], [], []>} : vector<16x256xf32>, vector<256x128xf32>, vector<16x128xf32> -> vector<16x128xf32>
    %c0_5 = arith.constant 0 : index
    %c0_6 = arith.constant 0 : index
    %5 = vector.load %arg11[%c0_5, %c0_6] : memref<1x128xf32, #tpu.memory_space<vmem>>, vector<1x128xf32>
    %6 = vector.broadcast %5 : vector<1x128xf32> to vector<16x128xf32>
    %7 = arith.addf %4, %6 : vector<16x128xf32>
    %cst_7 = arith.constant 0.000000e+00 : f32
    %8 = vector.broadcast %cst_7 : f32 to vector<16x128xf32>
    %9 = arith.maximumf %7, %8 : vector<16x128xf32>
    %c0_8 = arith.constant 0 : index
    %c0_9 = arith.constant 0 : index
    %10 = vector.load %arg12[%c0_8, %c0_9] : memref<128x128xf32, #tpu.memory_space<vmem>>, vector<128x128xf32>
    %cst_10 = arith.constant dense<0.000000e+00> : vector<16x128xf32>
    %11 = tpu.matmul %9, %10, %cst_10 {dimension_numbers = #tpu.dot_dimension_numbers<[1], [0], [0], [1], [0, 0, 1, 1], [], []>} : vector<16x128xf32>, vector<128x128xf32>, vector<16x128xf32> -> vector<16x128xf32>
    %c0_11 = arith.constant 0 : index
    %c0_12 = arith.constant 0 : index
    %12 = vector.load %arg13[%c0_11, %c0_12] : memref<1x128xf32, #tpu.memory_space<vmem>>, vector<1x128xf32>
    %13 = vector.broadcast %12 : vector<1x128xf32> to vector<16x128xf32>
    %14 = arith.addf %11, %13 : vector<16x128xf32>
    %15 = vector.shape_cast %14 : vector<16x128xf32> to vector<1x16x128xf32>
    %c0_13 = arith.constant 0 : index
    %c0_14 = arith.constant 0 : index
    %c0_15 = arith.constant 0 : index
    %16 = vector.load %arg14[%c0_13, %c0_14, %c0_15] : memref<1x16x128xf32, #tpu.memory_space<vmem>>, vector<1x16x128xf32>
    tpu.vector_store %arg14[%c0_13, %c0_14, %c0_15], %15 {strides = array<i32>} : memref<1x16x128xf32, #tpu.memory_space<vmem>>, vector<1x16x128xf32>,
    return
  }
  func.func @transform_0(%arg0: i32) -> (i32, i32, i32) {
    %c0_i32 = arith.constant 0 : i32
    %c0_i32_0 = arith.constant 0 : i32
    %c0_i32_1 = arith.constant 0 : i32
    return %arg0, %c0_i32, %c0_i32_0 : i32, i32, i32
  }
  func.func @transform_1(%arg0: i32) -> (i32, i32) {
    %c0_i32 = arith.constant 0 : i32
    %c0_i32_0 = arith.constant 0 : i32
    %c0_i32_1 = arith.constant 0 : i32
    return %c0_i32, %c0_i32_0 : i32, i32
  }
  func.func @transform_2(%arg0: i32) -> (i32, i32) {
    %c0_i32 = arith.constant 0 : i32
    %c0_i32_0 = arith.constant 0 : i32
    %c0_i32_1 = arith.constant 0 : i32
    return %c0_i32, %c0_i32_0 : i32, i32
  }
  func.func @transform_3(%arg0: i32) -> (i32, i32) {
    %c0_i32 = arith.constant 0 : i32
    %c0_i32_0 = arith.constant 0 : i32
    %c0_i32_1 = arith.constant 0 : i32
    return %c0_i32, %c0_i32_0 : i32, i32
  }
  func.func @transform_4(%arg0: i32) -> (i32, i32) {
    %c0_i32 = arith.constant 0 : i32
    %c0_i32_0 = arith.constant 0 : i32
    %c0_i32_1 = arith.constant 0 : i32
    return %c0_i32, %c0_i32_0 : i32, i32
  }
  func.func @transform_5(%arg0: i32) -> (i32, i32) {
    %c0_i32 = arith.constant 0 : i32
    %c0_i32_0 = arith.constant 0 : i32
    %c0_i32_1 = arith.constant 0 : i32
    return %c0_i32, %c0_i32_0 : i32, i32
  }
  func.func @transform_6(%arg0: i32) -> (i32, i32) {
    %c0_i32 = arith.constant 0 : i32
    %c0_i32_0 = arith.constant 0 : i32
    %c0_i32_1 = arith.constant 0 : i32
    return %c0_i32, %c0_i32_0 : i32, i32
  }
  func.func @transform_7(%arg0: i32) -> (i32, i32) {
    %c0_i32 = arith.constant 0 : i32
    %c0_i32_0 = arith.constant 0 : i32
    %c0_i32_1 = arith.constant 0 : i32
    return %c0_i32, %c0_i32_0 : i32, i32
  }
  func.func @transform_8(%arg0: i32) -> (i32, i32) {
    %c0_i32 = arith.constant 0 : i32
    %c0_i32_0 = arith.constant 0 : i32
    %c0_i32_1 = arith.constant 0 : i32
    return %c0_i32, %c0_i32_0 : i32, i32
  }
  func.func @transform_9(%arg0: i32) -> (i32, i32) {
    %c0_i32 = arith.constant 0 : i32
    %c0_i32_0 = arith.constant 0 : i32
    %c0_i32_1 = arith.constant 0 : i32
    return %c0_i32, %c0_i32_0 : i32, i32
  }
  func.func @transform_10(%arg0: i32) -> (i32, i32) {
    %c0_i32 = arith.constant 0 : i32
    %c0_i32_0 = arith.constant 0 : i32
    %c0_i32_1 = arith.constant 0 : i32
    return %c0_i32, %c0_i32_0 : i32, i32
  }
  func.func @transform_11(%arg0: i32) -> (i32, i32) {
    %c0_i32 = arith.constant 0 : i32
    %c0_i32_0 = arith.constant 0 : i32
    %c0_i32_1 = arith.constant 0 : i32
    return %c0_i32, %c0_i32_0 : i32, i32
  }
  func.func @transform_12(%arg0: i32) -> (i32, i32) {
    %c0_i32 = arith.constant 0 : i32
    %c0_i32_0 = arith.constant 0 : i32
    %c0_i32_1 = arith.constant 0 : i32
    return %c0_i32, %c0_i32_0 : i32, i32
  }
  func.func @transform_13(%arg0: i32) -> (i32, i32, i32) {
    %c0_i32 = arith.constant 0 : i32
    %c0_i32_0 = arith.constant 0 : i32
    %c0_i32_1 = arith.constant 0 : i32
    return %arg0, %c0_i32, %c0_i32_0 : i32, i32, i32
  }
}

</mosaic_0001>

<bundles_post_ra>
// kernel: tpu_custom_call.1
= control target key start
LH: loop header
LB: loop body
LE: loop exit
PB: predicated region body
PF: predicated region fallthrough
CT: control target
= control target key end

     0   :  { %s10395_s0 = inlined_call_operand.vmem [shape: f32[32,128,2], index: 0, kind: input, shape index: {}]   ;;  %s10396_s1 = inlined_call_operand.vmem [shape: f32[2,32], index: 1, kind: input, shape index: {}]   ;;  %s10397_s2 = inlined_call_operand.vmem [shape: f32[1,32], index: 2, kind: input, shape index: {}]   ;;  %s10398_s3 = inlined_call_operand.vmem [shape: f32[32,64], index: 3, kind: input, shape index: {}]   ;;  %s10399_s4 = inlined_call_operand.vmem [shape: f32[1,64], index: 4, kind: input, shape index: {}]   ;;  %s10400_s5 = inlined_call_operand.vmem [shape: f32[64,128], index: 5, kind: input, shape index: {}]   ;;  %s10401_s6 = inlined_call_operand.vmem [shape: f32[1,128], index: 6, kind: input, shape index: {}]   ;;  %s10402_s7 = inlined_call_operand.vmem [shape: f32[128,256], index: 7, kind: input, shape index: {}]   ;;  %s10403_s8 = inlined_call_operand.vmem [shape: f32[1,256], index: 8, kind: input, shape index: {}]   ;;  %s10404_s9 = inlined_call_operand.vmem [shape: f32[256,128], index: 9, kind: input, shape index: {}]   ;;  %s10405_s10 = inlined_call_operand.vmem [shape: f32[1,128], index: 10, kind: input, shape index: {}]   ;;  %s10406_s11 = inlined_call_operand.vmem [shape: f32[128,128], index: 11, kind: input, shape index: {}]   ;;  %s10407_s12 = inlined_call_operand.vmem [shape: f32[1,128], index: 12, kind: input, shape index: {}]   ;;  %s10408_s13 = inlined_call_operand.hbm [shape: f32[2,16,128], index: 13, kind: output, shape index: {}]  }
   0x1   :  { %10411 = sst [smem:[#allocation30_spill]] %s10395_s0 }
   0x2   :  { %10412 = sst [smem:[#allocation31_spill]] %s10396_s1 }
   0x3   :  { %18 = vsyncpa [#allocation4], 0 }
   0x4   :  { %20 = vsyncpa [#allocation4 + $0x1], 0  ;;  %s7916_s25 = smov 0   ;;  %s7918_s26 = smov 0  }
   0x5   :  { %s7920_s27 = smov 0   ;;  %s7922_s28 = smov 0  }
   0x6 LB: > { %10413 = sst [smem:[#allocation6_spill]] %s7832_s27  ;;  %s7937_s29 = sadd.s32 4294967295, %s7836_s28   ;;  %s7836_s28 = sphi %s7922_s28, %s10468_s28   ;;  %s7832_s27 = sphi %s7920_s27, %s10465_s27   ;;  %s7828_s26 = sphi %s7918_s26, %s10467_s26   ;;  %s7824_s25 = sphi %s7916_s25, %s10466_s25  }
   0x7   : > { %s6091_s30 = sadd.s32 4294967294, %s7836_s28   ;;  %s7941_s14 = sadd.s32 1, %s7836_s28  }
   0x8   : > { %s311_s15 = sadd.s32 1, %s7832_s27  ;;  %s308_s16 = ssub.s32 %s7836_s28, %s7941_s14 }
   0x9   : > { %p321_p0 = scmp.ne.s32.totalorder %s7832_s27, %s7828_s26  ;;  %p309_p1 = scmp.eq.s32.totalorder %s308_s16, 0 }
   0xa   : > { %p322_p2 = scmp.eq.s32.totalorder %s7937_s29, 1  ;;  %p327_p3 = scmp.ne.s32.totalorder %s7828_s26, %s7824_s25 }
   0xb   : > { %p328_p4 = scmp.eq.s32.totalorder %s6091_s30, 1  ;;  %p6094_p7 = scmp.ge.s32.totalorder %s7836_s28, 1 }
   0xc   : > { %s7952_s17 = scalar_select %p309_p1, %s7832_s27, %s311_s15  }
   0xd   : > { %p7954_p5 = por %p322_p2, %p321_p0  ;;  %p7958_p6 = por %p328_p4, %p327_p3 }
   0xe   : > { %10414 = sst [smem:[#allocation7_spill]] %s7952_s17  ;;  %p392_p8 = scmp.lt.s32.totalorder %s7836_s28, 3 }
  0x10   : > { %p393_p9 = pnand %p6094_p7, %p392_p8 }
  0x11   : > { %s10410_s20 = sand.u32 (!%p393_p9), 1, %s7828_s26   ;;  %s6096_s21 = sshll.u32 (!%p393_p9), %s7937_s29, 4 }
  0x12   : > { %396 = sbr.rel (%p393_p9) target bundleno = 1954 (0x7a2), region = 72  ;;  %s6095_s22 = sshll.u32 (!%p393_p9), %s10410_s20, 4 }
  0x13   : > { %p438_p10 = scmp.lt.s32.totalorder (!%p393_p9), %s6096_s21, 31  ;;  %s10417_s0 = sld [smem:[#allocation30_spill]] (!%p393_p9) }
  0x14   : > { %s7973_s16 = scalar_lea.vmem (!%p393_p9), [#allocation3], %s6095_s22  ;;  %s7975_s17 = smov (!%p393_p9), 0  }
  0x19   : > { %s10470_s21 = smov (!%p438_p10, %s6096_s21), 31 }
  0x1a   : > { %s6498_s23 = sshll.u32 %s10470_s21, 7 }
  0x1b   : > { %s7971_s15 = scalar_lea.vmem %s10417_s0, %s6498_s23 }
  0x1c LB: >> { %s10418_s1 = sld [smem:[#allocation31_spill]]  ;;  %vm974_vm0 = vcmask 1041408   ;;  %v1811_v1 = vld [vmem:[%s10398_s3] sm:$0xff]  ;;  %v1812_v2 = vld [vmem:[%s10398_s3 + $0x8] sm:$0xff]  ;;  %s6499_s30 = sshll.u32 %s7840_s17, 10  ;;  %vm589_vm1 = vcmask 15360   ;;  %s7840_s17 = sphi %s7975_s17, %s449_s17  }
  0x1d   : >> { %v7592_v3 = vpack.c.bf16 %v1812_v2, %v1811_v1  ;;  %s7991_s0 = scalar_lea.vmem %s7971_s15, %s6499_s30  ;;  %v1813_v4 = vld [vmem:[%s10398_s3 + $0x10] sm:$0xff]  ;;  %v1814_v5 = vld [vmem:[%s10398_s3 + $0x18] sm:$0xff]  ;;  %vm1822_vm2 = vcmask 261120   ;;  %vm3055_vm3 = vcmask 523264   ;;  %vm5758_vm4 = vcmask 1041409   ;;  %s6500_s23 = sshll.u32 %s7840_s17, 4 }
  0x1e   : >> { %v453_v6 = vld [vmem:[%s7991_s0] sm:$0xff]  ;;  %v454_v7 = vld [vmem:[%s7991_s0 + $0x8] sm:$0xff]  ;;  %v455_v8 = vld [vmem:[%s7991_s0 + $0x10] sm:$0xff]  ;;  %v7596_v9 = vpack.c.bf16 %v1814_v5, %v1813_v4  ;;  %vm5760_vm5 = vcmask 1042434   ;;  %vm5762_vm6 = vcmask 1043459   ;;  %vm5764_vm7 = vcmask 1044484  }
  0x1f   : >> { %7712 = vmatprep.subr.bf16.mxu1 %v7592_v3  ;;  %6957 = vmatprep.mubr.msk.f32.mxu0 %vm589_vm1, %v453_v6  ;;  %v456_v10 = vld [vmem:[%s7991_s0 + $0x18] sm:$0xff]  ;;  %v457_v11 = vld [vmem:[%s7991_s0 + $0x20] sm:$0xff]  ;;  %v458_v12 = vld [vmem:[%s7991_s0 + $0x28] sm:$0xff]  ;;  %vm5766_vm8 = vcmask 1045509   ;;  %vm5768_vm9 = vcmask 1046534   ;;  %vm5770_vm10 = vcmask 1047559  }
  0x20   : >> { %7714 = vmatpush3.bf16.msra.mxu1 %v7592_v3  ;;  %v459_v13 = vld [vmem:[%s7991_s0 + $0x30] sm:$0xff]  ;;  %v460_v14 = vld [vmem:[%s7991_s0 + $0x38] sm:$0xff]  ;;  %v461_v15 = vld [vmem:[%s7991_s0 + $0x40] sm:$0xff]  ;;  %s5783_s30 = scalar_lea.vmem [#allocation2], %s6500_s23  ;;  %s449_s17 = sadd.s32 1, %s7840_s17  }
  0x21   : >> { %7713 = vmatprep.subr.bf16.mxu1 %v7596_v9  ;;  %v462_v16 = vld [vmem:[%s7991_s0 + $0x48] sm:$0xff]  ;;  %v463_v17 = vld [vmem:[%s7991_s0 + $0x50] sm:$0xff]  ;;  %v464_v18 = vld [vmem:[%s7991_s0 + $0x58] sm:$0xff]  ;;  %p446_p11 = scmp.ge.s32.totalorder %s449_s17, 2  }
  0x22   : >> { %v581_v0 = vld [vmem:[%s10418_s1] sm:$0x3]  ;;  %v466_v20 = vld [vmem:[%s7991_s0 + $0x68] sm:$0xff]  ;;  %v467_v21 = vld [vmem:[%s7991_s0 + $0x70] sm:$0xff]  ;;  %s6501_s27 = sshll.u32 (%p446_p11), %s7937_s29, 8  ;;  %s6020_s20 = sshll.u32 (%p446_p11), %s7973_s16, 4  ;;  %s10348_s20 = int_to_ptr.vmem [resolvable:$true] %s6020_s20 }
  0x23   : >> { %6955 = vmatprep.subr.msk.mxu0 %vm974_vm0, %v581_v0  ;;  %v465_v19 = vld [vmem:[%s7991_s0 + $0x60] sm:$0xff]  ;;  %v468_v22 = vld [vmem:[%s7991_s0 + $0x78] sm:$0xff]  ;;  %v470_v24 = vld [vmem:[%s7991_s0 + $0x88] sm:$0xff]  ;;  %s10346_s22 = scalar_lea.hbm (%p446_p11), %s10408_s13, %s6501_s27  ;;  %s10463_s23 = sand.u32 (%p446_p11), 1, %s7828_s26  }
  0x24   : >> { %6956 = vmatpush3.msk.msra.mxu0 %vm974_vm0, %v581_v0  ;;  %7715 = vmatpush3.bf16.msra.mxu1 %v7596_v9  ;;  %v469_v23 = vld [vmem:[%s7991_s0 + $0x80] sm:$0xff]  ;;  %v471_v25 = vld [vmem:[%s7991_s0 + $0x90] sm:$0xff]  ;;  %v472_v26 = vld [vmem:[%s7991_s0 + $0x98] sm:$0xff]  ;;  %s10354_s1 = scalar_lea.sflag (%p446_p11), [#allocation4], %s10463_s23  ;;  %s7770_s29 = scalar_lea.vmem (%p446_p11), %s10348_s20, 256 }
  0x25   : >> { %7593 = vmatprep.subr.bf16.mxu0 %v7592_v3  ;;  %6958 = vmatmul.mubr.msk.f32.vlgmr.msra.gmra.mrb[0].mxu0 %vm589_vm1, %v454_v7  ;;  %v473_v27 = vld [vmem:[%s7991_s0 + $0xa0] sm:$0xff]  ;;  %v474_v28 = vld [vmem:[%s7991_s0 + $0xa8] sm:$0xff]  ;;  %v475_v29 = vld [vmem:[%s7991_s0 + $0xb0] sm:$0xff]  ;;  %p7771_p12 = scmp.ne.s32.totalorder (%p446_p11), %s10348_s20, %s7770_s29 }
  0x26   : >> { %7595 = vmatpush3.bf16.msra.mxu0 %v7592_v3  ;;  %6960 = vmatprep.mubr.msk.f32.mxu0 %vm589_vm1, %v455_v8  ;;  %v476_v30 = vld [vmem:[%s7991_s0 + $0xb8] sm:$0xff]  ;;  %v477_v31 = vld [vmem:[%s7991_s0 + $0xc0] sm:$0xff]  ;;  %v478_v32 = vld [vmem:[%s7991_s0 + $0xc8] sm:$0xff] }
  0x27   : >> { %7597 = vmatprep.subr.bf16.mxu0 %v7596_v9  ;;  %v479_v33 = vld [vmem:[%s7991_s0 + $0xd0] sm:$0xff]  ;;  %v480_v34 = vld [vmem:[%s7991_s0 + $0xd8] sm:$0xff]  ;;  %v481_v35 = vld [vmem:[%s7991_s0 + $0xe0] sm:$0xff]  ;;  %p7772_p13 = pnand (%p446_p11), %p7771_p12, %p7954_p5 }
  0x28   : >> { %v482_v36 = vld [vmem:[%s7991_s0 + $0xe8] sm:$0xff]  ;;  %v483_v37 = vld [vmem:[%s7991_s0 + $0xf0] sm:$0xff]  ;;  %v484_v38 = vld [vmem:[%s7991_s0 + $0xf8] sm:$0xff] }
  0x29   : >> { %6961 = vmatmul.mubr.msk.f32.gmra.mrb[2].mxu0 %vm589_vm1, %v456_v10  ;;  %v485_v39 = vld [vmem:[%s7991_s0 + $0x100] sm:$0xff]  ;;  %v486_v40 = vld [vmem:[%s7991_s0 + $0x108] sm:$0xff]  ;;  %v487_v41 = vld [vmem:[%s7991_s0 + $0x110] sm:$0xff]  ;;  %p7773_p0 = pneg (%p446_p11), %p7772_p13 }
  0x2a   : >> { %6963 = vmatprep.mubr.msk.f32.mxu0 %vm589_vm1, %v457_v11  ;;  %7599 = vmatpush3.bf16.msra.mxu0 %v7596_v9  ;;  %v488_v42 = vld [vmem:[%s7991_s0 + $0x118] sm:$0xff]  ;;  %v489_v43 = vld [vmem:[%s7991_s0 + $0x120] sm:$0xff]  ;;  %v490_v44 = vld [vmem:[%s7991_s0 + $0x128] sm:$0xff] }
  0x2b   : >> { %v491_v45 = vld [vmem:[%s7991_s0 + $0x130] sm:$0xff]  ;;  %v492_v46 = vld [vmem:[%s7991_s0 + $0x138] sm:$0xff]  ;;  %v493_v47 = vld [vmem:[%s7991_s0 + $0x140] sm:$0xff] }
  0x2c   : >> { %v494_v48 = vld [vmem:[%s7991_s0 + $0x148] sm:$0xff]  ;;  %v495_v49 = vld [vmem:[%s7991_s0 + $0x150] sm:$0xff]  ;;  %v496_v50 = vld [vmem:[%s7991_s0 + $0x158] sm:$0xff] }
  0x2d   : >> { %6964 = vmatmul.mubr.msk.f32.gmra.mrb[4].mxu0 %vm589_vm1, %v458_v12  ;;  %v497_v51 = vld [vmem:[%s7991_s0 + $0x160] sm:$0xff]  ;;  %v498_v52 = vld [vmem:[%s7991_s0 + $0x168] sm:$0xff]  ;;  %v499_v53 = vld [vmem:[%s7991_s0 + $0x170] sm:$0xff] }
  0x2e   : >> { %6966 = vmatprep.mubr.msk.f32.mxu0 %vm589_vm1, %v459_v13  ;;  %v500_v54 = vld [vmem:[%s7991_s0 + $0x178] sm:$0xff]  ;;  %v501_v55 = vld [vmem:[%s7991_s0 + $0x180] sm:$0xff]  ;;  %v502_v56 = vld [vmem:[%s7991_s0 + $0x188] sm:$0xff] }
  0x2f   : >> { %v503_v57 = vld [vmem:[%s7991_s0 + $0x190] sm:$0xff]  ;;  %v504_v58 = vld [vmem:[%s7991_s0 + $0x198] sm:$0xff]  ;;  %v505_v59 = vld [vmem:[%s7991_s0 + $0x1a0] sm:$0xff] }
  0x30   : >> { %v506_v60 = vld [vmem:[%s7991_s0 + $0x1a8] sm:$0xff]  ;;  %v507_v61 = vld [vmem:[%s7991_s0 + $0x1b0] sm:$0xff]  ;;  %v508_v62 = vld [vmem:[%s7991_s0 + $0x1b8] sm:$0xff] }
  0x31   : >> { %6967 = vmatmul.mubr.msk.f32.gmra.mrb[6].mxu0 %vm589_vm1, %v460_v14  ;;  %v509_v63 = vld [vmem:[%s7991_s0 + $0x1c0] sm:$0xff]  ;;  %v510_v0 = vld [vmem:[%s7991_s0 + $0x1c8] sm:$0xff]  ;;  %v511_v1 = vld [vmem:[%s7991_s0 + $0x1d0] sm:$0xff] }
  0x32   : >> { %6969 = vmatprep.mubr.msk.f32.mxu0 %vm589_vm1, %v461_v15  ;;  %v512_v2 = vld [vmem:[%s7991_s0 + $0x1d8] sm:$0xff]  ;;  %v513_v3 = vld [vmem:[%s7991_s0 + $0x1e0] sm:$0xff]  ;;  %v514_v4 = vld [vmem:[%s7991_s0 + $0x1e8] sm:$0xff] }
  0x33   : >> { %v515_v5 = vld [vmem:[%s7991_s0 + $0x1f0] sm:$0xff]  ;;  %v516_v6 = vld [vmem:[%s7991_s0 + $0x1f8] sm:$0xff]  ;;  %v517_v7 = vld [vmem:[%s7991_s0 + $0x200] sm:$0xff] }
  0x34   : >> { %v518_v8 = vld [vmem:[%s7991_s0 + $0x208] sm:$0xff]  ;;  %v519_v9 = vld [vmem:[%s7991_s0 + $0x210] sm:$0xff]  ;;  %v520_v10 = vld [vmem:[%s7991_s0 + $0x218] sm:$0xff] }
  0x35   : >> { %6970 = vmatmul.mubr.msk.f32.gmra.mrb[8].mxu0 %vm589_vm1, %v462_v16  ;;  %v521_v11 = vld [vmem:[%s7991_s0 + $0x220] sm:$0xff]  ;;  %v522_v12 = vld [vmem:[%s7991_s0 + $0x228] sm:$0xff]  ;;  %v523_v13 = vld [vmem:[%s7991_s0 + $0x230] sm:$0xff] }
  0x36   : >> { %6972 = vmatprep.mubr.msk.f32.mxu0 %vm589_vm1, %v463_v17  ;;  %v524_v14 = vld [vmem:[%s7991_s0 + $0x238] sm:$0xff]  ;;  %v525_v15 = vld [vmem:[%s7991_s0 + $0x240] sm:$0xff]  ;;  %v526_v16 = vld [vmem:[%s7991_s0 + $0x248] sm:$0xff] }
  0x37   : >> { %v527_v17 = vld [vmem:[%s7991_s0 + $0x250] sm:$0xff] }
  0x39   : >> { %6973 = vmatmul.mubr.msk.f32.gmra.mrb[10].mxu0 %vm589_vm1, %v464_v18  ;;  %v528_v18 = vld [vmem:[%s7991_s0 + $0x258] sm:$0xff] }
  0x3a   : >> { %6975 = vmatprep.mubr.msk.f32.mxu0 %vm589_vm1, %v465_v19  ;;  %v529_v19 = vld [vmem:[%s7991_s0 + $0x260] sm:$0xff] }
  0x3d   : >> { %6976 = vmatmul.mubr.msk.f32.gmra.mrb[12].mxu0 %vm589_vm1, %v466_v20  ;;  %v530_v20 = vld [vmem:[%s7991_s0 + $0x268] sm:$0xff] }
  0x3e   : >> { %6978 = vmatprep.mubr.msk.f32.mxu0 %vm589_vm1, %v467_v21  ;;  %v531_v21 = vld [vmem:[%s7991_s0 + $0x270] sm:$0xff] }
  0x41   : >> { %6979 = vmatmul.mubr.msk.f32.gmra.mrb[14].mxu0 %vm589_vm1, %v468_v22  ;;  %v532_v22 = vld [vmem:[%s7991_s0 + $0x278] sm:$0xff] }
  0x42   : >> { %6981 = vmatprep.mubr.msk.f32.mxu0 %vm589_vm1, %v469_v23  ;;  %v533_v23 = vld [vmem:[%s7991_s0 + $0x280] sm:$0xff] }
  0x45   : >> { %6982 = vmatmul.mubr.msk.f32.gmra.mrb[16].mxu0 %vm589_vm1, %v470_v24  ;;  %v534_v24 = vld [vmem:[%s7991_s0 + $0x288] sm:$0xff] }
  0x46   : >> { %6984 = vmatprep.mubr.msk.f32.mxu0 %vm589_vm1, %v471_v25  ;;  %v535_v25 = vld [vmem:[%s7991_s0 + $0x290] sm:$0xff] }
  0x49   : >> { %6985 = vmatmul.mubr.msk.f32.gmra.mrb[18].mxu0 %vm589_vm1, %v472_v26  ;;  %v536_v26 = vld [vmem:[%s7991_s0 + $0x298] sm:$0xff] }
  0x4a   : >> { %6987 = vmatprep.mubr.msk.f32.mxu0 %vm589_vm1, %v473_v27  ;;  %v537_v27 = vld [vmem:[%s7991_s0 + $0x2a0] sm:$0xff] }
  0x4d   : >> { %6988 = vmatmul.mubr.msk.f32.gmra.mrb[20].mxu0 %vm589_vm1, %v474_v28  ;;  %v538_v28 = vld [vmem:[%s7991_s0 + $0x2a8] sm:$0xff] }
  0x4e   : >> { %6990 = vmatprep.mubr.msk.f32.mxu0 %vm589_vm1, %v475_v29  ;;  %v539_v29 = vld [vmem:[%s7991_s0 + $0x2b0] sm:$0xff] }
  0x51   : >> { %6991 = vmatmul.mubr.msk.f32.gmra.mrb[22].mxu0 %vm589_vm1, %v476_v30  ;;  %v540_v30 = vld [vmem:[%s7991_s0 + $0x2b8] sm:$0xff] }
  0x52   : >> { %6993 = vmatprep.mubr.msk.f32.mxu0 %vm589_vm1, %v477_v31  ;;  %v541_v31 = vld [vmem:[%s7991_s0 + $0x2c0] sm:$0xff] }
  0x55   : >> { %6994 = vmatmul.mubr.msk.f32.gmra.mrb[24].mxu0 %vm589_vm1, %v478_v32  ;;  %v542_v32 = vld [vmem:[%s7991_s0 + $0x2c8] sm:$0xff] }
  0x56   : >> { %6996 = vmatprep.mubr.msk.f32.mxu0 %vm589_vm1, %v479_v33  ;;  %v543_v33 = vld [vmem:[%s7991_s0 + $0x2d0] sm:$0xff] }
  0x59   : >> { %6997 = vmatmul.mubr.msk.f32.gmra.mrb[26].mxu0 %vm589_vm1, %v480_v34  ;;  %v544_v34 = vld [vmem:[%s7991_s0 + $0x2d8] sm:$0xff] }
  0x5a   : >> { %6999 = vmatprep.mubr.msk.f32.mxu0 %vm589_vm1, %v481_v35  ;;  %v545_v35 = vld [vmem:[%s7991_s0 + $0x2e0] sm:$0xff] }
  0x5d   : >> { %7000 = vmatmul.mubr.msk.f32.gmra.mrb[28].mxu0 %vm589_vm1, %v482_v36  ;;  %v546_v36 = vld [vmem:[%s7991_s0 + $0x2e8] sm:$0xff] }
  0x5e   : >> { %7002 = vmatprep.mubr.msk.f32.mxu0 %vm589_vm1, %v483_v37  ;;  %v547_v37 = vld [vmem:[%s7991_s0 + $0x2f0] sm:$0xff] }
  0x61   : >> { %7003 = vmatmul.mubr.msk.f32.gmra.mrb[30].mxu0 %vm589_vm1, %v484_v38  ;;  %v548_v38 = vld [vmem:[%s7991_s0 + $0x2f8] sm:$0xff] }
  0x62   : >> { %7005 = vmatprep.mubr.msk.f32.mxu0 %vm589_vm1, %v485_v39  ;;  %v549_v39 = vld [vmem:[%s7991_s0 + $0x300] sm:$0xff] }
  0x65   : >> { %7006 = vmatmul.mubr.msk.f32.gmra.mrb[32].mxu0 %vm589_vm1, %v486_v40  ;;  %v550_v40 = vld [vmem:[%s7991_s0 + $0x308] sm:$0xff] }
  0x66   : >> { %7008 = vmatprep.mubr.msk.f32.mxu0 %vm589_vm1, %v487_v41  ;;  %v551_v41 = vld [vmem:[%s7991_s0 + $0x310] sm:$0xff] }
  0x69   : >> { %7009 = vmatmul.mubr.msk.f32.gmra.mrb[34].mxu0 %vm589_vm1, %v488_v42  ;;  %v552_v42 = vld [vmem:[%s7991_s0 + $0x318] sm:$0xff] }
  0x6a   : >> { %7011 = vmatprep.mubr.msk.f32.mxu0 %vm589_vm1, %v489_v43  ;;  %v553_v43 = vld [vmem:[%s7991_s0 + $0x320] sm:$0xff] }
  0x6d   : >> { %7012 = vmatmul.mubr.msk.f32.gmra.mrb[36].mxu0 %vm589_vm1, %v490_v44  ;;  %v554_v44 = vld [vmem:[%s7991_s0 + $0x328] sm:$0xff] }
  0x6e   : >> { %7014 = vmatprep.mubr.msk.f32.mxu0 %vm589_vm1, %v491_v45  ;;  %v555_v45 = vld [vmem:[%s7991_s0 + $0x330] sm:$0xff] }
  0x71   : >> { %7015 = vmatmul.mubr.msk.f32.gmra.mrb[38].mxu0 %vm589_vm1, %v492_v46  ;;  %v556_v46 = vld [vmem:[%s7991_s0 + $0x338] sm:$0xff] }
  0x72   : >> { %7017 = vmatprep.mubr.msk.f32.mxu0 %vm589_vm1, %v493_v47  ;;  %v557_v47 = vld [vmem:[%s7991_s0 + $0x340] sm:$0xff] }
  0x75   : >> { %7018 = vmatmul.mubr.msk.f32.gmra.mrb[40].mxu0 %vm589_vm1, %v494_v48  ;;  %v558_v48 = vld [vmem:[%s7991_s0 + $0x348] sm:$0xff] }
  0x76   : >> { %7020 = vmatprep.mubr.msk.f32.mxu0 %vm589_vm1, %v495_v49  ;;  %v559_v49 = vld [vmem:[%s7991_s0 + $0x350] sm:$0xff] }
  0x79   : >> { %7021 = vmatmul.mubr.msk.f32.gmra.mrb[42].mxu0 %vm589_vm1, %v496_v50  ;;  %v560_v50 = vld [vmem:[%s7991_s0 + $0x358] sm:$0xff] }
  0x7a   : >> { %7023 = vmatprep.mubr.msk.f32.mxu0 %vm589_vm1, %v497_v51  ;;  %v561_v51 = vld [vmem:[%s7991_s0 + $0x360] sm:$0xff] }
  0x7d   : >> { %7024 = vmatmul.mubr.msk.f32.gmra.mrb[44].mxu0 %vm589_vm1, %v498_v52 }
  0x7e   : >> { %7026 = vmatprep.mubr.msk.f32.mxu0 %vm589_vm1, %v499_v53 }
  0x81   : >> { %7027 = vmatmul.mubr.msk.f32.gmra.mrb[46].mxu0 %vm589_vm1, %v500_v54  ;;  %v562_v54 = vld [vmem:[%s7991_s0 + $0x368] sm:$0xff] }
  0x82   : >> { %7029 = vmatprep.mubr.msk.f32.mxu0 %vm589_vm1, %v501_v55  ;;  %v563_v55 = vld [vmem:[%s7991_s0 + $0x370] sm:$0xff] }
  0x85   : >> { %7030 = vmatmul.mubr.msk.f32.gmra.mrb[48].mxu0 %vm589_vm1, %v502_v56 }
  0x86   : >> { %7032 = vmatprep.mubr.msk.f32.mxu0 %vm589_vm1, %v503_v57 }
  0x89   : >> { %7033 = vmatmul.mubr.msk.f32.gmra.mrb[50].mxu0 %vm589_vm1, %v504_v58  ;;  %v564_v58 = vld [vmem:[%s7991_s0 + $0x378] sm:$0xff] }
  0x8a   : >> { %7035 = vmatprep.mubr.msk.f32.mxu0 %vm589_vm1, %v505_v59  ;;  %v565_v59 = vld [vmem:[%s7991_s0 + $0x380] sm:$0xff] }
  0x8d   : >> { %7036 = vmatmul.mubr.msk.f32.gmra.mrb[52].mxu0 %vm589_vm1, %v506_v60 }
  0x8e   : >> { %7038 = vmatprep.mubr.msk.f32.mxu0 %vm589_vm1, %v507_v61  ;;  %v3040_v61 = vld [vmem:[%s10400_s5] sm:$0xff] }
  0x91   : >> { %7039 = vmatmul.mubr.msk.f32.gmra.mrb[54].mxu0 %vm589_vm1, %v508_v62  ;;  %v3041_v62 = vld [vmem:[%s10400_s5 + $0x8] sm:$0xff] }
  0x92   : >> { %7041 = vmatprep.mubr.msk.f32.mxu0 %vm589_vm1, %v509_v63 }
  0x95   : >> { %7042 = vmatmul.mubr.msk.f32.gmra.mrb[56].mxu0 %vm589_vm1, %v510_v0  ;;  %v8238_v0 = vpack.c.bf16 %v3041_v62, %v3040_v61 }
  0x96   : >> { %7044 = vmatprep.mubr.msk.f32.mxu0 %vm589_vm1, %v511_v1  ;;  %v566_v1 = vld [vmem:[%s7991_s0 + $0x388] sm:$0xff] }
  0x97   : >> { %7601 = vmatprep.subr.bf16.mxu0 %v8238_v0 }
  0x99   : >> { %7045 = vmatmul.mubr.msk.f32.gmra.mrb[58].mxu0 %vm589_vm1, %v512_v2  ;;  %v567_v2 = vld [vmem:[%s7991_s0 + $0x390] sm:$0xff] }
  0x9a   : >> { %7047 = vmatprep.mubr.msk.f32.mxu0 %vm589_vm1, %v513_v3 }
  0x9d   : >> { %7048 = vmatmul.mubr.msk.f32.gmra.mrb[60].mxu0 %vm589_vm1, %v514_v4 }
  0x9e   : >> { %7050 = vmatprep.mubr.msk.f32.mxu0 %vm589_vm1, %v515_v5  ;;  %v568_v5 = vld [vmem:[%s7991_s0 + $0x398] sm:$0xff] }
  0xa1   : >> { %7051 = vmatmul.mubr.msk.f32.gmra.mrb[62].mxu0 %vm589_vm1, %v516_v6  ;;  %v569_v6 = vld [vmem:[%s7991_s0 + $0x3a0] sm:$0xff] }
  0xa2   : >> { %7053 = vmatprep.mubr.msk.f32.mxu0 %vm589_vm1, %v517_v7 }
  0xa5   : >> { %7054 = vmatmul.mubr.msk.f32.gmra.mrb[64].mxu0 %vm589_vm1, %v518_v8 }
  0xa6   : >> { %7056 = vmatprep.mubr.msk.f32.mxu0 %vm589_vm1, %v519_v9  ;;  %v570_v9 = vld [vmem:[%s7991_s0 + $0x3a8] sm:$0xff] }
  0xa9   : >> { %7057 = vmatmul.mubr.msk.f32.gmra.mrb[66].mxu0 %vm589_vm1, %v520_v10  ;;  %v571_v10 = vld [vmem:[%s7991_s0 + $0x3b0] sm:$0xff] }
  0xaa   : >> { %7059 = vmatprep.mubr.msk.f32.mxu0 %vm589_vm1, %v521_v11 }
  0xad   : >> { %7060 = vmatmul.mubr.msk.f32.gmra.mrb[68].mxu0 %vm589_vm1, %v522_v12 }
  0xae   : >> { %7062 = vmatprep.mubr.msk.f32.mxu0 %vm589_vm1, %v523_v13  ;;  %v572_v13 = vld [vmem:[%s7991_s0 + $0x3b8] sm:$0xff] }
  0xb1   : >> { %7063 = vmatmul.mubr.msk.f32.gmra.mrb[70].mxu0 %vm589_vm1, %v524_v14  ;;  %v573_v14 = vld [vmem:[%s7991_s0 + $0x3c0] sm:$0xff] }
  0xb2   : >> { %7065 = vmatprep.mubr.msk.f32.mxu0 %vm589_vm1, %v525_v15 }
  0xb5   : >> { %7066 = vmatmul.mubr.msk.f32.gmra.mrb[72].mxu0 %vm589_vm1, %v526_v16 }
  0xb6   : >> { %7068 = vmatprep.mubr.msk.f32.mxu0 %vm589_vm1, %v527_v17  ;;  %v574_v17 = vld [vmem:[%s7991_s0 + $0x3c8] sm:$0xff] }
  0xb9   : >> { %7069 = vmatmul.mubr.msk.f32.gmra.mrb[74].mxu0 %vm589_vm1, %v528_v18  ;;  %v575_v18 = vld [vmem:[%s7991_s0 + $0x3d0] sm:$0xff] }
  0xba   : >> { %7071 = vmatprep.mubr.msk.f32.mxu0 %vm589_vm1, %v529_v19 }
  0xbd   : >> { %7072 = vmatmul.mubr.msk.f32.gmra.mrb[76].mxu0 %vm589_vm1, %v530_v20 }
  0xbe   : >> { %7074 = vmatprep.mubr.msk.f32.mxu0 %vm589_vm1, %v531_v21  ;;  %v576_v21 = vld [vmem:[%s7991_s0 + $0x3d8] sm:$0xff] }
  0xc1   : >> { %7075 = vmatmul.mubr.msk.f32.gmra.mrb[78].mxu0 %vm589_vm1, %v532_v22  ;;  %v577_v22 = vld [vmem:[%s7991_s0 + $0x3e0] sm:$0xff] }
  0xc2   : >> { %7077 = vmatprep.mubr.msk.f32.mxu0 %vm589_vm1, %v533_v23 }
  0xc5   : >> { %7078 = vmatmul.mubr.msk.f32.gmra.mrb[80].mxu0 %vm589_vm1, %v534_v24  ;;  %v8289_v24 = vld [vmem:[%s10397_s2] ss:$0 sm:$0xff] }
  0xc6   : >> { %7080 = vmatprep.mubr.msk.f32.mxu0 %vm589_vm1, %v535_v25 }
  0xc9   : >> { %7081 = vmatmul.mubr.msk.f32.gmra.mrb[82].mxu0 %vm589_vm1, %v536_v26  ;;  %v578_v26 = vld [vmem:[%s7991_s0 + $0x3e8] sm:$0xff] }
  0xca   : >> { %7083 = vmatprep.mubr.msk.f32.mxu0 %vm589_vm1, %v537_v27  ;;  %v579_v27 = vld [vmem:[%s7991_s0 + $0x3f0] sm:$0xff] }
  0xcd   : >> { %7084 = vmatmul.mubr.msk.f32.gmra.mrb[84].mxu0 %vm589_vm1, %v538_v28 }
  0xce   : >> { %7086 = vmatprep.mubr.msk.f32.mxu0 %vm589_vm1, %v539_v29 }
  0xd1   : >> { %7087 = vmatmul.mubr.msk.f32.gmra.mrb[86].mxu0 %vm589_vm1, %v540_v30 }
  0xd2   : >> { %7089 = vmatprep.mubr.msk.f32.mxu0 %vm589_vm1, %v541_v31  ;;  %v580_v31 = vld [vmem:[%s7991_s0 + $0x3f8] sm:$0xff] }
  0xd5   : >> { %7090 = vmatmul.mubr.msk.f32.gmra.mrb[88].mxu0 %vm589_vm1, %v542_v32 }
  0xd6   : >> { %7092 = vmatprep.mubr.msk.f32.mxu0 %vm589_vm1, %v543_v33 }
  0xd9   : >> { %7093 = vmatmul.mubr.msk.f32.gmra.mrb[90].mxu0 %vm589_vm1, %v544_v34 }
  0xda   : >> { %7095 = vmatprep.mubr.msk.f32.mxu0 %vm589_vm1, %v545_v35 }
  0xdd   : >> { %7096 = vmatmul.mubr.msk.f32.gmra.mrb[92].mxu0 %vm589_vm1, %v546_v36  ;;  %v3042_v36 = vld [vmem:[%s10400_s5 + $0x10] sm:$0xff] }
  0xde   : >> { %7098 = vmatprep.mubr.msk.f32.mxu0 %vm589_vm1, %v547_v37  ;;  %v3043_v37 = vld [vmem:[%s10400_s5 + $0x18] sm:$0xff] }
  0xe1   : >> { %7099 = vmatmul.mubr.msk.f32.gmra.mrb[94].mxu0 %vm589_vm1, %v548_v38 }
  0xe2   : >> { %7101 = vmatprep.mubr.msk.f32.mxu0 %vm589_vm1, %v549_v39 }
  0xe5   : >> { %7102 = vmatmul.mubr.msk.f32.gmra.mrb[96].mxu0 %vm589_vm1, %v550_v40 }
  0xe6   : >> { %7104 = vmatprep.mubr.msk.f32.mxu0 %vm589_vm1, %v551_v41  ;;  %v7604_v41 = vpack.c.bf16 %v3043_v37, %v3042_v36 }
  0xe9   : >> { %7105 = vmatmul.mubr.msk.f32.gmra.mrb[98].mxu0 %vm589_vm1, %v552_v42 }
  0xea   : >> { %7107 = vmatprep.mubr.msk.f32.mxu0 %vm589_vm1, %v553_v43 }
  0xed   : >> { %7108 = vmatmul.mubr.msk.f32.gmra.mrb[100].mxu0 %vm589_vm1, %v554_v44 }
  0xee   : >> { %7110 = vmatprep.mubr.msk.f32.mxu0 %vm589_vm1, %v555_v45 }
  0xf1   : >> { %7111 = vmatmul.mubr.msk.f32.gmra.mrb[102].mxu0 %vm589_vm1, %v556_v46 }
  0xf2   : >> { %7113 = vmatprep.mubr.msk.f32.mxu0 %vm589_vm1, %v557_v47 }
  0xf5   : >> { %7114 = vmatmul.mubr.msk.f32.gmra.mrb[104].mxu0 %vm589_vm1, %v558_v48 }
  0xf6   : >> { %7116 = vmatprep.mubr.msk.f32.mxu0 %vm589_vm1, %v559_v49 }
  0xf8   : >> { %v8215_v52 = vpop.f32.mrb[0].mxu0 }
  0xf9   : >> { %v1044_v53 = vpop.f32.mrb[1].mxu0  ;;  %7117 = vmatmul.mubr.msk.f32.gmra.mrb[106].mxu0 %vm589_vm1, %v560_v50  ;;  %v1050_v32 = vadd.f32 %v8215_v52, %v8289_v24 }
  0xfa   : >> { %7119 = vmatprep.mubr.msk.f32.mxu0 %vm589_vm1, %v561_v51  ;;  %v1045_v28 = vadd.f32 %v8289_v24, %v1044_v53 }
  0xfb   : >> { %v1684_v39 = vmax.f32 %v1050_v32, 0.0 }
  0xfc   : >> { %v8221_v56 = vpop.f32.mrb[2].mxu0  ;;  %v1683_v33 = vmax.f32 %v1045_v28, 0.0 }
  0xfd   : >> { %v1054_v57 = vpop.f32.mrb[3].mxu0  ;;  %7120 = vmatmul.mubr.msk.f32.gmra.mrb[108].mxu0 %vm589_vm1, %v562_v54  ;;  %v1060_v40 = vadd.f32 %v8221_v56, %v8289_v24 }
  0xfe   : >> { %7122 = vmatprep.mubr.msk.f32.mxu0 %vm589_vm1, %v563_v55  ;;  %v1055_v34 = vadd.f32 %v8289_v24, %v1054_v57 }
  0xff   : >> { %v1686_v46 = vmax.f32 %v1060_v40, 0.0 }
 0x100   : >> { %v8227_v60 = vpop.f32.mrb[4].mxu0  ;;  %v1685_v42 = vmax.f32 %v1055_v34, 0.0 }
 0x101   : >> { %v8235_v63 = vpop.f32.mrb[5].mxu0  ;;  %7123 = vmatmul.mubr.msk.f32.gmra.mrb[110].mxu0 %vm589_vm1, %v564_v58  ;;  %v1070_v47 = vadd.f32 %v8227_v60, %v8289_v24 }
 0x102   : >> { %7125 = vmatprep.mubr.msk.f32.mxu0 %vm589_vm1, %v565_v59  ;;  %v1065_v43 = vadd.f32 %v8289_v24, %v8235_v63 }
 0x103   : >> { %v1688_v52 = vmax.f32 %v1070_v47, 0.0 }
 0x104   : >> { %v8244_v3 = vpop.f32.mrb[6].mxu0  ;;  %v1687_v48 = vmax.f32 %v1065_v43, 0.0 }
 0x105   : >> { %v8246_v4 = vpop.f32.mrb[7].mxu0  ;;  %7126 = vmatmul.mubr.msk.f32.gmra.mrb[112].mxu0 %vm589_vm1, %v566_v1  ;;  %v1080_v53 = vadd.f32 %v8244_v3, %v8289_v24 }
 0x106   : >> { %7128 = vmatprep.mubr.msk.f32.mxu0 %vm589_vm1, %v567_v2  ;;  %v1075_v49 = vadd.f32 %v8289_v24, %v8246_v4 }
 0x107   : >> { %v1690_v58 = vmax.f32 %v1080_v53, 0.0 }
 0x108   : >> { %v8252_v7 = vpop.f32.mrb[8].mxu0  ;;  %v1689_v54 = vmax.f32 %v1075_v49, 0.0 }
 0x109   : >> { %v8254_v8 = vpop.f32.mrb[9].mxu0  ;;  %7129 = vmatmul.mubr.msk.f32.gmra.mrb[114].mxu0 %vm589_vm1, %v568_v5  ;;  %v1090_v59 = vadd.f32 %v8252_v7, %v8289_v24 }
 0x10a   : >> { %7131 = vmatprep.mubr.msk.f32.mxu0 %vm589_vm1, %v569_v6  ;;  %v1085_v55 = vadd.f32 %v8289_v24, %v8254_v8 }
 0x10c   : >> { %v8260_v11 = vpop.f32.mrb[10].mxu0  ;;  %v1691_v60 = vmax.f32 %v1085_v55, 0.0 }
 0x10d   : >> { %v8262_v12 = vpop.f32.mrb[11].mxu0  ;;  %7132 = vmatmul.mubr.msk.f32.gmra.mrb[116].mxu0 %vm589_vm1, %v570_v9  ;;  %v1100_v1 = vadd.f32 %v8260_v11, %v8289_v24 }
 0x10e   : >> { %7134 = vmatprep.mubr.msk.f32.mxu0 %vm589_vm1, %v571_v10  ;;  %v1095_v61 = vadd.f32 %v8289_v24, %v8262_v12 }
 0x10f   : >> { %v1694_v6 = vmax.f32 %v1100_v1, 0.0 }
 0x110   : >> { %v8268_v15 = vpop.f32.mrb[12].mxu0  ;;  %v1693_v2 = vmax.f32 %v1095_v61, 0.0 }
 0x111   : >> { %v8270_v16 = vpop.f32.mrb[13].mxu0  ;;  %7135 = vmatmul.mubr.msk.f32.gmra.mrb[118].mxu0 %vm589_vm1, %v572_v13  ;;  %v1110_v7 = vadd.f32 %v8268_v15, %v8289_v24 }
 0x112   : >> { %7137 = vmatprep.mubr.msk.f32.mxu0 %vm589_vm1, %v573_v14  ;;  %v1105_v3 = vadd.f32 %v8289_v24, %v8270_v16 }
 0x113   : >> { %v1696_v12 = vmax.f32 %v1110_v7, 0.0 }
 0x114   : >> { %v8276_v19 = vpop.f32.mrb[14].mxu0  ;;  %v1695_v8 = vmax.f32 %v1105_v3, 0.0 }
 0x115   : >> { %v8278_v20 = vpop.f32.mrb[15].mxu0  ;;  %7138 = vmatmul.mubr.msk.f32.gmra.mrb[120].mxu0 %vm589_vm1, %v574_v17  ;;  %v1120_v13 = vadd.f32 %v8276_v19, %v8289_v24 }
 0x116   : >> { %7140 = vmatprep.mubr.msk.f32.mxu0 %vm589_vm1, %v575_v18  ;;  %v1115_v9 = vadd.f32 %v8289_v24, %v8278_v20 }
 0x117   : >> { %v1698_v18 = vmax.f32 %v1120_v13, 0.0  ;;  %v3047_v13 = vld [vmem:[%s10400_s5 + $0x38] sm:$0xff] }
 0x118   : >> { %v8284_v23 = vpop.f32.mrb[16].mxu0  ;;  %v1697_v14 = vmax.f32 %v1115_v9, 0.0 }
 0x119   : >> { %v8291_v25 = vpop.f32.mrb[17].mxu0  ;;  %7141 = vmatmul.mubr.msk.f32.gmra.mrb[122].mxu0 %vm589_vm1, %v576_v21  ;;  %v1130_v20 = vadd.f32 %v8284_v23, %v8289_v24 }
 0x11a   : >> { %7143 = vmatprep.mubr.msk.f32.mxu0 %vm589_vm1, %v577_v22  ;;  %v1125_v15 = vadd.f32 %v8289_v24, %v8291_v25  ;;  %v3044_v25 = vld [vmem:[%s10400_s5 + $0x20] sm:$0xff] }
 0x11b   : >> { %v1700_v23 = vmax.f32 %v1130_v20, 0.0 }
 0x11c   : >> { %v8298_v29 = vpop.f32.mrb[18].mxu0  ;;  %v1699_v21 = vmax.f32 %v1125_v15, 0.0 }
 0x11d   : >> { %v8300_v30 = vpop.f32.mrb[19].mxu0  ;;  %7144 = vmatmul.mubr.msk.f32.gmra.mrb[124].mxu0 %vm589_vm1, %v578_v26  ;;  %v3045_v26 = vld [vmem:[%s10400_s5 + $0x28] sm:$0xff] }
 0x11e   : >> { %7146 = vmatprep.mubr.msk.f32.mxu0 %vm589_vm1, %v579_v27  ;;  %v1135_v19 = vadd.f32 %v8289_v24, %v8300_v30  ;;  %v7608_v28 = vpack.c.bf16 %v3045_v26, %v3044_v25  ;;  %v1140_v30 = vadd.f32 %v8298_v29, %v8289_v24 }
 0x120   : >> { %v8308_v35 = vpop.f32.mrb[20].mxu0  ;;  %v1702_v36 = vmax.f32 %v1140_v30, 0.0 }
 0x121   : >> { %v8316_v38 = vpop.f32.mrb[21].mxu0  ;;  %7147 = vmatmul.mubr.msk.f32.gmra.mrb[126].mxu0 %vm589_vm1, %v580_v31  ;;  %v1701_v31 = vmax.f32 %v1135_v19, 0.0  ;;  %v1150_v37 = vadd.f32 %v8308_v35, %v8289_v24 }
 0x122   : >> { %7157 = vmatprep.mubr.msk.f32.mxu0 %vm1822_vm2, %v1683_v33  ;;  %v1145_v32 = vadd.f32 %v8289_v24, %v8316_v38 }
 0x124   : >> { %v8324_v44 = vpop.f32.mrb[22].mxu0 }
 0x125   : >> { %v8326_v45 = vpop.f32.mrb[23].mxu0  ;;  %7158 = vmatmul.mubr.msk.f32.vlgmr.msra.gmra.mrb[128].mxu0 %vm1822_vm2, %v1684_v39  ;;  %v1703_v39 = vmax.f32 %v1145_v32, 0.0 }
 0x126   : >> { %7160 = vmatprep.mubr.msk.f32.mxu0 %vm1822_vm2, %v1685_v42  ;;  %7603 = vmatpush3.bf16.msra.mxu0 %v8238_v0  ;;  %v1692_v0 = vmax.f32 %v1090_v59, 0.0  ;;  %v1155_v29 = vadd.f32 %v8289_v24, %v8326_v45  ;;  %v1160_v42 = vadd.f32 %v8324_v44, %v8289_v24 }
 0x127   : >> { %7605 = vmatprep.subr.bf16.mxu0 %v7604_v41 }
 0x128   : >> { %v8335_v50 = vpop.f32.mrb[24].mxu0  ;;  %v1705_v43 = vmax.f32 %v1155_v29, 0.0  ;;  %v1706_v45 = vmax.f32 %v1160_v42, 0.0 }
 0x129   : >> { %v8337_v51 = vpop.f32.mrb[25].mxu0  ;;  %7161 = vmatmul.mubr.msk.f32.gmra.mrb[130].mxu0 %vm1822_vm2, %v1686_v46 }
 0x12a   : >> { %7163 = vmatprep.mubr.msk.f32.mxu0 %vm1822_vm2, %v1687_v48  ;;  %7607 = vmatpush3.bf16.msra.mxu0 %v7604_v41  ;;  %v1704_v41 = vmax.f32 %v1150_v37, 0.0  ;;  %v1165_v35 = vadd.f32 %v8289_v24, %v8337_v51  ;;  %v1170_v48 = vadd.f32 %v8335_v50, %v8289_v24 }
 0x12b   : >> { %7609 = vmatprep.subr.bf16.mxu0 %v7608_v28 }
 0x12c   : >> { %v8345_v56 = vpop.f32.mrb[26].mxu0  ;;  %v1707_v49 = vmax.f32 %v1165_v35, 0.0  ;;  %v1708_v51 = vmax.f32 %v1170_v48, 0.0 }
 0x12d   : >> { %v8347_v57 = vpop.f32.mrb[27].mxu0  ;;  %7164 = vmatmul.mubr.msk.f32.gmra.mrb[132].mxu0 %vm1822_vm2, %v1688_v52 }
 0x12e   : >> { %7166 = vmatprep.mubr.msk.f32.mxu0 %vm1822_vm2, %v1689_v54  ;;  %7611 = vmatpush3.bf16.msra.mxu0 %v7608_v28  ;;  %v1175_v44 = vadd.f32 %v8289_v24, %v8347_v57  ;;  %v1180_v54 = vadd.f32 %v8345_v56, %v8289_v24 }
 0x130   : >> { %v8355_v62 = vpop.f32.mrb[28].mxu0  ;;  %v1709_v55 = vmax.f32 %v1175_v44, 0.0  ;;  %v1710_v57 = vmax.f32 %v1180_v54, 0.0 }
 0x131   : >> { %v8357_v63 = vpop.f32.mrb[29].mxu0  ;;  %7167 = vmatmul.mubr.msk.f32.gmra.mrb[134].mxu0 %vm1822_vm2, %v1690_v58 }
 0x132   : >> { %7169 = vmatprep.mubr.msk.f32.mxu0 %vm1822_vm2, %v1691_v60  ;;  %v1185_v50 = vadd.f32 %v8289_v24, %v8357_v63  ;;  %v1190_v60 = vadd.f32 %v8355_v62, %v8289_v24 }
 0x134   : >> { %v8365_v4 = vpop.f32.mrb[30].mxu0  ;;  %v1711_v61 = vmax.f32 %v1185_v50, 0.0  ;;  %v1712_v63 = vmax.f32 %v1190_v60, 0.0 }
 0x135   : >> { %v8367_v5 = vpop.f32.mrb[31].mxu0  ;;  %7170 = vmatmul.mubr.msk.f32.gmra.mrb[136].mxu0 %vm1822_vm2, %v1692_v0 }
 0x136   : >> { %7172 = vmatprep.mubr.msk.f32.mxu0 %vm1822_vm2, %v1693_v2  ;;  %v1195_v56 = vadd.f32 %v8289_v24, %v8367_v5  ;;  %v1200_v2 = vadd.f32 %v8365_v4, %v8289_v24 }
 0x138   : >> { %v8375_v10 = vpop.f32.mrb[32].mxu0  ;;  %v1713_v3 = vmax.f32 %v1195_v56, 0.0  ;;  %v1714_v5 = vmax.f32 %v1200_v2, 0.0 }
 0x139   : >> { %v8377_v11 = vpop.f32.mrb[33].mxu0  ;;  %7173 = vmatmul.mubr.msk.f32.gmra.mrb[138].mxu0 %vm1822_vm2, %v1694_v6 }
 0x13a   : >> { %7175 = vmatprep.mubr.msk.f32.mxu0 %vm1822_vm2, %v1695_v8  ;;  %v1205_v62 = vadd.f32 %v8289_v24, %v8377_v11  ;;  %v1210_v8 = vadd.f32 %v8375_v10, %v8289_v24  ;;  %v3046_v11 = vld [vmem:[%s10400_s5 + $0x30] sm:$0xff] }
 0x13b   : >> { %v7612_v15 = vpack.c.bf16 %v3047_v13, %v3046_v11 }
 0x13c   : >> { %v8385_v16 = vpop.f32.mrb[34].mxu0  ;;  %v1715_v9 = vmax.f32 %v1205_v62, 0.0  ;;  %v1716_v10 = vmax.f32 %v1210_v8, 0.0 }
 0x13d   : >> { %v8387_v17 = vpop.f32.mrb[35].mxu0  ;;  %7176 = vmatmul.mubr.msk.f32.gmra.mrb[140].mxu0 %vm1822_vm2, %v1696_v12  ;;  %7613 = vmatprep.subr.bf16.mxu0 %v7612_v15 }
 0x13e   : >> { %7178 = vmatprep.mubr.msk.f32.mxu0 %vm1822_vm2, %v1697_v14  ;;  %v1215_v4 = vadd.f32 %v8289_v24, %v8387_v17  ;;  %v1220_v17 = vadd.f32 %v8385_v16, %v8289_v24  ;;  %7615 = vmatpush3.bf16.msra.mxu0 %v7612_v15 }
 0x140   : >> { %v8395_v22 = vpop.f32.mrb[36].mxu0  ;;  %v1718_v25 = vmax.f32 %v1220_v17, 0.0 }
 0x141   : >> { %v8403_v27 = vpop.f32.mrb[37].mxu0  ;;  %7179 = vmatmul.mubr.msk.f32.gmra.mrb[142].mxu0 %vm1822_vm2, %v1698_v18  ;;  %v1717_v18 = vmax.f32 %v1215_v4, 0.0  ;;  %v1230_v26 = vadd.f32 %v8395_v22, %v8289_v24 }
 0x142   : >> { %7181 = vmatprep.mubr.msk.f32.mxu0 %vm1822_vm2, %v1699_v21  ;;  %v1225_v20 = vadd.f32 %v8289_v24, %v8403_v27 }
 0x143   : >> { %v1720_v30 = vmax.f32 %v1230_v26, 0.0 }
 0x144   : >> { %v8411_v33 = vpop.f32.mrb[38].mxu0  ;;  %v1719_v28 = vmax.f32 %v1225_v20, 0.0 }
 0x145   : >> { %v8413_v34 = vpop.f32.mrb[39].mxu0  ;;  %7182 = vmatmul.mubr.msk.f32.gmra.mrb[144].mxu0 %vm1822_vm2, %v1700_v23 }
 0x146   : >> { %7184 = vmatprep.mubr.msk.f32.mxu0 %vm1822_vm2, %v1701_v31  ;;  %v1235_v16 = vadd.f32 %v8289_v24, %v8413_v34  ;;  %v1240_v31 = vadd.f32 %v8411_v33, %v8289_v24 }
 0x148   : >> { %v8421_v40 = vpop.f32.mrb[40].mxu0  ;;  %v1721_v32 = vmax.f32 %v1235_v16, 0.0  ;;  %v1722_v34 = vmax.f32 %v1240_v31, 0.0 }
 0x149   : >> { %v8423_v38 = vpop.f32.mrb[41].mxu0  ;;  %7185 = vmatmul.mubr.msk.f32.gmra.mrb[146].mxu0 %vm1822_vm2, %v1702_v36 }
 0x14a   : >> { %7187 = vmatprep.mubr.msk.f32.mxu0 %vm1822_vm2, %v1703_v39  ;;  %v1245_v22 = vadd.f32 %v8289_v24, %v8423_v38  ;;  %v1250_v39 = vadd.f32 %v8421_v40, %v8289_v24 }
 0x14c   : >> { %v8431_v46 = vpop.f32.mrb[42].mxu0  ;;  %v1723_v29 = vmax.f32 %v1245_v22, 0.0  ;;  %v1724_v38 = vmax.f32 %v1250_v39, 0.0 }
 0x14d   : >> { %v8433_v47 = vpop.f32.mrb[43].mxu0  ;;  %7188 = vmatmul.mubr.msk.f32.gmra.mrb[148].mxu0 %vm1822_vm2, %v1704_v41 }
 0x14e   : >> { %7190 = vmatprep.mubr.msk.f32.mxu0 %vm1822_vm2, %v1705_v43  ;;  %v1255_v33 = vadd.f32 %v8289_v24, %v8433_v47  ;;  %v1260_v43 = vadd.f32 %v8431_v46, %v8289_v24 }
 0x150   : >> { %v8441_v52 = vpop.f32.mrb[44].mxu0  ;;  %v1725_v35 = vmax.f32 %v1255_v33, 0.0  ;;  %v1726_v47 = vmax.f32 %v1260_v43, 0.0 }
 0x151   : >> { %v8443_v53 = vpop.f32.mrb[45].mxu0  ;;  %7191 = vmatmul.mubr.msk.f32.gmra.mrb[150].mxu0 %vm1822_vm2, %v1706_v45 }
 0x152   : >> { %7193 = vmatprep.mubr.msk.f32.mxu0 %vm1822_vm2, %v1707_v49  ;;  %v1265_v40 = vadd.f32 %v8289_v24, %v8443_v53  ;;  %v1270_v49 = vadd.f32 %v8441_v52, %v8289_v24 }
 0x154   : >> { %v8451_v58 = vpop.f32.mrb[46].mxu0  ;;  %v1727_v44 = vmax.f32 %v1265_v40, 0.0  ;;  %v1728_v50 = vmax.f32 %v1270_v49, 0.0 }
 0x155   : >> { %v8453_v59 = vpop.f32.mrb[47].mxu0  ;;  %7194 = vmatmul.mubr.msk.f32.gmra.mrb[152].mxu0 %vm1822_vm2, %v1708_v51 }
 0x156   : >> { %7196 = vmatprep.mubr.msk.f32.mxu0 %vm1822_vm2, %v1709_v55  ;;  %v1275_v46 = vadd.f32 %v8289_v24, %v8453_v59 }
 0x158   : >> { %v8461_v0 = vpop.f32.mrb[48].mxu0  ;;  %v1729_v60 = vmax.f32 %v1275_v46, 0.0 }
 0x159   : >> { %v8463_v1 = vpop.f32.mrb[49].mxu0  ;;  %7197 = vmatmul.mubr.msk.f32.gmra.mrb[154].mxu0 %vm1822_vm2, %v1710_v57  ;;  %v1280_v57 = vadd.f32 %v8451_v58, %v8289_v24  ;;  %v1290_v58 = vadd.f32 %v8461_v0, %v8289_v24 }
 0x15a   : >> { %7199 = vmatprep.mubr.msk.f32.mxu0 %vm1822_vm2, %v1711_v61  ;;  %v1285_v52 = vadd.f32 %v8289_v24, %v8463_v1 }
 0x15b   : >> { %v1730_v62 = vmax.f32 %v1280_v57, 0.0  ;;  %v1732_v0 = vmax.f32 %v1290_v58, 0.0 }
 0x15c   : >> { %v8471_v6 = vpop.f32.mrb[50].mxu0  ;;  %v1731_v1 = vmax.f32 %v1285_v52, 0.0 }
 0x15d   : >> { %v8473_v7 = vpop.f32.mrb[51].mxu0  ;;  %7200 = vmatmul.mubr.msk.f32.gmra.mrb[156].mxu0 %vm1822_vm2, %v1712_v63 }
 0x15e   : >> { %7202 = vmatprep.mubr.msk.f32.mxu0 %vm1822_vm2, %v1713_v3 }
 0x160   : >> { %v8481_v12 = vpop.f32.mrb[52].mxu0 }
 0x161   : >> { %v8489_v14 = vpop.f32.mrb[53].mxu0  ;;  %7203 = vmatmul.mubr.msk.f32.gmra.mrb[158].mxu0 %vm1822_vm2, %v1714_v5  ;;  %v1295_v5 = vadd.f32 %v8289_v24, %v8473_v7 }
 0x162   : >> { %7205 = vmatprep.mubr.msk.f32.mxu0 %vm1822_vm2, %v1715_v9  ;;  %v1305_v17 = vadd.f32 %v8289_v24, %v8489_v14 }
 0x163   : >> { %v1733_v7 = vmax.f32 %v1295_v5, 0.0 }
 0x164   : >> { %v8497_v21 = vpop.f32.mrb[54].mxu0  ;;  %v1735_v14 = vmax.f32 %v1305_v17, 0.0 }
 0x165   : >> { %v8499_v19 = vpop.f32.mrb[55].mxu0  ;;  %7206 = vmatmul.mubr.msk.f32.gmra.mrb[160].mxu0 %vm1822_vm2, %v1716_v10  ;;  %v1300_v10 = vadd.f32 %v8471_v6, %v8289_v24 }
 0x166   : >> { %7208 = vmatprep.mubr.msk.f32.mxu0 %vm1822_vm2, %v1717_v18  ;;  %v1315_v31 = vadd.f32 %v8289_v24, %v8499_v19 }
 0x167   : >> { %v1734_v6 = vmax.f32 %v1300_v10, 0.0 }
 0x168   : >> { %v8507_v23 = vpop.f32.mrb[56].mxu0  ;;  %v1737_v19 = vmax.f32 %v1315_v31, 0.0 }
 0x169   : >> { %v8509_v27 = vpop.f32.mrb[57].mxu0  ;;  %7209 = vmatmul.mubr.msk.f32.gmra.mrb[162].mxu0 %vm1822_vm2, %v1718_v25 }
 0x16a   : >> { %7211 = vmatprep.mubr.msk.f32.mxu0 %vm1822_vm2, %v1719_v28  ;;  %v1325_v43 = vadd.f32 %v8289_v24, %v8509_v27 }
 0x16c   : >> { %v8517_v36 = vpop.f32.mrb[58].mxu0  ;;  %v1739_v27 = vmax.f32 %v1325_v43, 0.0 }
 0x16d   : >> { %v8519_v37 = vpop.f32.mrb[59].mxu0  ;;  %7212 = vmatmul.mubr.msk.f32.gmra.mrb[164].mxu0 %vm1822_vm2, %v1720_v30  ;;  %v1310_v30 = vadd.f32 %v8481_v12, %v8289_v24 }
 0x16e   : >> { %7214 = vmatprep.mubr.msk.f32.mxu0 %vm1822_vm2, %v1721_v32 }
 0x16f   : >> { %v1736_v12 = vmax.f32 %v1310_v30, 0.0 }
 0x170   : >> { %v8527_v41 = vpop.f32.mrb[60].mxu0 }
 0x171   : >> { %v8529_v42 = vpop.f32.mrb[61].mxu0  ;;  %7215 = vmatmul.mubr.msk.f32.gmra.mrb[166].mxu0 %vm1822_vm2, %v1722_v34 }
 0x172   : >> { %7217 = vmatprep.mubr.msk.f32.mxu0 %vm1822_vm2, %v1723_v29 }
 0x174   : >> { %v8537_v45 = vpop.f32.mrb[62].mxu0 }
 0x175   : >> { %v8539_v48 = vpop.f32.mrb[63].mxu0  ;;  %7218 = vmatmul.mubr.msk.f32.gmra.mrb[168].mxu0 %vm1822_vm2, %v1724_v38  ;;  %v1320_v38 = vadd.f32 %v8497_v21, %v8289_v24 }
 0x176   : >> { %7220 = vmatprep.mubr.msk.f32.mxu0 %vm1822_vm2, %v1725_v35  ;;  %v1355_v5 = vadd.f32 %v8289_v24, %v8539_v48 }
 0x177   : >> { %v1738_v21 = vmax.f32 %v1320_v38, 0.0 }
 0x178   : >> { %v7055_v51 = vpop.f32.mrb[64].mxu0  ;;  %v1745_v48 = vmax.f32 %v1355_v5, 0.0 }
 0x179   : >> { %v1370_v54 = vadd.f32 %v7055_v51, %v8289_v24  ;;  %v1364_v53 = vpop.f32.mrb[65].mxu0  ;;  %7221 = vmatmul.mubr.msk.f32.gmra.mrb[170].mxu0 %vm1822_vm2, %v1726_v47  ;;  %v1330_v51 = vadd.f32 %v8507_v23, %v8289_v24 }
 0x17a   : >> { %v1365_v55 = vadd.f32 %v8289_v24, %v1364_v53  ;;  %7223 = vmatprep.mubr.msk.f32.mxu0 %vm1822_vm2, %v1727_v44 }
 0x17b   : >> { %v1748_v56 = vmax.f32 %v1370_v54, 0.0  ;;  %v1335_v54 = vadd.f32 %v8289_v24, %v8519_v37  ;;  %v1740_v23 = vmax.f32 %v1330_v51, 0.0 }
 0x17c   : >> { %v1747_v61 = vmax.f32 %v1365_v55, 0.0  ;;  %v7058_v59 = vpop.f32.mrb[66].mxu0 }
 0x17d   : >> { %v1380_v63 = vadd.f32 %v7058_v59, %v8289_v24  ;;  %v1374_v2 = vpop.f32.mrb[67].mxu0  ;;  %7224 = vmatmul.mubr.msk.f32.gmra.mrb[172].mxu0 %vm1822_vm2, %v1728_v50  ;;  %v1741_v37 = vmax.f32 %v1335_v54, 0.0  ;;  %v1345_v59 = vadd.f32 %v8289_v24, %v8529_v42 }
 0x17e   : >> { %v1375_v3 = vadd.f32 %v8289_v24, %v1374_v2  ;;  %7226 = vmatprep.mubr.msk.f32.mxu0 %vm1822_vm2, %v1729_v60  ;;  %7253 = vmatprep.mubr.msk.f32.mxu1 %vm1822_vm2, %v1747_v61  ;;  %v1340_v61 = vadd.f32 %v8517_v36, %v8289_v24 }
 0x17f   : >> { %7254 = vmatmul.mubr.msk.f32.vlgmr.msra.gmra.mrb[0].mxu1 %vm1822_vm2, %v1748_v56  ;;  %v1750_v4 = vmax.f32 %v1380_v63, 0.0  ;;  %v1743_v42 = vmax.f32 %v1345_v59, 0.0 }
 0x180   : >> { %v1749_v8 = vmax.f32 %v1375_v3, 0.0  ;;  %v7061_v9 = vpop.f32.mrb[68].mxu0  ;;  %v1742_v36 = vmax.f32 %v1340_v61, 0.0 }
 0x181   : >> { %v1390_v11 = vadd.f32 %v7061_v9, %v8289_v24  ;;  %v1384_v13 = vpop.f32.mrb[69].mxu0  ;;  %7227 = vmatmul.mubr.msk.f32.gmra.mrb[174].mxu0 %vm1822_vm2, %v1730_v62 }
 0x182   : >> { %v1385_v15 = vadd.f32 %v8289_v24, %v1384_v13  ;;  %7229 = vmatprep.mubr.msk.f32.mxu0 %vm1822_vm2, %v1731_v1  ;;  %7256 = vmatprep.mubr.msk.f32.mxu1 %vm1822_vm2, %v1749_v8  ;;  %v1350_v1 = vadd.f32 %v8527_v41, %v8289_v24 }
 0x183   : >> { %7257 = vmatmul.mubr.msk.f32.gmra.mrb[2].mxu1 %vm1822_vm2, %v1750_v4  ;;  %v1752_v25 = vmax.f32 %v1390_v11, 0.0 }
 0x184   : >> { %v1751_v18 = vmax.f32 %v1385_v15, 0.0  ;;  %v7064_v20 = vpop.f32.mrb[70].mxu0  ;;  %v1744_v41 = vmax.f32 %v1350_v1, 0.0 }
 0x185   : >> { %v1400_v26 = vadd.f32 %v7064_v20, %v8289_v24  ;;  %v1394_v28 = vpop.f32.mrb[71].mxu0  ;;  %7230 = vmatmul.mubr.msk.f32.gmra.mrb[176].mxu0 %vm1822_vm2, %v1732_v0  ;;  %v1360_v0 = vadd.f32 %v8537_v45, %v8289_v24 }
 0x186   : >> { %v1395_v16 = vadd.f32 %v8289_v24, %v1394_v28  ;;  %7232 = vmatprep.mubr.msk.f32.mxu0 %vm1822_vm2, %v1733_v7  ;;  %7259 = vmatprep.mubr.msk.f32.mxu1 %vm1822_vm2, %v1751_v18 }
 0x187   : >> { %7260 = vmatmul.mubr.msk.f32.gmra.mrb[4].mxu1 %vm1822_vm2, %v1752_v25  ;;  %v1754_v34 = vmax.f32 %v1400_v26, 0.0  ;;  %v1746_v26 = vmax.f32 %v1360_v0, 0.0 }
 0x188   : >> { %v1753_v32 = vmax.f32 %v1395_v16, 0.0  ;;  %v7067_v22 = vpop.f32.mrb[72].mxu0 }
 0x189   : >> { %v1410_v39 = vadd.f32 %v7067_v22, %v8289_v24  ;;  %v1404_v29 = vpop.f32.mrb[73].mxu0  ;;  %7233 = vmatmul.mubr.msk.f32.gmra.mrb[178].mxu0 %vm1822_vm2, %v1734_v6 }
 0x18a   : >> { %v1405_v33 = vadd.f32 %v8289_v24, %v1404_v29  ;;  %7235 = vmatprep.mubr.msk.f32.mxu0 %vm1822_vm2, %v1735_v14  ;;  %7262 = vmatprep.mubr.msk.f32.mxu1 %vm1822_vm2, %v1753_v32 }
 0x18b   : >> { %7263 = vmatmul.mubr.msk.f32.gmra.mrb[6].mxu1 %vm1822_vm2, %v1754_v34  ;;  %v1756_v47 = vmax.f32 %v1410_v39, 0.0 }
 0x18c   : >> { %v1755_v35 = vmax.f32 %v1405_v33, 0.0  ;;  %v7070_v40 = vpop.f32.mrb[74].mxu0 }
 0x18d   : >> { %v1420_v49 = vadd.f32 %v7070_v40, %v8289_v24  ;;  %v1414_v44 = vpop.f32.mrb[75].mxu0  ;;  %7236 = vmatmul.mubr.msk.f32.gmra.mrb[180].mxu0 %vm1822_vm2, %v1736_v12 }
 0x18e   : >> { %v1415_v46 = vadd.f32 %v8289_v24, %v1414_v44  ;;  %7238 = vmatprep.mubr.msk.f32.mxu0 %vm1822_vm2, %v1737_v19  ;;  %7265 = vmatprep.mubr.msk.f32.mxu1 %vm1822_vm2, %v1755_v35 }
 0x18f   : >> { %7266 = vmatmul.mubr.msk.f32.gmra.mrb[8].mxu1 %vm1822_vm2, %v1756_v47  ;;  %v1758_v50 = vmax.f32 %v1420_v49, 0.0 }
 0x190   : >> { %v1757_v53 = vmax.f32 %v1415_v46, 0.0  ;;  %v7073_v55 = vpop.f32.mrb[76].mxu0 }
 0x191   : >> { %v1430_v57 = vadd.f32 %v7073_v55, %v8289_v24  ;;  %v1424_v60 = vpop.f32.mrb[77].mxu0  ;;  %7239 = vmatmul.mubr.msk.f32.gmra.mrb[182].mxu0 %vm1822_vm2, %v1738_v21 }
 0x192   : >> { %v1425_v52 = vadd.f32 %v8289_v24, %v1424_v60  ;;  %7241 = vmatprep.mubr.msk.f32.mxu0 %vm1822_vm2, %v1739_v27  ;;  %7268 = vmatprep.mubr.msk.f32.mxu1 %vm1822_vm2, %v1757_v53 }
 0x193   : >> { %7269 = vmatmul.mubr.msk.f32.gmra.mrb[10].mxu1 %vm1822_vm2, %v1758_v50  ;;  %v1760_v2 = vmax.f32 %v1430_v57, 0.0 }
 0x194   : >> { %v1759_v56 = vmax.f32 %v1425_v52, 0.0  ;;  %v7076_v63 = vpop.f32.mrb[78].mxu0 }
 0x195   : >> { %v1440_v3 = vadd.f32 %v7076_v63, %v8289_v24  ;;  %v1434_v62 = vpop.f32.mrb[79].mxu0  ;;  %7242 = vmatmul.mubr.msk.f32.gmra.mrb[184].mxu0 %vm1822_vm2, %v1740_v23 }
 0x196   : >> { %v1435_v58 = vadd.f32 %v8289_v24, %v1434_v62  ;;  %7244 = vmatprep.mubr.msk.f32.mxu0 %vm1822_vm2, %v1741_v37  ;;  %7271 = vmatprep.mubr.msk.f32.mxu1 %vm1822_vm2, %v1759_v56 }
 0x197   : >> { %7272 = vmatmul.mubr.msk.f32.gmra.mrb[12].mxu1 %vm1822_vm2, %v1760_v2  ;;  %v1762_v4 = vmax.f32 %v1440_v3, 0.0 }
 0x198   : >> { %v1761_v8 = vmax.f32 %v1435_v58, 0.0  ;;  %v7079_v9 = vpop.f32.mrb[80].mxu0 }
 0x199   : >> { %v1450_v11 = vadd.f32 %v7079_v9, %v8289_v24  ;;  %v1444_v13 = vpop.f32.mrb[81].mxu0  ;;  %7245 = vmatmul.mubr.msk.f32.gmra.mrb[186].mxu0 %vm1822_vm2, %v1742_v36 }
 0x19a   : >> { %v1445_v15 = vadd.f32 %v8289_v24, %v1444_v13  ;;  %7247 = vmatprep.mubr.msk.f32.mxu0 %vm1822_vm2, %v1743_v42  ;;  %7274 = vmatprep.mubr.msk.f32.mxu1 %vm1822_vm2, %v1761_v8 }
 0x19b   : >> { %7275 = vmatmul.mubr.msk.f32.gmra.mrb[14].mxu1 %vm1822_vm2, %v1762_v4  ;;  %v1764_v17 = vmax.f32 %v1450_v11, 0.0 }
 0x19c   : >> { %v1763_v10 = vmax.f32 %v1445_v15, 0.0  ;;  %v7082_v7 = vpop.f32.mrb[82].mxu0 }
 0x19d   : >> { %v1460_v18 = vadd.f32 %v7082_v7, %v8289_v24  ;;  %v1454_v20 = vpop.f32.mrb[83].mxu0  ;;  %7248 = vmatmul.mubr.msk.f32.gmra.mrb[188].mxu0 %vm1822_vm2, %v1744_v41 }
 0x19e   : >> { %v1455_v25 = vadd.f32 %v8289_v24, %v1454_v20  ;;  %7250 = vmatprep.mubr.msk.f32.mxu0 %vm1822_vm2, %v1745_v48  ;;  %7277 = vmatprep.mubr.msk.f32.mxu1 %vm1822_vm2, %v1763_v10 }
 0x19f   : >> { %7278 = vmatmul.mubr.msk.f32.gmra.mrb[16].mxu1 %vm1822_vm2, %v1764_v17  ;;  %v1766_v16 = vmax.f32 %v1460_v18, 0.0 }
 0x1a0   : >> { %v1765_v45 = vmax.f32 %v1455_v25, 0.0  ;;  %v7085_v28 = vpop.f32.mrb[84].mxu0 }
 0x1a1   : >> { %v1470_v6 = vadd.f32 %v7085_v28, %v8289_v24  ;;  %v1464_v30 = vpop.f32.mrb[85].mxu0  ;;  %7251 = vmatmul.mubr.msk.f32.gmra.mrb[190].mxu0 %vm1822_vm2, %v1746_v26 }
 0x1a2   : >> { %v1465_v14 = vadd.f32 %v8289_v24, %v1464_v30  ;;  %7280 = vmatprep.mubr.msk.f32.mxu1 %vm1822_vm2, %v1765_v45 }
 0x1a3   : >> { %7281 = vmatmul.mubr.msk.f32.gmra.mrb[18].mxu1 %vm1822_vm2, %v1766_v16  ;;  %v1768_v22 = vmax.f32 %v1470_v6, 0.0 }
 0x1a4   : >> { %v1767_v31 = vmax.f32 %v1465_v14, 0.0  ;;  %v7088_v32 = vpop.f32.mrb[86].mxu0 }
 0x1a5   : >> { %v1480_v34 = vadd.f32 %v7088_v32, %v8289_v24  ;;  %v1474_v39 = vpop.f32.mrb[87].mxu0 }
 0x1a6   : >> { %v1475_v29 = vadd.f32 %v8289_v24, %v1474_v39  ;;  %7283 = vmatprep.mubr.msk.f32.mxu1 %vm1822_vm2, %v1767_v31 }
 0x1a7   : >> { %7284 = vmatmul.mubr.msk.f32.gmra.mrb[20].mxu1 %vm1822_vm2, %v1768_v22  ;;  %v1770_v38 = vmax.f32 %v1480_v34, 0.0 }
 0x1a8   : >> { %v1769_v33 = vmax.f32 %v1475_v29, 0.0  ;;  %v7091_v12 = vpop.f32.mrb[88].mxu0 }
 0x1a9   : >> { %v1490_v19 = vadd.f32 %v7091_v12, %v8289_v24  ;;  %v1484_v43 = vpop.f32.mrb[89].mxu0 }
 0x1aa   : >> { %v1485_v35 = vadd.f32 %v8289_v24, %v1484_v43  ;;  %7286 = vmatprep.mubr.msk.f32.mxu1 %vm1822_vm2, %v1769_v33 }
 0x1ab   : >> { %7287 = vmatmul.mubr.msk.f32.gmra.mrb[22].mxu1 %vm1822_vm2, %v1770_v38  ;;  %v1772_v49 = vmax.f32 %v1490_v19, 0.0 }
 0x1ac   : >> { %v1771_v40 = vmax.f32 %v1485_v35, 0.0  ;;  %v7094_v47 = vpop.f32.mrb[90].mxu0 }
 0x1ad   : >> { %v1500_v44 = vadd.f32 %v7094_v47, %v8289_v24  ;;  %v1494_v46 = vpop.f32.mrb[91].mxu0 }
 0x1ae   : >> { %v1495_v21 = vadd.f32 %v8289_v24, %v1494_v46  ;;  %7289 = vmatprep.mubr.msk.f32.mxu1 %vm1822_vm2, %v1771_v40 }
 0x1af   : >> { %7290 = vmatmul.mubr.msk.f32.gmra.mrb[24].mxu1 %vm1822_vm2, %v1772_v49  ;;  %v1774_v54 = vmax.f32 %v1500_v44, 0.0 }
 0x1b0   : >> { %v1773_v51 = vmax.f32 %v1495_v21, 0.0  ;;  %v7097_v27 = vpop.f32.mrb[92].mxu0 }
 0x1b1   : >> { %v1510_v53 = vadd.f32 %v7097_v27, %v8289_v24  ;;  %v1504_v55 = vpop.f32.mrb[93].mxu0 }
 0x1b2   : >> { %v1505_v50 = vadd.f32 %v8289_v24, %v1504_v55  ;;  %7292 = vmatprep.mubr.msk.f32.mxu1 %vm1822_vm2, %v1773_v51  ;;  %v4276_v55 = vld [vmem:[%s10402_s7 + $0x18] sm:$0xff] }
 0x1b3   : >> { %7293 = vmatmul.mubr.msk.f32.gmra.mrb[26].mxu1 %vm1822_vm2, %v1774_v54  ;;  %v1776_v52 = vmax.f32 %v1510_v53, 0.0  ;;  %v4274_v53 = vld [vmem:[%s10402_s7 + $0x8] sm:$0xff] }
 0x1b4   : >> { %v1775_v57 = vmax.f32 %v1505_v50, 0.0  ;;  %v7100_v60 = vpop.f32.mrb[94].mxu0  ;;  %v7616_v50 = vpack.c.bf16 %v4276_v55, %v4274_v53  ;;  %v4281_v53 = vld [vmem:[%s10402_s7 + $0x40] sm:$0xff] }
 0x1b5   : >> { %v1520_v23 = vadd.f32 %v7100_v60, %v8289_v24  ;;  %v1514_v61 = vpop.f32.mrb[95].mxu0  ;;  %v4275_v60 = vld [vmem:[%s10402_s7 + $0x10] sm:$0xff] }
 0x1b6   : >> { %v1515_v37 = vadd.f32 %v8289_v24, %v1514_v61  ;;  %7295 = vmatprep.mubr.msk.f32.mxu1 %vm1822_vm2, %v1775_v57  ;;  %v4273_v57 = vld [vmem:[%s10402_s7] sm:$0xff]  ;;  %7617 = vmatprep.subr.bf16.mxu1 %v7616_v50  ;;  %v4283_v50 = vld [vmem:[%s10402_s7 + $0x50] sm:$0xff] }
 0x1b7   : >> { %7296 = vmatmul.mubr.msk.f32.gmra.mrb[28].mxu1 %vm1822_vm2, %v1776_v52  ;;  %v1778_v63 = vmax.f32 %v1520_v23, 0.0  ;;  %v7618_v61 = vpack.c.bf16 %v4275_v60, %v4273_v57 }
 0x1b8   : >> { %v1777_v59 = vmax.f32 %v1515_v37, 0.0  ;;  %v7103_v56 = vpop.f32.mrb[96].mxu0 }
 0x1b9   : >> { %v1530_v2 = vadd.f32 %v7103_v56, %v8289_v24  ;;  %v1524_v3 = vpop.f32.mrb[97].mxu0  ;;  %7619 = vmatpush1.bf16.msra.mxu1 %v7618_v61 }
 0x1ba   : >> { %v1525_v62 = vadd.f32 %v8289_v24, %v1524_v3  ;;  %7298 = vmatprep.mubr.msk.f32.mxu1 %vm1822_vm2, %v1777_v59 }
 0x1bb   : >> { %7299 = vmatmul.mubr.msk.f32.gmra.mrb[30].mxu1 %vm1822_vm2, %v1778_v63  ;;  %v1780_v1 = vmax.f32 %v1530_v2, 0.0 }
 0x1bc   : >> { %v1779_v58 = vmax.f32 %v1525_v62, 0.0  ;;  %v7106_v36 = vpop.f32.mrb[98].mxu0 }
 0x1bd   : >> { %v1540_v42 = vadd.f32 %v7106_v36, %v8289_v24  ;;  %v1534_v5 = vpop.f32.mrb[99].mxu0 }
 0x1be   : >> { %v1535_v8 = vadd.f32 %v8289_v24, %v1534_v5  ;;  %7301 = vmatprep.mubr.msk.f32.mxu1 %vm1822_vm2, %v1779_v58 }
 0x1bf   : >> { %7302 = vmatmul.mubr.msk.f32.gmra.mrb[32].mxu1 %vm1822_vm2, %v1780_v1  ;;  %v1782_v11 = vmax.f32 %v1540_v42, 0.0 }
 0x1c0   : >> { %v1781_v9 = vmax.f32 %v1535_v8, 0.0  ;;  %v7109_v4 = vpop.f32.mrb[100].mxu0 }
 0x1c1   : >> { %v1550_v13 = vadd.f32 %v7109_v4, %v8289_v24  ;;  %v1544_v15 = vpop.f32.mrb[101].mxu0 }
 0x1c2   : >> { %v1545_v41 = vadd.f32 %v8289_v24, %v1544_v15  ;;  %7304 = vmatprep.mubr.msk.f32.mxu1 %vm1822_vm2, %v1781_v9 }
 0x1c3   : >> { %7305 = vmatmul.mubr.msk.f32.gmra.mrb[34].mxu1 %vm1822_vm2, %v1782_v11  ;;  %v1784_v10 = vmax.f32 %v1550_v13, 0.0 }
 0x1c4   : >> { %v1783_v0 = vmax.f32 %v1545_v41, 0.0  ;;  %v7112_v48 = vpop.f32.mrb[102].mxu0 }
 0x1c5   : >> { %v1560_v7 = vadd.f32 %v7112_v48, %v8289_v24  ;;  %v1554_v17 = vpop.f32.mrb[103].mxu0 }
 0x1c6   : >> { %v1555_v18 = vadd.f32 %v8289_v24, %v1554_v17  ;;  %7307 = vmatprep.mubr.msk.f32.mxu1 %vm1822_vm2, %v1783_v0  ;;  %v4280_v17 = vld [vmem:[%s10402_s7 + $0x38] sm:$0xff] }
 0x1c7   : >> { %7308 = vmatmul.mubr.msk.f32.gmra.mrb[36].mxu1 %vm1822_vm2, %v1784_v10  ;;  %v1786_v26 = vmax.f32 %v1560_v7, 0.0  ;;  %v4278_v7 = vld [vmem:[%s10402_s7 + $0x28] sm:$0xff] }
 0x1c8   : >> { %v1785_v20 = vmax.f32 %v1555_v18, 0.0  ;;  %v7115_v25 = vpop.f32.mrb[104].mxu0  ;;  %v7620_v18 = vpack.c.bf16 %v4280_v17, %v4278_v7  ;;  %v4285_v7 = vld [vmem:[%s10402_s7 + $0x60] sm:$0xff] }
 0x1c9   : >> { %v1570_v45 = vadd.f32 %v7115_v25, %v8289_v24  ;;  %v1564_v28 = vpop.f32.mrb[105].mxu0  ;;  %v4279_v25 = vld [vmem:[%s10402_s7 + $0x30] sm:$0xff] }
 0x1ca   : >> { %v1565_v16 = vadd.f32 %v8289_v24, %v1564_v28  ;;  %7310 = vmatprep.mubr.msk.f32.mxu1 %vm1822_vm2, %v1785_v20  ;;  %v4277_v20 = vld [vmem:[%s10402_s7 + $0x20] sm:$0xff]  ;;  %7621 = vmatprep.subr.bf16.mxu1 %v7620_v18  ;;  %v4287_v18 = vld [vmem:[%s10402_s7 + $0x70] sm:$0xff] }
 0x1cb   : >> { %7311 = vmatmul.mubr.msk.f32.gmra.mrb[38].mxu1 %vm1822_vm2, %v1786_v26  ;;  %v1788_v14 = vmax.f32 %v1570_v45, 0.0  ;;  %v7622_v28 = vpack.c.bf16 %v4279_v25, %v4277_v20 }
 0x1cc   : >> { %v1787_v6 = vmax.f32 %v1565_v16, 0.0  ;;  %v7118_v30 = vpop.f32.mrb[106].mxu0 }
 0x1cd   : >> { %v1580_v31 = vadd.f32 %v7118_v30, %v8289_v24  ;;  %v1574_v32 = vpop.f32.mrb[107].mxu0  ;;  %7623 = vmatpush1.bf16.msra.mxu1 %v7622_v28 }
 0x1ce   : >> { %v1575_v22 = vadd.f32 %v8289_v24, %v1574_v32  ;;  %7313 = vmatprep.mubr.msk.f32.mxu1 %vm1822_vm2, %v1787_v6 }
 0x1cf   : >> { %7314 = vmatmul.mubr.msk.f32.gmra.mrb[40].mxu1 %vm1822_vm2, %v1788_v14  ;;  %v1790_v29 = vmax.f32 %v1580_v31, 0.0  ;;  %v7766_v14 = vld [vmem:[%s10397_s2] ss:$0 sm:$0xff] }
 0x1d0   : >> { %v1789_v34 = vmax.f32 %v1575_v22, 0.0  ;;  %v7121_v39 = vpop.f32.mrb[108].mxu0 }
 0x1d1   : >> { %v1590_v33 = vadd.f32 %v7121_v39, %v8289_v24  ;;  %v1584_v12 = vpop.f32.mrb[109].mxu0 }
 0x1d2   : >> { %v1585_v38 = vadd.f32 %v8289_v24, %v1584_v12  ;;  %7316 = vmatprep.mubr.msk.f32.mxu1 %vm1822_vm2, %v1789_v34 }
 0x1d3   : >> { %7317 = vmatmul.mubr.msk.f32.gmra.mrb[42].mxu1 %vm1822_vm2, %v1790_v29  ;;  %v1792_v35 = vmax.f32 %v1590_v33, 0.0 }
 0x1d4   : >> { %v1791_v19 = vmax.f32 %v1585_v38, 0.0  ;;  %v7124_v43 = vpop.f32.mrb[110].mxu0 }
 0x1d5   : >> { %v1600_v40 = vadd.f32 %v7124_v43, %v8289_v24  ;;  %v1594_v47 = vpop.f32.mrb[111].mxu0 }
 0x1d6   : >> { %v1595_v49 = vadd.f32 %v8289_v24, %v1594_v47  ;;  %7319 = vmatprep.mubr.msk.f32.mxu1 %vm1822_vm2, %v1791_v19 }
 0x1d7   : >> { %7320 = vmatmul.mubr.msk.f32.gmra.mrb[44].mxu1 %vm1822_vm2, %v1792_v35  ;;  %v1794_v21 = vmax.f32 %v1600_v40, 0.0  ;;  %v8752_v40 = vld [vmem:[%s10399_s4] ss:$0 sm:$0xff] }
 0x1d8   : >> { %v1793_v44 = vmax.f32 %v1595_v49, 0.0  ;;  %v7127_v46 = vpop.f32.mrb[112].mxu0 }
 0x1d9   : >> { %v1610_v51 = vadd.f32 %v7127_v46, %v8289_v24  ;;  %v1604_v27 = vpop.f32.mrb[113].mxu0 }
 0x1da   : >> { %v1605_v54 = vadd.f32 %v8289_v24, %v1604_v27  ;;  %7322 = vmatprep.mubr.msk.f32.mxu1 %vm1822_vm2, %v1793_v44  ;;  %v4282_v27 = vld [vmem:[%s10402_s7 + $0x48] sm:$0xff] }
 0x1db   : >> { %7323 = vmatmul.mubr.msk.f32.gmra.mrb[46].mxu1 %vm1822_vm2, %v1794_v21  ;;  %v1796_v37 = vmax.f32 %v1610_v51, 0.0 }
 0x1dc   : >> { %v1795_v52 = vmax.f32 %v1605_v54, 0.0  ;;  %v7130_v23 = vpop.f32.mrb[114].mxu0  ;;  %v4284_v54 = vld [vmem:[%s10402_s7 + $0x58] sm:$0xff] }
 0x1dd   : >> { %v1620_v59 = vadd.f32 %v7130_v23, %v8289_v24  ;;  %v1614_v56 = vpop.f32.mrb[115].mxu0  ;;  %v7624_v55 = vpack.c.bf16 %v4284_v54, %v4282_v27  ;;  %v4291_v54 = vld [vmem:[%s10402_s7 + $0x90] sm:$0xff] }
 0x1de   : >> { %v1615_v63 = vadd.f32 %v8289_v24, %v1614_v56  ;;  %7325 = vmatprep.mubr.msk.f32.mxu1 %vm1822_vm2, %v1795_v52  ;;  %v7626_v52 = vpack.c.bf16 %v4283_v50, %v4281_v53 }
 0x1df   : >> { %7326 = vmatmul.mubr.msk.f32.gmra.mrb[48].mxu1 %vm1822_vm2, %v1796_v37  ;;  %v1798_v62 = vmax.f32 %v1620_v59, 0.0  ;;  %7625 = vmatprep.subr.bf16.mxu1 %v7624_v55 }
 0x1e0   : >> { %v1797_v2 = vmax.f32 %v1615_v63, 0.0  ;;  %v7133_v3 = vpop.f32.mrb[116].mxu0  ;;  %7627 = vmatpush1.bf16.msra.mxu1 %v7626_v52 }
 0x1e1   : >> { %v1630_v58 = vadd.f32 %v7133_v3, %v8289_v24  ;;  %v1624_v36 = vpop.f32.mrb[117].mxu0 }
 0x1e2   : >> { %v1625_v1 = vadd.f32 %v8289_v24, %v1624_v36  ;;  %7328 = vmatprep.mubr.msk.f32.mxu1 %vm1822_vm2, %v1797_v2 }
 0x1e3   : >> { %7329 = vmatmul.mubr.msk.f32.gmra.mrb[50].mxu1 %vm1822_vm2, %v1798_v62  ;;  %v1800_v8 = vmax.f32 %v1630_v58, 0.0 }
 0x1e4   : >> { %v1799_v42 = vmax.f32 %v1625_v1, 0.0  ;;  %v7136_v5 = vpop.f32.mrb[118].mxu0 }
 0x1e5   : >> { %v1640_v9 = vadd.f32 %v7136_v5, %v8289_v24  ;;  %v1634_v4 = vpop.f32.mrb[119].mxu0 }
 0x1e6   : >> { %v1635_v11 = vadd.f32 %v8289_v24, %v1634_v4  ;;  %7331 = vmatprep.mubr.msk.f32.mxu1 %vm1822_vm2, %v1799_v42 }
 0x1e7   : >> { %7332 = vmatmul.mubr.msk.f32.gmra.mrb[52].mxu1 %vm1822_vm2, %v1800_v8  ;;  %v1802_v41 = vmax.f32 %v1640_v9, 0.0 }
 0x1e8   : >> { %v1801_v13 = vmax.f32 %v1635_v11, 0.0  ;;  %v7139_v15 = vpop.f32.mrb[120].mxu0 }
 0x1e9   : >> { %v1650_v0 = vadd.f32 %v7139_v15, %v8289_v24  ;;  %v1644_v48 = vpop.f32.mrb[121].mxu0 }
 0x1ea   : >> { %v1645_v10 = vadd.f32 %v8289_v24, %v1644_v48  ;;  %7334 = vmatprep.mubr.msk.f32.mxu1 %vm1822_vm2, %v1801_v13  ;;  %v4286_v48 = vld [vmem:[%s10402_s7 + $0x68] sm:$0xff] }
 0x1eb   : >> { %7335 = vmatmul.mubr.msk.f32.gmra.mrb[54].mxu1 %vm1822_vm2, %v1802_v41  ;;  %v1804_v16 = vmax.f32 %v1650_v0, 0.0 }
 0x1ec   : >> { %v1803_v26 = vmax.f32 %v1645_v10, 0.0  ;;  %v7142_v45 = vpop.f32.mrb[122].mxu0  ;;  %v4288_v10 = vld [vmem:[%s10402_s7 + $0x78] sm:$0xff] }
 0x1ed   : >> { %v1660_v6 = vadd.f32 %v7142_v45, %v8289_v24  ;;  %v1654_v30 = vpop.f32.mrb[123].mxu0  ;;  %v7628_v17 = vpack.c.bf16 %v4288_v10, %v4286_v48  ;;  %v4295_v10 = vld [vmem:[%s10402_s7 + $0xb0] sm:$0xff] }
 0x1ee   : >> { %v1655_v31 = vadd.f32 %v7766_v14, %v1654_v30  ;;  %7337 = vmatprep.mubr.msk.f32.mxu1 %vm1822_vm2, %v1803_v26  ;;  %v7630_v26 = vpack.c.bf16 %v4287_v18, %v4285_v7 }
 0x1ef   : >> { %7338 = vmatmul.mubr.msk.f32.gmra.mrb[56].mxu1 %vm1822_vm2, %v1804_v16  ;;  %v1806_v34 = vmax.f32 %v1660_v6, 0.0  ;;  %7629 = vmatprep.subr.bf16.mxu1 %v7628_v17 }
 0x1f0   : >> { %v1805_v32 = vmax.f32 %v1655_v31, 0.0  ;;  %v7145_v22 = vpop.f32.mrb[124].mxu0  ;;  %7631 = vmatpush1.bf16.msra.mxu1 %v7630_v26 }
 0x1f1   : >> { %v1670_v39 = vadd.f32 %v7766_v14, %v7145_v22  ;;  %v1664_v29 = vpop.f32.mrb[125].mxu0 }
 0x1f2   : >> { %v1665_v33 = vadd.f32 %v7766_v14, %v1664_v29  ;;  %7340 = vmatprep.mubr.msk.f32.mxu1 %vm1822_vm2, %v1805_v32 }
 0x1f3   : >> { %7341 = vmatmul.mubr.msk.f32.gmra.mrb[58].mxu1 %vm1822_vm2, %v1806_v34  ;;  %v1808_v38 = vmax.f32 %v1670_v39, 0.0 }
 0x1f4   : >> { %v1807_v24 = vmax.f32 %v1665_v33, 0.0  ;;  %v7148_v12 = vpop.f32.mrb[126].mxu0 }
 0x1f5   : >> { %v1680_v19 = vadd.f32 %v7766_v14, %v7148_v12  ;;  %v1674_v43 = vpop.f32.mrb[127].mxu0 }
 0x1f6   : >> { %v1675_v35 = vadd.f32 %v7766_v14, %v1674_v43  ;;  %7343 = vmatprep.mubr.msk.f32.mxu1 %vm1822_vm2, %v1807_v24 }
 0x1f7   : >> { %7344 = vmatmul.mubr.msk.f32.gmra.mrb[60].mxu1 %vm1822_vm2, %v1808_v38  ;;  %v1810_v44 = vmax.f32 %v1680_v19, 0.0 }
 0x1f8   : >> { %v1809_v47 = vmax.f32 %v1675_v35, 0.0  ;;  %v7159_v49 = vpop.f32.mrb[128].mxu0 }
 0x1f9   : >> { %v2279_v46 = vadd.f32 %v7159_v49, %v8752_v40  ;;  %v2273_v21 = vpop.f32.mrb[129].mxu0 }
 0x1fa   : >> { %v2274_v51 = vadd.f32 %v8752_v40, %v2273_v21  ;;  %7346 = vmatprep.mubr.msk.f32.mxu1 %vm1822_vm2, %v1809_v47  ;;  %v4292_v21 = vld [vmem:[%s10402_s7 + $0x98] sm:$0xff] }
 0x1fb   : >> { %7347 = vmatmul.mubr.msk.f32.gmra.mrb[62].mxu1 %vm1822_vm2, %v1810_v44  ;;  %v2913_v23 = vmax.f32 %v2279_v46, 0.0  ;;  %v4290_v46 = vld [vmem:[%s10402_s7 + $0x88] sm:$0xff] }
 0x1fc   : >> { %v2912_v57 = vmax.f32 %v2274_v51, 0.0  ;;  %v7162_v60 = vpop.f32.mrb[130].mxu0  ;;  %v4289_v51 = vld [vmem:[%s10402_s7 + $0x80] sm:$0xff]  ;;  %v7632_v27 = vpack.c.bf16 %v4292_v21, %v4290_v46  ;;  %v4299_v21 = vld [vmem:[%s10402_s7 + $0xd0] sm:$0xff] }
 0x1fd   : >> { %v2289_v61 = vadd.f32 %v7162_v60, %v8752_v40  ;;  %v2283_v37 = vpop.f32.mrb[131].mxu0  ;;  %v7634_v50 = vpack.c.bf16 %v4291_v54, %v4289_v51 }
 0x1fe   : >> { %v2284_v59 = vadd.f32 %v8752_v40, %v2283_v37  ;;  %7365 = vmatprep.mubr.msk.f32.mxu0 %vm3055_vm3, %v2912_v57  ;;  %7633 = vmatprep.subr.bf16.mxu1 %v7632_v27 }
 0x1ff   : >> { %7366 = vmatmul.mubr.msk.f32.vlgmr.msra.gmra.mrb[192].mxu0 %vm3055_vm3, %v2913_v23  ;;  %v2915_v2 = vmax.f32 %v2289_v61, 0.0  ;;  %7635 = vmatpush1.bf16.msra.mxu1 %v7634_v50 }
 0x200   : >> { %v2914_v56 = vmax.f32 %v2284_v59, 0.0  ;;  %v7165_v63 = vpop.f32.mrb[132].mxu0 }
 0x201   : >> { %v2299_v3 = vadd.f32 %v7165_v63, %v8752_v40  ;;  %v2293_v62 = vpop.f32.mrb[133].mxu0 }
 0x202   : >> { %v2294_v58 = vadd.f32 %v8752_v40, %v2293_v62  ;;  %7368 = vmatprep.mubr.msk.f32.mxu0 %vm3055_vm3, %v2914_v56 }
 0x203   : >> { %7369 = vmatmul.mubr.msk.f32.gmra.mrb[194].mxu0 %vm3055_vm3, %v2915_v2  ;;  %v2917_v42 = vmax.f32 %v2299_v3, 0.0 }
 0x204   : >> { %v2916_v36 = vmax.f32 %v2294_v58, 0.0  ;;  %v7168_v1 = vpop.f32.mrb[134].mxu0 }
 0x205   : >> { %v2309_v5 = vadd.f32 %v7168_v1, %v8752_v40  ;;  %v2303_v8 = vpop.f32.mrb[135].mxu0 }
 0x206   : >> { %v2304_v9 = vadd.f32 %v8752_v40, %v2303_v8  ;;  %7371 = vmatprep.mubr.msk.f32.mxu0 %vm3055_vm3, %v2916_v36 }
 0x207   : >> { %7372 = vmatmul.mubr.msk.f32.gmra.mrb[196].mxu0 %vm3055_vm3, %v2917_v42  ;;  %v2919_v13 = vmax.f32 %v2309_v5, 0.0 }
 0x208   : >> { %v2918_v4 = vmax.f32 %v2304_v9, 0.0  ;;  %v7171_v11 = vpop.f32.mrb[136].mxu0 }
 0x209   : >> { %v2319_v15 = vadd.f32 %v7171_v11, %v8752_v40  ;;  %v2313_v41 = vpop.f32.mrb[137].mxu0 }
 0x20a   : >> { %v2314_v0 = vadd.f32 %v8752_v40, %v2313_v41  ;;  %7374 = vmatprep.mubr.msk.f32.mxu0 %vm3055_vm3, %v2918_v4  ;;  %v4296_v41 = vld [vmem:[%s10402_s7 + $0xb8] sm:$0xff] }
 0x20b   : >> { %7375 = vmatmul.mubr.msk.f32.gmra.mrb[198].mxu0 %vm3055_vm3, %v2919_v13  ;;  %v2921_v45 = vmax.f32 %v2319_v15, 0.0  ;;  %v4294_v15 = vld [vmem:[%s10402_s7 + $0xa8] sm:$0xff] }
 0x20c   : >> { %v2920_v20 = vmax.f32 %v2314_v0, 0.0  ;;  %v7174_v25 = vpop.f32.mrb[138].mxu0  ;;  %v4293_v0 = vld [vmem:[%s10402_s7 + $0xa0] sm:$0xff]  ;;  %v7636_v48 = vpack.c.bf16 %v4296_v41, %v4294_v15  ;;  %v4303_v41 = vld [vmem:[%s10402_s7 + $0xf0] sm:$0xff] }
 0x20d   : >> { %v2329_v28 = vadd.f32 %v7174_v25, %v8752_v40  ;;  %v2323_v16 = vpop.f32.mrb[139].mxu0  ;;  %v7638_v18 = vpack.c.bf16 %v4295_v10, %v4293_v0 }
 0x20e   : >> { %v2324_v6 = vadd.f32 %v8752_v40, %v2323_v16  ;;  %7377 = vmatprep.mubr.msk.f32.mxu0 %vm3055_vm3, %v2920_v20  ;;  %7637 = vmatprep.subr.bf16.mxu1 %v7636_v48 }
 0x20f   : >> { %7378 = vmatmul.mubr.msk.f32.gmra.mrb[200].mxu0 %vm3055_vm3, %v2921_v45  ;;  %v2923_v31 = vmax.f32 %v2329_v28, 0.0  ;;  %7639 = vmatpush1.bf16.msra.mxu1 %v7638_v18 }
 0x210   : >> { %v2922_v30 = vmax.f32 %v2324_v6, 0.0  ;;  %v7177_v14 = vpop.f32.mrb[140].mxu0 }
 0x211   : >> { %v2339_v32 = vadd.f32 %v7177_v14, %v8752_v40  ;;  %v2333_v22 = vpop.f32.mrb[141].mxu0 }
 0x212   : >> { %v2334_v34 = vadd.f32 %v8752_v40, %v2333_v22  ;;  %7380 = vmatprep.mubr.msk.f32.mxu0 %vm3055_vm3, %v2922_v30 }
 0x213   : >> { %7381 = vmatmul.mubr.msk.f32.gmra.mrb[202].mxu0 %vm3055_vm3, %v2923_v31  ;;  %v2925_v33 = vmax.f32 %v2339_v32, 0.0 }
 0x214   : >> { %v2924_v39 = vmax.f32 %v2334_v34, 0.0  ;;  %v7180_v29 = vpop.f32.mrb[142].mxu0 }
 0x215   : >> { %v2349_v24 = vadd.f32 %v7180_v29, %v8752_v40  ;;  %v2343_v12 = vpop.f32.mrb[143].mxu0 }
 0x216   : >> { %v2344_v38 = vadd.f32 %v8752_v40, %v2343_v12  ;;  %7383 = vmatprep.mubr.msk.f32.mxu0 %vm3055_vm3, %v2924_v39 }
 0x217   : >> { %7384 = vmatmul.mubr.msk.f32.gmra.mrb[204].mxu0 %vm3055_vm3, %v2925_v33  ;;  %v2927_v35 = vmax.f32 %v2349_v24, 0.0 }
 0x218   : >> { %v2926_v19 = vmax.f32 %v2344_v38, 0.0  ;;  %v7183_v43 = vpop.f32.mrb[144].mxu0 }
 0x219   : >> { %v2359_v47 = vadd.f32 %v7183_v43, %v8752_v40  ;;  %v2353_v49 = vpop.f32.mrb[145].mxu0 }
 0x21a   : >> { %v2354_v44 = vadd.f32 %v8752_v40, %v2353_v49  ;;  %7386 = vmatprep.mubr.msk.f32.mxu0 %vm3055_vm3, %v2926_v19  ;;  %v4300_v49 = vld [vmem:[%s10402_s7 + $0xd8] sm:$0xff] }
 0x21b   : >> { %7387 = vmatmul.mubr.msk.f32.gmra.mrb[206].mxu0 %vm3055_vm3, %v2927_v35  ;;  %v2929_v57 = vmax.f32 %v2359_v47, 0.0  ;;  %v4298_v47 = vld [vmem:[%s10402_s7 + $0xc8] sm:$0xff] }
 0x21c   : >> { %v2928_v53 = vmax.f32 %v2354_v44, 0.0  ;;  %v7186_v55 = vpop.f32.mrb[146].mxu0  ;;  %v4297_v44 = vld [vmem:[%s10402_s7 + $0xc0] sm:$0xff]  ;;  %v7640_v46 = vpack.c.bf16 %v4300_v49, %v4298_v47 }
 0x21d   : >> { %v2369_v60 = vadd.f32 %v7186_v55, %v8752_v40  ;;  %v2363_v52 = vpop.f32.mrb[147].mxu0  ;;  %v7642_v54 = vpack.c.bf16 %v4299_v21, %v4297_v44 }
 0x21e   : >> { %v2364_v23 = vadd.f32 %v8752_v40, %v2363_v52  ;;  %7389 = vmatprep.mubr.msk.f32.mxu0 %vm3055_vm3, %v2928_v53  ;;  %7641 = vmatprep.subr.bf16.mxu1 %v7640_v46 }
 0x21f   : >> { %7390 = vmatmul.mubr.msk.f32.gmra.mrb[208].mxu0 %vm3055_vm3, %v2929_v57  ;;  %v2931_v59 = vmax.f32 %v2369_v60, 0.0  ;;  %7643 = vmatpush1.bf16.msra.mxu1 %v7642_v54 }
 0x220   : >> { %v2930_v61 = vmax.f32 %v2364_v23, 0.0  ;;  %v7189_v37 = vpop.f32.mrb[148].mxu0 }
 0x221   : >> { %v2379_v56 = vadd.f32 %v7189_v37, %v8752_v40  ;;  %v2373_v63 = vpop.f32.mrb[149].mxu0 }
 0x222   : >> { %v2374_v2 = vadd.f32 %v8752_v40, %v2373_v63  ;;  %7392 = vmatprep.mubr.msk.f32.mxu0 %vm3055_vm3, %v2930_v61 }
 0x223   : >> { %7393 = vmatmul.mubr.msk.f32.gmra.mrb[210].mxu0 %vm3055_vm3, %v2931_v59  ;;  %v2933_v58 = vmax.f32 %v2379_v56, 0.0 }
 0x224   : >> { %v2932_v3 = vmax.f32 %v2374_v2, 0.0  ;;  %v7192_v62 = vpop.f32.mrb[150].mxu0 }
 0x225   : >> { %v2389_v36 = vadd.f32 %v7192_v62, %v8752_v40  ;;  %v2383_v1 = vpop.f32.mrb[151].mxu0 }
 0x226   : >> { %v2384_v42 = vadd.f32 %v8752_v40, %v2383_v1  ;;  %7395 = vmatprep.mubr.msk.f32.mxu0 %vm3055_vm3, %v2932_v3 }
 0x227   : >> { %7396 = vmatmul.mubr.msk.f32.gmra.mrb[212].mxu0 %vm3055_vm3, %v2933_v58  ;;  %v2935_v9 = vmax.f32 %v2389_v36, 0.0 }
 0x228   : >> { %v2934_v5 = vmax.f32 %v2384_v42, 0.0  ;;  %v7195_v8 = vpop.f32.mrb[152].mxu0 }
 0x229   : >> { %v2399_v4 = vadd.f32 %v7195_v8, %v8752_v40  ;;  %v2393_v11 = vpop.f32.mrb[153].mxu0 }
 0x22a   : >> { %v2394_v13 = vadd.f32 %v8752_v40, %v2393_v11  ;;  %7398 = vmatprep.mubr.msk.f32.mxu0 %vm3055_vm3, %v2934_v5  ;;  %v4304_v11 = vld [vmem:[%s10402_s7 + $0xf8] sm:$0xff] }
 0x22b   : >> { %7399 = vmatmul.mubr.msk.f32.gmra.mrb[214].mxu0 %vm3055_vm3, %v2935_v9  ;;  %v2937_v20 = vmax.f32 %v2399_v4, 0.0  ;;  %v4302_v4 = vld [vmem:[%s10402_s7 + $0xe8] sm:$0xff] }
 0x22c   : >> { %v2936_v7 = vmax.f32 %v2394_v13, 0.0  ;;  %v7198_v17 = vpop.f32.mrb[154].mxu0  ;;  %v4301_v13 = vld [vmem:[%s10402_s7 + $0xe0] sm:$0xff]  ;;  %v7644_v15 = vpack.c.bf16 %v4304_v11, %v4302_v4 }
 0x22d   : >> { %v2409_v25 = vadd.f32 %v7198_v17, %v8752_v40  ;;  %v2403_v26 = vpop.f32.mrb[155].mxu0  ;;  %v7646_v10 = vpack.c.bf16 %v4303_v41, %v4301_v13 }
 0x22e   : >> { %v2404_v45 = vadd.f32 %v8752_v40, %v2403_v26  ;;  %7401 = vmatprep.mubr.msk.f32.mxu0 %vm3055_vm3, %v2936_v7  ;;  %7645 = vmatprep.subr.bf16.mxu1 %v7644_v15 }
 0x22f   : >> { %7402 = vmatmul.mubr.msk.f32.gmra.mrb[216].mxu0 %vm3055_vm3, %v2937_v20  ;;  %v2939_v6 = vmax.f32 %v2409_v25, 0.0  ;;  %7647 = vmatpush1.bf16.msra.mxu1 %v7646_v10 }
 0x230   : >> { %v2938_v28 = vmax.f32 %v2404_v45, 0.0  ;;  %v7201_v16 = vpop.f32.mrb[156].mxu0 }
 0x231   : >> { %v2419_v30 = vadd.f32 %v7201_v16, %v8752_v40  ;;  %v2413_v14 = vpop.f32.mrb[157].mxu0 }
 0x232   : >> { %v2414_v31 = vadd.f32 %v8752_v40, %v2413_v14  ;;  %7404 = vmatprep.mubr.msk.f32.mxu0 %vm3055_vm3, %v2938_v28 }
 0x233   : >> { %7405 = vmatmul.mubr.msk.f32.gmra.mrb[218].mxu0 %vm3055_vm3, %v2939_v6  ;;  %v2941_v34 = vmax.f32 %v2419_v30, 0.0 }
 0x234   : >> { %v2940_v32 = vmax.f32 %v2414_v31, 0.0  ;;  %v7204_v22 = vpop.f32.mrb[158].mxu0 }
 0x235   : >> { %v2429_v39 = vadd.f32 %v7204_v22, %v8752_v40  ;;  %v2423_v29 = vpop.f32.mrb[159].mxu0 }
 0x236   : >> { %v2424_v33 = vadd.f32 %v8752_v40, %v2423_v29  ;;  %7407 = vmatprep.mubr.msk.f32.mxu0 %vm3055_vm3, %v2940_v32 }
 0x237   : >> { %7408 = vmatmul.mubr.msk.f32.gmra.mrb[220].mxu0 %vm3055_vm3, %v2941_v34  ;;  %v2943_v38 = vmax.f32 %v2429_v39, 0.0 }
 0x238   : >> { %v2942_v24 = vmax.f32 %v2424_v33, 0.0  ;;  %v7207_v12 = vpop.f32.mrb[160].mxu0 }
 0x239   : >> { %v2439_v19 = vadd.f32 %v7207_v12, %v8752_v40  ;;  %v2433_v43 = vpop.f32.mrb[161].mxu0  ;;  %v7842_v12 = vmov 0.0  }
 0x23a   : >> { %v2434_v35 = vadd.f32 %v8752_v40, %v2433_v43  ;;  %7410 = vmatprep.mubr.msk.f32.mxu0 %vm3055_vm3, %v2942_v24  ;;  %4381 = vmatprep.mubr.f32.mxu1 %v7842_v12 }
 0x23b   : >> { %7411 = vmatmul.mubr.msk.f32.gmra.mrb[222].mxu0 %vm3055_vm3, %v2943_v38  ;;  %v2945_v53 = vmax.f32 %v2439_v19, 0.0 }
 0x23c   : >> { %v2944_v51 = vmax.f32 %v2434_v35, 0.0  ;;  %v7210_v27 = vpop.f32.mrb[162].mxu0 }
 0x23d   : >> { %v2449_v55 = vadd.f32 %v7210_v27, %v8752_v40  ;;  %v2443_v50 = vpop.f32.mrb[163].mxu0 }
 0x23e   : >> { %v2444_v57 = vadd.f32 %v8752_v40, %v2443_v50  ;;  %7413 = vmatprep.mubr.msk.f32.mxu0 %vm3055_vm3, %v2944_v51 }
 0x23f   : >> { %7414 = vmatmul.mubr.msk.f32.gmra.mrb[224].mxu0 %vm3055_vm3, %v2945_v53  ;;  %v2947_v23 = vmax.f32 %v2449_v55, 0.0 }
 0x240   : >> { %v2946_v60 = vmax.f32 %v2444_v57, 0.0  ;;  %v7213_v52 = vpop.f32.mrb[164].mxu0 }
 0x241   : >> { %v2459_v61 = vadd.f32 %v7213_v52, %v8752_v40  ;;  %v2453_v37 = vpop.f32.mrb[165].mxu0 }
 0x242   : >> { %v2454_v59 = vadd.f32 %v8752_v40, %v2453_v37  ;;  %7416 = vmatprep.mubr.msk.f32.mxu0 %vm3055_vm3, %v2946_v60 }
 0x243   : >> { %7417 = vmatmul.mubr.msk.f32.gmra.mrb[226].mxu0 %vm3055_vm3, %v2947_v23  ;;  %v2949_v2 = vmax.f32 %v2459_v61, 0.0 }
 0x244   : >> { %v2948_v56 = vmax.f32 %v2454_v59, 0.0  ;;  %v7216_v63 = vpop.f32.mrb[166].mxu0 }
 0x245   : >> { %v2469_v3 = vadd.f32 %v7216_v63, %v8752_v40  ;;  %v2463_v62 = vpop.f32.mrb[167].mxu0 }
 0x246   : >> { %v2464_v58 = vadd.f32 %v8752_v40, %v2463_v62  ;;  %7419 = vmatprep.mubr.msk.f32.mxu0 %vm3055_vm3, %v2948_v56 }
 0x247   : >> { %7420 = vmatmul.mubr.msk.f32.gmra.mrb[228].mxu0 %vm3055_vm3, %v2949_v2  ;;  %v2951_v42 = vmax.f32 %v2469_v3, 0.0 }
 0x248   : >> { %v2950_v36 = vmax.f32 %v2464_v58, 0.0  ;;  %v7219_v1 = vpop.f32.mrb[168].mxu0 }
 0x249   : >> { %v2479_v5 = vadd.f32 %v7219_v1, %v8752_v40  ;;  %v2473_v8 = vpop.f32.mrb[169].mxu0 }
 0x24a   : >> { %v2474_v9 = vadd.f32 %v8752_v40, %v2473_v8  ;;  %7422 = vmatprep.mubr.msk.f32.mxu0 %vm3055_vm3, %v2950_v36 }
 0x24b   : >> { %7423 = vmatmul.mubr.msk.f32.gmra.mrb[230].mxu0 %vm3055_vm3, %v2951_v42  ;;  %v2953_v7 = vmax.f32 %v2479_v5, 0.0 }
 0x24c   : >> { %v2952_v0 = vmax.f32 %v2474_v9, 0.0  ;;  %v7222_v48 = vpop.f32.mrb[170].mxu0 }
 0x24d   : >> { %v2489_v17 = vadd.f32 %v7222_v48, %v8752_v40  ;;  %v2483_v18 = vpop.f32.mrb[171].mxu0 }
 0x24e   : >> { %v2484_v20 = vadd.f32 %v8752_v40, %v2483_v18  ;;  %7425 = vmatprep.mubr.msk.f32.mxu0 %vm3055_vm3, %v2952_v0 }
 0x24f   : >> { %7426 = vmatmul.mubr.msk.f32.gmra.mrb[232].mxu0 %vm3055_vm3, %v2953_v7  ;;  %v2955_v45 = vmax.f32 %v2489_v17, 0.0 }
 0x250   : >> { %v2954_v25 = vmax.f32 %v2484_v20, 0.0  ;;  %v7225_v26 = vpop.f32.mrb[172].mxu0 }
 0x251   : >> { %v2499_v28 = vadd.f32 %v7225_v26, %v8752_v40  ;;  %v2493_v16 = vpop.f32.mrb[173].mxu0 }
 0x252   : >> { %v2494_v6 = vadd.f32 %v8752_v40, %v2493_v16  ;;  %v8917_v30 = vpop.f32.mrb[0].mxu1  ;;  %7428 = vmatprep.mubr.msk.f32.mxu0 %vm3055_vm3, %v2954_v25 }
 0x253   : >> { %v8920_v14 = vpop.f32.mrb[1].mxu1  ;;  %7429 = vmatmul.mubr.msk.f32.gmra.mrb[234].mxu0 %vm3055_vm3, %v2955_v45  ;;  %v2957_v22 = vmax.f32 %v2499_v28, 0.0 }
 0x254   : >> { %v2956_v31 = vmax.f32 %v2494_v6, 0.0  ;;  %v7228_v32 = vpop.f32.mrb[174].mxu0 }
 0x255   : >> { %v2509_v34 = vadd.f32 %v7228_v32, %v8752_v40  ;;  %v2503_v39 = vpop.f32.mrb[175].mxu0 }
 0x256   : >> { %v2504_v29 = vadd.f32 %v8752_v40, %v2503_v39  ;;  %v8925_v33 = vpop.f32.mrb[2].mxu1  ;;  %7431 = vmatprep.mubr.msk.f32.mxu0 %vm3055_vm3, %v2956_v31 }
 0x257   : >> { %v8928_v24 = vpop.f32.mrb[3].mxu1  ;;  %7432 = vmatmul.mubr.msk.f32.gmra.mrb[236].mxu0 %vm3055_vm3, %v2957_v22  ;;  %v2959_v43 = vmax.f32 %v2509_v34, 0.0 }
 0x258   : >> { %v2958_v38 = vmax.f32 %v2504_v29, 0.0  ;;  %v7231_v19 = vpop.f32.mrb[176].mxu0 }
 0x259   : >> { %v2519_v35 = vadd.f32 %v7231_v19, %v8752_v40  ;;  %v2513_v47 = vpop.f32.mrb[177].mxu0 }
 0x25a   : >> { %v2514_v49 = vadd.f32 %v8752_v40, %v2513_v47  ;;  %v8934_v44 = vpop.f32.mrb[4].mxu1  ;;  %7434 = vmatprep.mubr.msk.f32.mxu0 %vm3055_vm3, %v2958_v38 }
 0x25b   : >> { %v8937_v46 = vpop.f32.mrb[5].mxu1  ;;  %7435 = vmatmul.mubr.msk.f32.gmra.mrb[238].mxu0 %vm3055_vm3, %v2959_v43  ;;  %v2961_v27 = vmax.f32 %v2519_v35, 0.0  ;;  %v2594_v35 = vadd.f32 %v8752_v40, %v8920_v14 }
 0x25c   : >> { %v2960_v21 = vmax.f32 %v2514_v49, 0.0  ;;  %v7234_v51 = vpop.f32.mrb[178].mxu0 }
 0x25d   : >> { %v2529_v54 = vadd.f32 %v7234_v51, %v8752_v40  ;;  %v2523_v53 = vpop.f32.mrb[179].mxu0 }
 0x25e   : >> { %v2524_v55 = vadd.f32 %v8752_v40, %v2523_v53  ;;  %v8942_v50 = vpop.f32.mrb[6].mxu1  ;;  %7437 = vmatprep.mubr.msk.f32.mxu0 %vm3055_vm3, %v2960_v21  ;;  %v2976_v53 = vmax.f32 %v2594_v35, 0.0 }
 0x25f   : >> { %v8945_v57 = vpop.f32.mrb[7].mxu1  ;;  %7438 = vmatmul.mubr.msk.f32.gmra.mrb[240].mxu0 %vm3055_vm3, %v2961_v27  ;;  %v2963_v23 = vmax.f32 %v2529_v54, 0.0  ;;  %v2599_v27 = vadd.f32 %v8917_v30, %v8752_v40 }
 0x260   : >> { %v2962_v60 = vmax.f32 %v2524_v55, 0.0  ;;  %v7237_v52 = vpop.f32.mrb[180].mxu0  ;;  %v2604_v55 = vadd.f32 %v8752_v40, %v8928_v24 }
 0x261   : >> { %v2539_v61 = vadd.f32 %v7237_v52, %v8752_v40  ;;  %v2533_v37 = vpop.f32.mrb[181].mxu0  ;;  %v2977_v52 = vmax.f32 %v2599_v27, 0.0 }
 0x262   : >> { %v2534_v59 = vadd.f32 %v8752_v40, %v2533_v37  ;;  %v8950_v56 = vpop.f32.mrb[8].mxu1  ;;  %7440 = vmatprep.mubr.msk.f32.mxu0 %vm3055_vm3, %v2962_v60  ;;  %v2978_v30 = vmax.f32 %v2604_v55, 0.0 }
 0x263   : >> { %v8953_v63 = vpop.f32.mrb[9].mxu1  ;;  %7441 = vmatmul.mubr.msk.f32.gmra.mrb[242].mxu0 %vm3055_vm3, %v2963_v23  ;;  %v2965_v62 = vmax.f32 %v2539_v61, 0.0  ;;  %v2609_v23 = vadd.f32 %v8925_v33, %v8752_v40  ;;  %v2614_v61 = vadd.f32 %v8752_v40, %v8937_v46  ;;  %v2624_v33 = vadd.f32 %v8752_v40, %v8945_v57 }
 0x264   : >> { %v2964_v2 = vmax.f32 %v2534_v59, 0.0  ;;  %v7240_v3 = vpop.f32.mrb[182].mxu0 }
 0x265   : >> { %v2549_v58 = vadd.f32 %v7240_v3, %v8752_v40  ;;  %v2543_v36 = vpop.f32.mrb[183].mxu0  ;;  %v2979_v59 = vmax.f32 %v2609_v23, 0.0  ;;  %v2980_v3 = vmax.f32 %v2614_v61, 0.0 }
 0x266   : >> { %v2544_v1 = vadd.f32 %v8752_v40, %v2543_v36  ;;  %v8958_v42 = vpop.f32.mrb[10].mxu1  ;;  %7443 = vmatprep.mubr.msk.f32.mxu0 %vm3055_vm3, %v2964_v2  ;;  %v2619_v2 = vadd.f32 %v8934_v44, %v8752_v40  ;;  %v2629_v36 = vadd.f32 %v8942_v50, %v8752_v40  ;;  %v2634_v44 = vadd.f32 %v8752_v40, %v8953_v63 }
 0x267   : >> { %v8961_v5 = vpop.f32.mrb[11].mxu1  ;;  %7444 = vmatmul.mubr.msk.f32.gmra.mrb[244].mxu0 %vm3055_vm3, %v2965_v62  ;;  %v2967_v4 = vmax.f32 %v2549_v58, 0.0 }
 0x268   : >> { %v2966_v8 = vmax.f32 %v2544_v1, 0.0  ;;  %v7243_v9 = vpop.f32.mrb[184].mxu0  ;;  %v2981_v46 = vmax.f32 %v2619_v2, 0.0  ;;  %v2982_v1 = vmax.f32 %v2624_v33, 0.0  ;;  %v2983_v57 = vmax.f32 %v2629_v36, 0.0 }
 0x269   : >> { %v2559_v11 = vadd.f32 %v7243_v9, %v8752_v40  ;;  %v2553_v13 = vpop.f32.mrb[185].mxu0  ;;  %v2644_v50 = vadd.f32 %v8752_v40, %v8961_v5 }
 0x26a   : >> { %v2554_v15 = vadd.f32 %v8752_v40, %v2553_v13  ;;  %v8966_v41 = vpop.f32.mrb[12].mxu1  ;;  %7446 = vmatprep.mubr.msk.f32.mxu0 %vm3055_vm3, %v2966_v8 }
 0x26b   : >> { %v8969_v0 = vpop.f32.mrb[13].mxu1  ;;  %7447 = vmatmul.mubr.msk.f32.gmra.mrb[246].mxu0 %vm3055_vm3, %v2967_v4  ;;  %v2969_v7 = vmax.f32 %v2559_v11, 0.0  ;;  %v2639_v4 = vadd.f32 %v8950_v56, %v8752_v40  ;;  %v2984_v11 = vmax.f32 %v2634_v44, 0.0 }
 0x26c   : >> { %v2968_v48 = vmax.f32 %v2554_v15, 0.0  ;;  %v7246_v10 = vpop.f32.mrb[186].mxu0  ;;  %v2654_v56 = vadd.f32 %v8752_v40, %v8969_v0 }
 0x26d   : >> { %v2569_v17 = vadd.f32 %v7246_v10, %v8752_v40  ;;  %v2563_v18 = vpop.f32.mrb[187].mxu0  ;;  %v2985_v63 = vmax.f32 %v2639_v4, 0.0  ;;  %v2986_v10 = vmax.f32 %v2644_v50, 0.0 }
 0x26e   : >> { %v2564_v20 = vadd.f32 %v8752_v40, %v2563_v18  ;;  %v8974_v25 = vpop.f32.mrb[14].mxu1  ;;  %7449 = vmatprep.mubr.msk.f32.mxu0 %vm3055_vm3, %v2968_v48  ;;  %v2649_v48 = vadd.f32 %v8958_v42, %v8752_v40  ;;  %v2659_v18 = vadd.f32 %v8966_v41, %v8752_v40 }
 0x26f   : >> { %v8977_v26 = vpop.f32.mrb[15].mxu1  ;;  %7450 = vmatmul.mubr.msk.f32.gmra.mrb[248].mxu0 %vm3055_vm3, %v2969_v7  ;;  %v2971_v16 = vmax.f32 %v2569_v17, 0.0 }
 0x270   : >> { %v2970_v45 = vmax.f32 %v2564_v20, 0.0  ;;  %v7249_v28 = vpop.f32.mrb[188].mxu0  ;;  %v2987_v5 = vmax.f32 %v2649_v48, 0.0  ;;  %v2988_v20 = vmax.f32 %v2654_v56, 0.0  ;;  %v2664_v42 = vadd.f32 %v8752_v40, %v8977_v26 }
 0x271   : >> { %v2579_v6 = vadd.f32 %v7249_v28, %v8752_v40  ;;  %v2573_v31 = vpop.f32.mrb[189].mxu0  ;;  %v2989_v0 = vmax.f32 %v2659_v18, 0.0 }
 0x272   : >> { %v2574_v32 = vadd.f32 %v8752_v40, %v2573_v31  ;;  %v8982_v22 = vpop.f32.mrb[16].mxu1  ;;  %7452 = vmatprep.mubr.msk.f32.mxu0 %vm3055_vm3, %v2970_v45 }
 0x273   : >> { %v8985_v34 = vpop.f32.mrb[17].mxu1  ;;  %7453 = vmatmul.mubr.msk.f32.gmra.mrb[250].mxu0 %vm3055_vm3, %v2971_v16  ;;  %v2973_v38 = vmax.f32 %v2579_v6, 0.0  ;;  %v2669_v16 = vadd.f32 %v8974_v25, %v8752_v40  ;;  %v2990_v6 = vmax.f32 %v2664_v42, 0.0 }
 0x274   : >> { %v2972_v39 = vmax.f32 %v2574_v32, 0.0  ;;  %v7252_v29 = vpop.f32.mrb[190].mxu0  ;;  %v2674_v41 = vadd.f32 %v8752_v40, %v8985_v34 }
 0x275   : >> { %v2589_v19 = vadd.f32 %v7252_v29, %v8752_v40  ;;  %v2583_v43 = vpop.f32.mrb[191].mxu0  ;;  %v2991_v26 = vmax.f32 %v2669_v16, 0.0 }
 0x276   : >> { %v2584_v47 = vadd.f32 %v8752_v40, %v2583_v43  ;;  %v8992_v49 = vpop.f32.mrb[18].mxu1  ;;  %7455 = vmatprep.mubr.msk.f32.mxu0 %vm3055_vm3, %v2972_v39  ;;  %v2679_v39 = vadd.f32 %v8982_v22, %v8752_v40  ;;  %v2992_v29 = vmax.f32 %v2674_v41, 0.0 }
 0x277   : >> { %v8995_v21 = vpop.f32.mrb[19].mxu1  ;;  %7456 = vmatmul.mubr.msk.f32.gmra.mrb[252].mxu0 %vm3055_vm3, %v2973_v38  ;;  %v2975_v54 = vmax.f32 %v2589_v19, 0.0  ;;  %v2689_v43 = vadd.f32 %v8992_v49, %v8752_v40 }
 0x278   : >> { %v2974_v51 = vmax.f32 %v2584_v47, 0.0  ;;  %v2684_v25 = vadd.f32 %v8752_v40, %v8995_v21  ;;  %v2993_v34 = vmax.f32 %v2679_v39, 0.0 }
 0x279   : >> { %v2995_v21 = vmax.f32 %v2689_v43, 0.0 }
 0x27a   : >> { %v9002_v14 = vpop.f32.mrb[20].mxu1  ;;  %7458 = vmatprep.mubr.msk.f32.mxu0 %vm3055_vm3, %v2974_v51  ;;  %v2994_v35 = vmax.f32 %v2684_v25, 0.0 }
 0x27b   : >> { %v9005_v60 = vpop.f32.mrb[21].mxu1  ;;  %7459 = vmatmul.mubr.msk.f32.gmra.mrb[254].mxu0 %vm3055_vm3, %v2975_v54  ;;  %v2699_v27 = vadd.f32 %v9002_v14, %v8752_v40 }
 0x27c   : >> { %7461 = vmatprep.mubr.msk.f32.mxu0 %vm3055_vm3, %v2976_v53  ;;  %v2694_v22 = vadd.f32 %v8752_v40, %v9005_v60 }
 0x27d   : >> { %v2997_v60 = vmax.f32 %v2699_v27, 0.0 }
 0x27e   : >> { %v9013_v37 = vpop.f32.mrb[22].mxu1  ;;  %v2996_v54 = vmax.f32 %v2694_v22, 0.0 }
 0x27f   : >> { %v9015_v24 = vpop.f32.mrb[23].mxu1  ;;  %7462 = vmatmul.mubr.msk.f32.gmra.mrb[0].mxu0 %vm3055_vm3, %v2977_v52  ;;  %v2709_v52 = vadd.f32 %v9013_v37, %v8752_v40 }
 0x280   : >> { %7464 = vmatprep.mubr.msk.f32.mxu0 %vm3055_vm3, %v2978_v30  ;;  %v2704_v49 = vadd.f32 %v8752_v40, %v9015_v24 }
 0x281   : >> { %v2999_v24 = vmax.f32 %v2709_v52, 0.0 }
 0x282   : >> { %v9023_v62 = vpop.f32.mrb[24].mxu1  ;;  %v2998_v23 = vmax.f32 %v2704_v49, 0.0 }
 0x283   : >> { %v9025_v58 = vpop.f32.mrb[25].mxu1  ;;  %7465 = vmatmul.mubr.msk.f32.gmra.mrb[2].mxu0 %vm3055_vm3, %v2979_v59  ;;  %v2719_v59 = vadd.f32 %v9023_v62, %v8752_v40 }
 0x284   : >> { %7467 = vmatprep.mubr.msk.f32.mxu0 %vm3055_vm3, %v2980_v3  ;;  %v2714_v14 = vadd.f32 %v8752_v40, %v9025_v58 }
 0x285   : >> { %v3001_v58 = vmax.f32 %v2719_v59, 0.0 }
 0x286   : >> { %v9033_v8 = vpop.f32.mrb[26].mxu1  ;;  %v3000_v2 = vmax.f32 %v2714_v14, 0.0 }
 0x287   : >> { %v9035_v9 = vpop.f32.mrb[27].mxu1  ;;  %7468 = vmatmul.mubr.msk.f32.gmra.mrb[4].mxu0 %vm3055_vm3, %v2981_v46  ;;  %v2729_v46 = vadd.f32 %v9033_v8, %v8752_v40 }
 0x288   : >> { %7470 = vmatprep.mubr.msk.f32.mxu0 %vm3055_vm3, %v2982_v1  ;;  %v2724_v37 = vadd.f32 %v8752_v40, %v9035_v9 }
 0x289   : >> { %v3003_v9 = vmax.f32 %v2729_v46, 0.0 }
 0x28a   : >> { %v9043_v13 = vpop.f32.mrb[28].mxu1  ;;  %v3002_v36 = vmax.f32 %v2724_v37, 0.0 }
 0x28b   : >> { %v9045_v15 = vpop.f32.mrb[29].mxu1  ;;  %7471 = vmatmul.mubr.msk.f32.gmra.mrb[6].mxu0 %vm3055_vm3, %v2983_v57  ;;  %v2739_v57 = vadd.f32 %v9043_v13, %v8752_v40 }
 0x28c   : >> { %7473 = vmatprep.mubr.msk.f32.mxu0 %vm3055_vm3, %v2984_v11  ;;  %v2734_v62 = vadd.f32 %v8752_v40, %v9045_v15 }
 0x28d   : >> { %v3005_v15 = vmax.f32 %v2739_v57, 0.0 }
 0x28e   : >> { %v9053_v7 = vpop.f32.mrb[30].mxu1  ;;  %v3004_v4 = vmax.f32 %v2734_v62, 0.0 }
 0x28f   : >> { %v9055_v17 = vpop.f32.mrb[31].mxu1  ;;  %7474 = vmatmul.mubr.msk.f32.gmra.mrb[8].mxu0 %vm3055_vm3, %v2985_v63  ;;  %v2749_v63 = vadd.f32 %v9053_v7, %v8752_v40 }
 0x290   : >> { %7476 = vmatprep.mubr.msk.f32.mxu0 %vm3055_vm3, %v2986_v10  ;;  %v2744_v8 = vadd.f32 %v8752_v40, %v9055_v17 }
 0x291   : >> { %v3007_v17 = vmax.f32 %v2749_v63, 0.0 }
 0x292   : >> { %v9063_v45 = vpop.f32.mrb[32].mxu1  ;;  %v3006_v48 = vmax.f32 %v2744_v8, 0.0 }
 0x293   : >> { %v9065_v28 = vpop.f32.mrb[33].mxu1  ;;  %7477 = vmatmul.mubr.msk.f32.gmra.mrb[10].mxu0 %vm3055_vm3, %v2987_v5  ;;  %v2759_v5 = vadd.f32 %v9063_v45, %v8752_v40 }
 0x294   : >> { %7479 = vmatprep.mubr.msk.f32.mxu0 %vm3055_vm3, %v2988_v20  ;;  %v2754_v13 = vadd.f32 %v8752_v40, %v9065_v28 }
 0x295   : >> { %v3009_v28 = vmax.f32 %v2759_v5, 0.0 }
 0x296   : >> { %v9073_v31 = vpop.f32.mrb[34].mxu1  ;;  %v3008_v18 = vmax.f32 %v2754_v13, 0.0 }
 0x297   : >> { %v9075_v32 = vpop.f32.mrb[35].mxu1  ;;  %7480 = vmatmul.mubr.msk.f32.gmra.mrb[12].mxu0 %vm3055_vm3, %v2989_v0  ;;  %v2769_v0 = vadd.f32 %v9073_v31, %v8752_v40 }
 0x298   : >> { %7482 = vmatprep.mubr.msk.f32.mxu0 %vm3055_vm3, %v2990_v6  ;;  %v2764_v7 = vadd.f32 %v8752_v40, %v9075_v32 }
 0x299   : >> { %v3011_v32 = vmax.f32 %v2769_v0, 0.0 }
 0x29a   : >> { %v9083_v38 = vpop.f32.mrb[36].mxu1  ;;  %v3010_v16 = vmax.f32 %v2764_v7, 0.0 }
 0x29b   : >> { %v9085_v19 = vpop.f32.mrb[37].mxu1  ;;  %7483 = vmatmul.mubr.msk.f32.gmra.mrb[14].mxu0 %vm3055_vm3, %v2991_v26  ;;  %v2779_v26 = vadd.f32 %v9083_v38, %v8752_v40 }
 0x29c   : >> { %7485 = vmatprep.mubr.msk.f32.mxu0 %vm3055_vm3, %v2992_v29  ;;  %v2774_v45 = vadd.f32 %v8752_v40, %v9085_v19 }
 0x29d   : >> { %v3013_v19 = vmax.f32 %v2779_v26, 0.0 }
 0x29e   : >> { %v9093_v47 = vpop.f32.mrb[38].mxu1  ;;  %v3012_v39 = vmax.f32 %v2774_v45, 0.0 }
 0x29f   : >> { %v9095_v51 = vpop.f32.mrb[39].mxu1  ;;  %7486 = vmatmul.mubr.msk.f32.gmra.mrb[16].mxu0 %vm3055_vm3, %v2993_v34  ;;  %v2789_v34 = vadd.f32 %v9093_v47, %v8752_v40 }
 0x2a0   : >> { %7488 = vmatprep.mubr.msk.f32.mxu0 %vm3055_vm3, %v2994_v35  ;;  %v2784_v31 = vadd.f32 %v8752_v40, %v9095_v51 }
 0x2a1   : >> { %v3015_v51 = vmax.f32 %v2789_v34, 0.0 }
 0x2a2   : >> { %v9103_v53 = vpop.f32.mrb[40].mxu1  ;;  %v3014_v43 = vmax.f32 %v2784_v31, 0.0 }
 0x2a3   : >> { %v9105_v55 = vpop.f32.mrb[41].mxu1  ;;  %7489 = vmatmul.mubr.msk.f32.gmra.mrb[18].mxu0 %vm3055_vm3, %v2995_v21  ;;  %v2799_v21 = vadd.f32 %v9103_v53, %v8752_v40 }
 0x2a4   : >> { %7491 = vmatprep.mubr.msk.f32.mxu0 %vm3055_vm3, %v2996_v54  ;;  %v2794_v38 = vadd.f32 %v8752_v40, %v9105_v55 }
 0x2a5   : >> { %v3017_v55 = vmax.f32 %v2799_v21, 0.0 }
 0x2a6   : >> { %v9113_v30 = vpop.f32.mrb[42].mxu1  ;;  %v3016_v27 = vmax.f32 %v2794_v38, 0.0 }
 0x2a7   : >> { %v9115_v61 = vpop.f32.mrb[43].mxu1  ;;  %7492 = vmatmul.mubr.msk.f32.gmra.mrb[20].mxu0 %vm3055_vm3, %v2997_v60  ;;  %v2809_v60 = vadd.f32 %v9113_v30, %v8752_v40  ;;  %v9224_v30 = vld [vmem:[%s10401_s6] ss:$0 sm:$0xff] }
 0x2a8   : >> { %7494 = vmatprep.mubr.msk.f32.mxu0 %vm3055_vm3, %v2998_v23  ;;  %v2804_v47 = vadd.f32 %v8752_v40, %v9115_v61 }
 0x2a9   : >> { %v3019_v61 = vmax.f32 %v2809_v60, 0.0 }
 0x2aa   : >> { %v9123_v3 = vpop.f32.mrb[44].mxu1  ;;  %v3018_v52 = vmax.f32 %v2804_v47, 0.0 }
 0x2ab   : >> { %v9125_v33 = vpop.f32.mrb[45].mxu1  ;;  %7495 = vmatmul.mubr.msk.f32.gmra.mrb[22].mxu0 %vm3055_vm3, %v2999_v24  ;;  %v2819_v24 = vadd.f32 %v9123_v3, %v8752_v40 }
 0x2ac   : >> { %7497 = vmatprep.mubr.msk.f32.mxu0 %vm3055_vm3, %v3000_v2  ;;  %v2814_v53 = vadd.f32 %v8752_v40, %v9125_v33  ;;  %v9229_v2 = vld [vmem:[%s10399_s4] ss:$0 sm:$0xff] }
 0x2ad   : >> { %v3021_v3 = vmax.f32 %v2819_v24, 0.0 }
 0x2ae   : >> { %v9133_v1 = vpop.f32.mrb[46].mxu1  ;;  %v3020_v59 = vmax.f32 %v2814_v53, 0.0 }
 0x2af   : >> { %v9135_v44 = vpop.f32.mrb[47].mxu1  ;;  %7498 = vmatmul.mubr.msk.f32.gmra.mrb[24].mxu0 %vm3055_vm3, %v3001_v58  ;;  %v2829_v46 = vadd.f32 %v9229_v2, %v9133_v1 }
 0x2b0   : >> { %7500 = vmatprep.mubr.msk.f32.mxu0 %vm3055_vm3, %v3002_v36  ;;  %v2824_v37 = vadd.f32 %v9229_v2, %v9135_v44 }
 0x2b1   : >> { %v3023_v8 = vmax.f32 %v2829_v46, 0.0 }
 0x2b2   : >> { %v9143_v11 = vpop.f32.mrb[48].mxu1  ;;  %v3022_v36 = vmax.f32 %v2824_v37, 0.0 }
 0x2b3   : >> { %v9145_v50 = vpop.f32.mrb[49].mxu1  ;;  %7501 = vmatmul.mubr.msk.f32.gmra.mrb[26].mxu0 %vm3055_vm3, %v3003_v9 }
 0x2b4   : >> { %7503 = vmatprep.mubr.msk.f32.mxu0 %vm3055_vm3, %v3004_v4  ;;  %v2834_v62 = vadd.f32 %v9229_v2, %v9145_v50 }
 0x2b6   : >> { %v9153_v10 = vpop.f32.mrb[50].mxu1  ;;  %v3024_v1 = vmax.f32 %v2834_v62, 0.0 }
 0x2b7   : >> { %v9155_v56 = vpop.f32.mrb[51].mxu1  ;;  %7504 = vmatmul.mubr.msk.f32.gmra.mrb[28].mxu0 %vm3055_vm3, %v3005_v15  ;;  %v2839_v15 = vadd.f32 %v9229_v2, %v9143_v11  ;;  %v2849_v11 = vadd.f32 %v9229_v2, %v9153_v10 }
 0x2b8   : >> { %7506 = vmatprep.mubr.msk.f32.mxu0 %vm3055_vm3, %v3006_v48  ;;  %v2844_v50 = vadd.f32 %v9229_v2, %v9155_v56 }
 0x2b9   : >> { %v3025_v5 = vmax.f32 %v2839_v15, 0.0  ;;  %v3027_v45 = vmax.f32 %v2849_v11, 0.0 }
 0x2ba   : >> { %v9163_v20 = vpop.f32.mrb[52].mxu1 }
 0x2bb   : >> { %v9165_v42 = vpop.f32.mrb[53].mxu1  ;;  %7507 = vmatmul.mubr.msk.f32.gmra.mrb[30].mxu0 %vm3055_vm3, %v3007_v17  ;;  %v2859_v10 = vadd.f32 %v9229_v2, %v9163_v20 }
 0x2bc   : >> { %7509 = vmatprep.mubr.msk.f32.mxu0 %vm3055_vm3, %v3008_v18  ;;  %v3026_v18 = vmax.f32 %v2844_v50, 0.0  ;;  %v2854_v56 = vadd.f32 %v9229_v2, %v9165_v42 }
 0x2bd   : >> { %v3029_v34 = vmax.f32 %v2859_v10, 0.0 }
 0x2be   : >> { %v9173_v6 = vpop.f32.mrb[54].mxu1 }
 0x2bf   : >> { %v9175_v41 = vpop.f32.mrb[55].mxu1  ;;  %7510 = vmatmul.mubr.msk.f32.gmra.mrb[32].mxu0 %vm3055_vm3, %v3009_v28  ;;  %v2869_v20 = vadd.f32 %v9229_v2, %v9173_v6 }
 0x2c0   : >> { %7512 = vmatprep.mubr.msk.f32.mxu0 %vm3055_vm3, %v3010_v16  ;;  %v2864_v42 = vadd.f32 %v9229_v2, %v9175_v41 }
 0x2c1   : >> { %v3031_v47 = vmax.f32 %v2869_v20, 0.0 }
 0x2c2   : >> { %v9183_v29 = vpop.f32.mrb[56].mxu1 }
 0x2c3   : >> { %v9185_v25 = vpop.f32.mrb[57].mxu1  ;;  %7513 = vmatmul.mubr.msk.f32.gmra.mrb[34].mxu0 %vm3055_vm3, %v3011_v32  ;;  %v3028_v32 = vmax.f32 %v2854_v56, 0.0  ;;  %v2879_v6 = vadd.f32 %v9229_v2, %v9183_v29 }
 0x2c4   : >> { %7515 = vmatprep.mubr.msk.f32.mxu0 %vm3055_vm3, %v3012_v39  ;;  %v2874_v41 = vadd.f32 %v9229_v2, %v9185_v25 }
 0x2c5   : >> { %v3033_v24 = vmax.f32 %v2879_v6, 0.0 }
 0x2c6   : >> { %v9193_v35 = vpop.f32.mrb[58].mxu1 }
 0x2c7   : >> { %v9195_v22 = vpop.f32.mrb[59].mxu1  ;;  %7516 = vmatmul.mubr.msk.f32.gmra.mrb[36].mxu0 %vm3055_vm3, %v3013_v19  ;;  %v2889_v29 = vadd.f32 %v9229_v2, %v9193_v35 }
 0x2c8   : >> { %7518 = vmatprep.mubr.msk.f32.mxu0 %vm3055_vm3, %v3014_v43  ;;  %v3030_v43 = vmax.f32 %v2864_v42, 0.0  ;;  %v2884_v25 = vadd.f32 %v9229_v2, %v9195_v22 }
 0x2ca   : >> { %v9203_v54 = vpop.f32.mrb[60].mxu1 }
 0x2cb   : >> { %v9205_v49 = vpop.f32.mrb[61].mxu1  ;;  %7519 = vmatmul.mubr.msk.f32.gmra.mrb[38].mxu0 %vm3055_vm3, %v3015_v51  ;;  %v2899_v35 = vadd.f32 %v9229_v2, %v9203_v54 }
 0x2cc   : >> { %7521 = vmatprep.mubr.msk.f32.mxu0 %vm3055_vm3, %v3016_v27  ;;  %v2894_v22 = vadd.f32 %v9229_v2, %v9205_v49 }
 0x2ce   : >> { %v9213_v23 = vpop.f32.mrb[62].mxu1  ;;  %v3036_v46 = vmax.f32 %v2894_v22, 0.0 }
 0x2cf   : >> { %v9215_v14 = vpop.f32.mrb[63].mxu1  ;;  %7522 = vmatmul.mubr.msk.f32.gmra.mrb[40].mxu0 %vm3055_vm3, %v3017_v55  ;;  %v3032_v55 = vmax.f32 %v2874_v41, 0.0  ;;  %v2909_v54 = vadd.f32 %v9229_v2, %v9213_v23 }
 0x2d0   : >> { %7524 = vmatprep.mubr.msk.f32.mxu0 %vm3055_vm3, %v3018_v52  ;;  %v2904_v49 = vadd.f32 %v9229_v2, %v9215_v14 }
 0x2d1   : >> { %v3039_v50 = vmax.f32 %v2909_v54, 0.0 }
 0x2d2   : >> { %v7367_v33 = vpop.f32.mrb[192].mxu0 }
 0x2d3   : >> { %v3506_v58 = vpop.f32.mrb[193].mxu0  ;;  %7525 = vmatmul.mubr.msk.f32.gmra.mrb[42].mxu0 %vm3055_vm3, %v3019_v61  ;;  %v3512_v9 = vadd.f32 %v7367_v33, %v9224_v30 }
 0x2d4   : >> { %v3507_v40 = vadd.f32 %v9224_v30, %v3506_v58  ;;  %7527 = vmatprep.mubr.msk.f32.mxu0 %vm3055_vm3, %v3020_v59  ;;  %v3034_v59 = vmax.f32 %v2884_v25, 0.0 }
 0x2d5   : >> { %v4146_v63 = vmax.f32 %v3512_v9, 0.0 }
 0x2d6   : >> { %v4145_v57 = vmax.f32 %v3507_v40, 0.0  ;;  %v7370_v44 = vpop.f32.mrb[194].mxu0 }
 0x2d7   : >> { %v3516_v4 = vpop.f32.mrb[195].mxu0  ;;  %7528 = vmatmul.mubr.msk.f32.gmra.mrb[44].mxu0 %vm3055_vm3, %v3021_v3  ;;  %v3522_v7 = vadd.f32 %v7370_v44, %v9224_v30  ;;  %v3035_v3 = vmax.f32 %v2889_v29, 0.0  ;;  %v3037_v44 = vmax.f32 %v2899_v35, 0.0 }
 0x2d8   : >> { %7530 = vmatprep.mubr.msk.f32.mxu0 %vm3055_vm3, %v3022_v36  ;;  %4382 = vmatmul.mubr.f32.vlgmr.msra.gmra.mrb[64].mxu1 %v4145_v57  ;;  %v3517_v48 = vadd.f32 %v9224_v30, %v3516_v4  ;;  %v3038_v4 = vmax.f32 %v2904_v49, 0.0 }
 0x2d9   : >> { %4387 = vmatprep.mubr.f32.mxu1 %v7842_v12  ;;  %v4148_v26 = vmax.f32 %v3522_v7, 0.0 }
 0x2da   : >> { %v7373_v13 = vpop.f32.mrb[196].mxu0  ;;  %v4147_v28 = vmax.f32 %v3517_v48, 0.0 }
 0x2db   : >> { %v3526_v17 = vpop.f32.mrb[197].mxu0  ;;  %7531 = vmatmul.mubr.msk.f32.gmra.mrb[46].mxu0 %vm3055_vm3, %v3023_v8  ;;  %v3532_v38 = vadd.f32 %v7373_v13, %v9224_v30 }
 0x2dc   : >> { %7533 = vmatprep.mubr.msk.f32.mxu0 %vm3055_vm3, %v3024_v1  ;;  %4388 = vmatmul.mubr.f32.gmra.mrb[66].mxu1 %v4146_v63  ;;  %v3527_v39 = vadd.f32 %v9224_v30, %v3526_v17 }
 0x2dd   : >> { %4393 = vmatprep.mubr.f32.mxu1 %v7842_v12  ;;  %v4150_v60 = vmax.f32 %v3532_v38, 0.0 }
 0x2de   : >> { %v7376_v0 = vpop.f32.mrb[198].mxu0  ;;  %v4149_v51 = vmax.f32 %v3527_v39, 0.0 }
 0x2df   : >> { %v3536_v16 = vpop.f32.mrb[199].mxu0  ;;  %7534 = vmatmul.mubr.msk.f32.gmra.mrb[48].mxu0 %vm3055_vm3, %v3025_v5  ;;  %v3542_v37 = vadd.f32 %v7376_v0, %v9224_v30 }
 0x2e0   : >> { %7536 = vmatprep.mubr.msk.f32.mxu0 %vm3055_vm3, %v3026_v18  ;;  %4394 = vmatmul.mubr.f32.gmra.mrb[68].mxu1 %v4147_v28  ;;  %v3537_v52 = vadd.f32 %v9224_v30, %v3536_v16 }
 0x2e1   : >> { %4399 = vmatprep.mubr.f32.mxu1 %v7842_v12  ;;  %v4152_v36 = vmax.f32 %v3542_v37, 0.0 }
 0x2e2   : >> { %v7379_v31 = vpop.f32.mrb[200].mxu0  ;;  %v4151_v33 = vmax.f32 %v3537_v52, 0.0 }
 0x2e3   : >> { %v3546_v19 = vpop.f32.mrb[201].mxu0  ;;  %7537 = vmatmul.mubr.msk.f32.gmra.mrb[50].mxu0 %vm3055_vm3, %v3027_v45  ;;  %v3552_v8 = vadd.f32 %v7379_v31, %v9224_v30 }
 0x2e4   : >> { %7539 = vmatprep.mubr.msk.f32.mxu0 %vm3055_vm3, %v3028_v32  ;;  %4400 = vmatmul.mubr.f32.gmra.mrb[70].mxu1 %v4148_v26  ;;  %v3547_v62 = vadd.f32 %v9224_v30, %v3546_v19 }
 0x2e5   : >> { %4405 = vmatprep.mubr.f32.mxu1 %v7842_v12  ;;  %v4154_v63 = vmax.f32 %v3552_v8, 0.0 }
 0x2e6   : >> { %v7382_v21 = vpop.f32.mrb[202].mxu0  ;;  %v4153_v14 = vmax.f32 %v3547_v62, 0.0 }
 0x2e7   : >> { %v3556_v27 = vpop.f32.mrb[203].mxu0  ;;  %7540 = vmatmul.mubr.msk.f32.gmra.mrb[52].mxu0 %vm3055_vm3, %v3029_v34  ;;  %v3562_v13 = vadd.f32 %v7382_v21, %v9224_v30 }
 0x2e8   : >> { %7542 = vmatprep.mubr.msk.f32.mxu0 %vm3055_vm3, %v3030_v43  ;;  %4406 = vmatmul.mubr.f32.gmra.mrb[72].mxu1 %v4149_v51  ;;  %v3557_v48 = vadd.f32 %v9224_v30, %v3556_v27 }
 0x2e9   : >> { %4411 = vmatprep.mubr.f32.mxu1 %v7842_v12  ;;  %v4156_v18 = vmax.f32 %v3562_v13, 0.0 }
 0x2ea   : >> { %v7385_v53 = vpop.f32.mrb[204].mxu0  ;;  %v4155_v17 = vmax.f32 %v3557_v48, 0.0 }
 0x2eb   : >> { %v3566_v61 = vpop.f32.mrb[205].mxu0  ;;  %7543 = vmatmul.mubr.msk.f32.gmra.mrb[54].mxu0 %vm3055_vm3, %v3031_v47  ;;  %v3572_v0 = vadd.f32 %v7385_v53, %v9224_v30 }
 0x2ec   : >> { %7545 = vmatprep.mubr.msk.f32.mxu0 %vm3055_vm3, %v3032_v55  ;;  %4412 = vmatmul.mubr.f32.gmra.mrb[74].mxu1 %v4150_v60  ;;  %v3567_v56 = vadd.f32 %v9224_v30, %v3566_v61 }
 0x2ed   : >> { %4417 = vmatprep.mubr.f32.mxu1 %v7842_v12  ;;  %v4158_v32 = vmax.f32 %v3572_v0, 0.0 }
 0x2ee   : >> { %v7388_v58 = vpop.f32.mrb[206].mxu0  ;;  %v4157_v16 = vmax.f32 %v3567_v56, 0.0 }
 0x2ef   : >> { %v3576_v40 = vpop.f32.mrb[207].mxu0  ;;  %7546 = vmatmul.mubr.msk.f32.gmra.mrb[56].mxu0 %vm3055_vm3, %v3033_v24  ;;  %v3582_v31 = vadd.f32 %v7388_v58, %v9224_v30 }
 0x2f0   : >> { %7548 = vmatprep.mubr.msk.f32.mxu0 %vm3055_vm3, %v3034_v59  ;;  %4418 = vmatmul.mubr.f32.gmra.mrb[76].mxu1 %v4151_v33  ;;  %v3577_v42 = vadd.f32 %v9224_v30, %v3576_v40 }
 0x2f1   : >> { %4423 = vmatprep.mubr.f32.mxu1 %v7842_v12  ;;  %v4160_v43 = vmax.f32 %v3582_v31, 0.0 }
 0x2f2   : >> { %v7391_v9 = vpop.f32.mrb[208].mxu0  ;;  %v4159_v19 = vmax.f32 %v3577_v42, 0.0 }
 0x2f3   : >> { %v3586_v57 = vpop.f32.mrb[209].mxu0  ;;  %7549 = vmatmul.mubr.msk.f32.gmra.mrb[58].mxu0 %vm3055_vm3, %v3035_v3  ;;  %v3592_v21 = vadd.f32 %v7391_v9, %v9224_v30 }
 0x2f4   : >> { %7551 = vmatprep.mubr.msk.f32.mxu0 %vm3055_vm3, %v3036_v46  ;;  %4424 = vmatmul.mubr.f32.gmra.mrb[78].mxu1 %v4152_v36  ;;  %v3587_v41 = vadd.f32 %v9224_v30, %v3586_v57 }
 0x2f5   : >> { %4429 = vmatprep.mubr.f32.mxu1 %v7842_v12  ;;  %v4162_v55 = vmax.f32 %v3592_v21, 0.0 }
 0x2f6   : >> { %v7394_v15 = vpop.f32.mrb[210].mxu0  ;;  %v4161_v27 = vmax.f32 %v3587_v41, 0.0 }
 0x2f7   : >> { %v3596_v1 = vpop.f32.mrb[211].mxu0  ;;  %7552 = vmatmul.mubr.msk.f32.gmra.mrb[60].mxu0 %vm3055_vm3, %v3037_v44  ;;  %v3602_v53 = vadd.f32 %v7394_v15, %v9224_v30 }
 0x2f8   : >> { %7554 = vmatprep.mubr.msk.f32.mxu0 %vm3055_vm3, %v3038_v4  ;;  %4430 = vmatmul.mubr.f32.gmra.mrb[80].mxu1 %v4153_v14  ;;  %v3597_v25 = vadd.f32 %v9224_v30, %v3596_v1 }
 0x2f9   : >> { %4435 = vmatprep.mubr.f32.mxu1 %v7842_v12  ;;  %v4164_v59 = vmax.f32 %v3602_v53, 0.0 }
 0x2fa   : >> { %v9307_v23 = vpop.f32.mrb[212].mxu0  ;;  %v4163_v61 = vmax.f32 %v3597_v25, 0.0 }
 0x2fb   : >> { %v3606_v2 = vpop.f32.mrb[213].mxu0  ;;  %7555 = vmatmul.mubr.msk.f32.gmra.mrb[62].mxu0 %vm3055_vm3, %v3039_v50  ;;  %v3612_v58 = vadd.f32 %v9307_v23, %v9224_v30 }
 0x2fc   : >> { %4436 = vmatmul.mubr.f32.gmra.mrb[82].mxu1 %v4154_v63  ;;  %v3607_v22 = vadd.f32 %v9224_v30, %v3606_v2 }
 0x2fd   : >> { %4441 = vmatprep.mubr.f32.mxu1 %v7842_v12  ;;  %v4166_v46 = vmax.f32 %v3612_v58, 0.0 }
 0x2fe   : >> { %v9312_v5 = vpop.f32.mrb[214].mxu0  ;;  %v4165_v40 = vmax.f32 %v3607_v22, 0.0 }
 0x2ff   : >> { %v9314_v11 = vpop.f32.mrb[215].mxu0  ;;  %v3622_v9 = vadd.f32 %v9312_v5, %v9224_v30 }
 0x300   : >> { %4442 = vmatmul.mubr.f32.gmra.mrb[84].mxu1 %v4155_v17  ;;  %v3617_v49 = vadd.f32 %v9224_v30, %v9314_v11 }
 0x301   : >> { %4447 = vmatprep.mubr.f32.mxu1 %v7842_v12  ;;  %v4168_v4 = vmax.f32 %v3622_v9, 0.0 }
 0x302   : >> { %v9318_v7 = vpop.f32.mrb[216].mxu0  ;;  %v4167_v57 = vmax.f32 %v3617_v49, 0.0 }
 0x303   : >> { %v9320_v28 = vpop.f32.mrb[217].mxu0  ;;  %v3632_v1 = vadd.f32 %v9318_v7, %v9224_v30 }
 0x304   : >> { %4448 = vmatmul.mubr.f32.gmra.mrb[86].mxu1 %v4156_v18  ;;  %v3627_v8 = vadd.f32 %v9224_v30, %v9320_v28 }
 0x305   : >> { %4453 = vmatprep.mubr.f32.mxu1 %v7842_v12  ;;  %v4170_v23 = vmax.f32 %v3632_v1, 0.0 }
 0x306   : >> { %v9324_v45 = vpop.f32.mrb[218].mxu0  ;;  %v4169_v50 = vmax.f32 %v3627_v8, 0.0 }
 0x307   : >> { %v9326_v10 = vpop.f32.mrb[219].mxu0  ;;  %v3642_v5 = vadd.f32 %v9324_v45, %v9224_v30 }
 0x308   : >> { %4454 = vmatmul.mubr.f32.gmra.mrb[88].mxu1 %v4157_v16  ;;  %v3637_v2 = vadd.f32 %v9224_v30, %v9326_v10 }
 0x309   : >> { %4459 = vmatprep.mubr.f32.mxu1 %v7842_v12  ;;  %v4172_v7 = vmax.f32 %v3642_v5, 0.0 }
 0x30a   : >> { %v9330_v26 = vpop.f32.mrb[220].mxu0  ;;  %v4171_v11 = vmax.f32 %v3637_v2, 0.0 }
 0x30b   : >> { %v9332_v39 = vpop.f32.mrb[221].mxu0  ;;  %v3652_v45 = vadd.f32 %v9330_v26, %v9224_v30 }
 0x30c   : >> { %4460 = vmatmul.mubr.f32.gmra.mrb[90].mxu1 %v4158_v32  ;;  %v3647_v28 = vadd.f32 %v9224_v30, %v9332_v39 }
 0x30d   : >> { %4465 = vmatprep.mubr.f32.mxu1 %v7842_v12  ;;  %v4174_v31 = vmax.f32 %v3652_v45, 0.0 }
 0x30e   : >> { %v9336_v34 = vpop.f32.mrb[222].mxu0  ;;  %v4173_v10 = vmax.f32 %v3647_v28, 0.0 }
 0x30f   : >> { %v9338_v20 = vpop.f32.mrb[223].mxu0  ;;  %v3662_v26 = vadd.f32 %v9336_v34, %v9224_v30 }
 0x310   : >> { %4466 = vmatmul.mubr.f32.gmra.mrb[92].mxu1 %v4159_v19  ;;  %v3657_v39 = vadd.f32 %v9224_v30, %v9338_v20 }
 0x311   : >> { %4471 = vmatprep.mubr.f32.mxu1 %v7842_v12 }
 0x312   : >> { %v9342_v38 = vpop.f32.mrb[224].mxu0  ;;  %v4175_v41 = vmax.f32 %v3657_v39, 0.0 }
 0x313   : >> { %v9344_v51 = vpop.f32.mrb[225].mxu0  ;;  %v3672_v34 = vadd.f32 %v9342_v38, %v9224_v30 }
 0x314   : >> { %4472 = vmatmul.mubr.f32.gmra.mrb[94].mxu1 %v4160_v43  ;;  %v3667_v20 = vadd.f32 %v9224_v30, %v9344_v51 }
 0x315   : >> { %4477 = vmatprep.mubr.f32.mxu1 %v7842_v12  ;;  %v4178_v58 = vmax.f32 %v3672_v34, 0.0 }
 0x316   : >> { %v9348_v47 = vpop.f32.mrb[226].mxu0 }
 0x317   : >> { %v9350_v6 = vpop.f32.mrb[227].mxu0  ;;  %v3682_v38 = vadd.f32 %v9348_v47, %v9224_v30 }
 0x318   : >> { %4478 = vmatmul.mubr.f32.gmra.mrb[96].mxu1 %v4161_v27  ;;  %v3677_v51 = vadd.f32 %v9224_v30, %v9350_v6 }
 0x319   : >> { %4483 = vmatprep.mubr.f32.mxu1 %v7842_v12 }
 0x31a   : >> { %v9354_v60 = vpop.f32.mrb[228].mxu0  ;;  %v4179_v49 = vmax.f32 %v3677_v51, 0.0 }
 0x31b   : >> { %v9356_v52 = vpop.f32.mrb[229].mxu0  ;;  %v3692_v47 = vadd.f32 %v9354_v60, %v9224_v30 }
 0x31c   : >> { %4484 = vmatmul.mubr.f32.gmra.mrb[98].mxu1 %v4162_v55  ;;  %v4176_v55 = vmax.f32 %v3662_v26, 0.0  ;;  %v3687_v6 = vadd.f32 %v9224_v30, %v9356_v52 }
 0x31d   : >> { %4489 = vmatprep.mubr.f32.mxu1 %v7842_v12  ;;  %v4182_v5 = vmax.f32 %v3692_v47, 0.0 }
 0x31e   : >> { %v9360_v24 = vpop.f32.mrb[230].mxu0 }
 0x31f   : >> { %v9362_v29 = vpop.f32.mrb[231].mxu0  ;;  %v3702_v60 = vadd.f32 %v9360_v24, %v9224_v30 }
 0x320   : >> { %4490 = vmatmul.mubr.f32.gmra.mrb[100].mxu1 %v4163_v61  ;;  %v4177_v61 = vmax.f32 %v3667_v20, 0.0  ;;  %v3697_v52 = vadd.f32 %v9224_v30, %v9362_v29 }
 0x321   : >> { %4495 = vmatprep.mubr.f32.mxu1 %v7842_v12 }
 0x322   : >> { %v9366_v37 = vpop.f32.mrb[232].mxu0  ;;  %v4183_v28 = vmax.f32 %v3697_v52, 0.0 }
 0x323   : >> { %v9368_v33 = vpop.f32.mrb[233].mxu0  ;;  %v3712_v24 = vadd.f32 %v9366_v37, %v9224_v30 }
 0x324   : >> { %4496 = vmatmul.mubr.f32.gmra.mrb[102].mxu1 %v4164_v59  ;;  %v3707_v29 = vadd.f32 %v9224_v30, %v9368_v33 }
 0x325   : >> { %4501 = vmatprep.mubr.f32.mxu1 %v7842_v12  ;;  %v4186_v34 = vmax.f32 %v3712_v24, 0.0 }
 0x326   : >> { %v9373_v3 = vpop.f32.mrb[234].mxu0 }
 0x327   : >> { %v9375_v35 = vpop.f32.mrb[235].mxu0  ;;  %v3722_v37 = vadd.f32 %v9373_v3, %v9224_v30 }
 0x328   : >> { %4502 = vmatmul.mubr.f32.gmra.mrb[104].mxu1 %v4165_v40  ;;  %v3717_v33 = vadd.f32 %v9224_v30, %v9375_v35 }
 0x329   : >> { %4507 = vmatprep.mubr.f32.mxu1 %v7842_v12 }
 0x32a   : >> { %v9380_v36 = vpop.f32.mrb[236].mxu0  ;;  %v4187_v51 = vmax.f32 %v3717_v33, 0.0 }
 0x32b   : >> { %v9382_v62 = vpop.f32.mrb[237].mxu0  ;;  %v3732_v3 = vadd.f32 %v9380_v36, %v9224_v30 }
 0x32c   : >> { %4508 = vmatmul.mubr.f32.gmra.mrb[106].mxu1 %v4166_v46  ;;  %v3727_v35 = vadd.f32 %v9224_v30, %v9382_v62 }
 0x32d   : >> { %4513 = vmatprep.mubr.f32.mxu1 %v7842_v12 }
 0x32e   : >> { %v9387_v44 = vpop.f32.mrb[238].mxu0 }
 0x32f   : >> { %v9389_v54 = vpop.f32.mrb[239].mxu0  ;;  %v3742_v36 = vadd.f32 %v9387_v44, %v9224_v30 }
 0x330   : >> { %4514 = vmatmul.mubr.f32.gmra.mrb[108].mxu1 %v4167_v57  ;;  %v3737_v62 = vadd.f32 %v9224_v30, %v9389_v54 }
 0x331   : >> { %4519 = vmatprep.mubr.f32.mxu1 %v7842_v12 }
 0x332   : >> { %v9394_v14 = vpop.f32.mrb[240].mxu0 }
 0x333   : >> { %v9396_v15 = vpop.f32.mrb[241].mxu0  ;;  %v3752_v44 = vadd.f32 %v9394_v14, %v9224_v30 }
 0x334   : >> { %4520 = vmatmul.mubr.f32.gmra.mrb[110].mxu1 %v4168_v4  ;;  %v4180_v4 = vmax.f32 %v3682_v38, 0.0  ;;  %v3747_v54 = vadd.f32 %v9224_v30, %v9396_v15 }
 0x335   : >> { %4525 = vmatprep.mubr.f32.mxu1 %v7842_v12 }
 0x336   : >> { %v9401_v63 = vpop.f32.mrb[242].mxu0 }
 0x337   : >> { %v9403_v48 = vpop.f32.mrb[243].mxu0  ;;  %v3762_v14 = vadd.f32 %v9401_v63, %v9224_v30 }
 0x338   : >> { %4526 = vmatmul.mubr.f32.gmra.mrb[112].mxu1 %v4169_v50  ;;  %v4181_v50 = vmax.f32 %v3687_v6, 0.0  ;;  %v3757_v15 = vadd.f32 %v9224_v30, %v9403_v48 }
 0x339   : >> { %4531 = vmatprep.mubr.f32.mxu1 %v7842_v12  ;;  %v4196_v48 = vmax.f32 %v3762_v14, 0.0 }
 0x33a   : >> { %v9408_v13 = vpop.f32.mrb[244].mxu0 }
 0x33b   : >> { %v9410_v17 = vpop.f32.mrb[245].mxu0  ;;  %v3772_v63 = vadd.f32 %v9408_v13, %v9224_v30 }
 0x33c   : >> { %4532 = vmatmul.mubr.f32.gmra.mrb[114].mxu1 %v4170_v23 }
 0x33d   : >> { %4537 = vmatprep.mubr.f32.mxu1 %v7842_v12 }
 0x33e   : >> { %v9415_v18 = vpop.f32.mrb[246].mxu0 }
 0x33f   : >> { %v9417_v56 = vpop.f32.mrb[247].mxu0 }
 0x340   : >> { %4538 = vmatmul.mubr.f32.gmra.mrb[116].mxu1 %v4171_v11 }
 0x341   : >> { %4543 = vmatprep.mubr.f32.mxu1 %v7842_v12 }
 0x342   : >> { %v9422_v0 = vpop.f32.mrb[248].mxu0 }
 0x343   : >> { %v9424_v16 = vpop.f32.mrb[249].mxu0 }
 0x344   : >> { %4544 = vmatmul.mubr.f32.gmra.mrb[118].mxu1 %v4172_v7 }
 0x345   : >> { %4549 = vmatprep.mubr.f32.mxu1 %v7842_v12 }
 0x346   : >> { %v9429_v32 = vpop.f32.mrb[250].mxu0 }
 0x347   : >> { %v9431_v42 = vpop.f32.mrb[251].mxu0 }
 0x348   : >> { %4550 = vmatmul.mubr.f32.gmra.mrb[120].mxu1 %v4173_v10 }
 0x349   : >> { %4555 = vmatprep.mubr.f32.mxu1 %v7842_v12 }
 0x34a   : >> { %v9436_v19 = vpop.f32.mrb[252].mxu0 }
 0x34b   : >> { %v9438_v43 = vpop.f32.mrb[253].mxu0 }
 0x34c   : >> { %4556 = vmatmul.mubr.f32.gmra.mrb[122].mxu1 %v4174_v31  ;;  %v4184_v31 = vmax.f32 %v3702_v60, 0.0  ;;  %v4190_v60 = vmax.f32 %v3732_v3, 0.0  ;;  %v4194_v3 = vmax.f32 %v3752_v44, 0.0 }
 0x34d   : >> { %4561 = vmatprep.mubr.f32.mxu1 %v7842_v12 }
 0x34e   : >> { %v9443_v21 = vpop.f32.mrb[254].mxu0 }
 0x34f   : >> { %v9445_v27 = vpop.f32.mrb[255].mxu0 }
 0x350   : >> { %4562 = vmatmul.mubr.f32.gmra.mrb[124].mxu1 %v4175_v41  ;;  %v4185_v41 = vmax.f32 %v3707_v29, 0.0  ;;  %v4191_v29 = vmax.f32 %v3737_v62, 0.0  ;;  %v4195_v62 = vmax.f32 %v3757_v15, 0.0 }
 0x351   : >> { %4567 = vmatprep.mubr.f32.mxu1 %v7842_v12 }
 0x352   : >> { %v9450_v25 = vpop.f32.mrb[0].mxu0 }
 0x353   : >> { %v9452_v53 = vpop.f32.mrb[1].mxu0 }
 0x354   : >> { %4568 = vmatmul.mubr.f32.gmra.mrb[126].mxu1 %v4176_v55 }
 0x355   : >> { %4573 = vmatprep.mubr.f32.mxu1 %v7842_v12 }
 0x356   : >> { %v9457_v59 = vpop.f32.mrb[2].mxu0 }
 0x357   : >> { %v9459_v22 = vpop.f32.mrb[3].mxu0 }
 0x358   : >> { %4574 = vmatmul.mubr.f32.gmra.mrb[128].mxu1 %v4177_v61 }
 0x359   : >> { %4579 = vmatprep.mubr.f32.mxu1 %v7842_v12 }
 0x35a   : >> { %v9464_v40 = vpop.f32.mrb[4].mxu0 }
 0x35b   : >> { %v9466_v46 = vpop.f32.mrb[5].mxu0 }
 0x35c   : >> { %4580 = vmatmul.mubr.f32.gmra.mrb[130].mxu1 %v4178_v58 }
 0x35d   : >> { %4585 = vmatprep.mubr.f32.mxu1 %v7842_v12 }
 0x35e   : >> { %v9471_v9 = vpop.f32.mrb[6].mxu0 }
 0x35f   : >> { %v9473_v57 = vpop.f32.mrb[7].mxu0 }
 0x360   : >> { %4586 = vmatmul.mubr.f32.gmra.mrb[132].mxu1 %v4179_v49 }
 0x361   : >> { %4591 = vmatprep.mubr.f32.mxu1 %v7842_v12 }
 0x362   : >> { %v9478_v8 = vpop.f32.mrb[8].mxu0 }
 0x363   : >> { %v9480_v1 = vpop.f32.mrb[9].mxu0 }
 0x364   : >> { %4592 = vmatmul.mubr.f32.gmra.mrb[134].mxu1 %v4180_v4  ;;  %v4188_v4 = vmax.f32 %v3722_v37, 0.0 }
 0x365   : >> { %4597 = vmatprep.mubr.f32.mxu1 %v7842_v12 }
 0x366   : >> { %v9485_v23 = vpop.f32.mrb[10].mxu0 }
 0x367   : >> { %v9487_v2 = vpop.f32.mrb[11].mxu0 }
 0x368   : >> { %4598 = vmatmul.mubr.f32.gmra.mrb[136].mxu1 %v4181_v50  ;;  %v4189_v50 = vmax.f32 %v3727_v35, 0.0 }
 0x369   : >> { %4603 = vmatprep.mubr.f32.mxu1 %v7842_v12 }
 0x36a   : >> { %v9492_v11 = vpop.f32.mrb[12].mxu0 }
 0x36b   : >> { %v9494_v7 = vpop.f32.mrb[13].mxu0 }
 0x36c   : >> { %4604 = vmatmul.mubr.f32.gmra.mrb[138].mxu1 %v4182_v5 }
 0x36d   : >> { %4609 = vmatprep.mubr.f32.mxu1 %v7842_v12 }
 0x36e   : >> { %v9499_v45 = vpop.f32.mrb[14].mxu0 }
 0x36f   : >> { %v9501_v10 = vpop.f32.mrb[15].mxu0 }
 0x370   : >> { %4610 = vmatmul.mubr.f32.gmra.mrb[140].mxu1 %v4183_v28 }
 0x371   : >> { %4615 = vmatprep.mubr.f32.mxu1 %v7842_v12 }
 0x372   : >> { %v9506_v39 = vpop.f32.mrb[16].mxu0 }
 0x373   : >> { %v9508_v26 = vpop.f32.mrb[17].mxu0 }
 0x374   : >> { %4616 = vmatmul.mubr.f32.gmra.mrb[142].mxu1 %v4184_v31 }
 0x375   : >> { %4621 = vmatprep.mubr.f32.mxu1 %v7842_v12 }
 0x376   : >> { %v9513_v55 = vpop.f32.mrb[18].mxu0 }
 0x377   : >> { %v9515_v20 = vpop.f32.mrb[19].mxu0 }
 0x378   : >> { %4622 = vmatmul.mubr.f32.gmra.mrb[144].mxu1 %v4185_v41 }
 0x379   : >> { %4627 = vmatprep.mubr.f32.mxu1 %v7842_v12 }
 0x37a   : >> { %v9520_v61 = vpop.f32.mrb[20].mxu0 }
 0x37b   : >> { %v9522_v58 = vpop.f32.mrb[21].mxu0 }
 0x37c   : >> { %4628 = vmatmul.mubr.f32.gmra.mrb[146].mxu1 %v4186_v34  ;;  %v4192_v34 = vmax.f32 %v3742_v36, 0.0 }
 0x37d   : >> { %4633 = vmatprep.mubr.f32.mxu1 %v7842_v12 }
 0x37e   : >> { %v9527_v38 = vpop.f32.mrb[22].mxu0 }
 0x37f   : >> { %v9529_v49 = vpop.f32.mrb[23].mxu0 }
 0x380   : >> { %4634 = vmatmul.mubr.f32.gmra.mrb[148].mxu1 %v4187_v51  ;;  %v4193_v51 = vmax.f32 %v3747_v54, 0.0  ;;  %v3767_v54 = vadd.f32 %v9224_v30, %v9410_v17  ;;  %v4305_v17 = vld [vmem:[%s10403_s8] sm:$0x3] }
 0x381   : >> { %4639 = vmatprep.mubr.f32.mxu1 %v7842_v12 }
 0x382   : >> { %v9534_v6 = vpop.f32.mrb[24].mxu0  ;;  %v4197_v15 = vmax.f32 %v3767_v54, 0.0 }
 0x383   : >> { %v9536_v47 = vpop.f32.mrb[25].mxu0 }
 0x384   : >> { %4640 = vmatmul.mubr.f32.gmra.mrb[150].mxu1 %v4188_v4 }
 0x385   : >> { %4645 = vmatprep.mubr.f32.mxu1 %v7842_v12 }
 0x386   : >> { %v9541_v5 = vpop.f32.mrb[26].mxu0 }
 0x387   : >> { %v9543_v52 = vpop.f32.mrb[27].mxu0 }
 0x388   : >> { %4646 = vmatmul.mubr.f32.gmra.mrb[152].mxu1 %v4189_v50 }
 0x389   : >> { %4651 = vmatprep.mubr.f32.mxu1 %v7842_v12 }
 0x38a   : >> { %v9548_v28 = vpop.f32.mrb[28].mxu0 }
 0x38b   : >> { %v9550_v31 = vpop.f32.mrb[29].mxu0 }
 0x38c   : >> { %4652 = vmatmul.mubr.f32.gmra.mrb[154].mxu1 %v4190_v60 }
 0x38d   : >> { %4657 = vmatprep.mubr.f32.mxu1 %v7842_v12 }
 0x38e   : >> { %v9555_v24 = vpop.f32.mrb[30].mxu0 }
 0x38f   : >> { %v9557_v41 = vpop.f32.mrb[31].mxu0 }
 0x390   : >> { %4658 = vmatmul.mubr.f32.gmra.mrb[156].mxu1 %v4191_v29  ;;  %v4307_v29 = vlaneseq }
 0x391   : >> { %4663 = vmatprep.mubr.f32.mxu1 %v7842_v12 }
 0x392   : >> { %v9562_v33 = vpop.f32.mrb[32].mxu0 }
 0x393   : >> { %v9564_v37 = vpop.f32.mrb[33].mxu0 }
 0x394   : >> { %4664 = vmatmul.mubr.f32.gmra.mrb[158].mxu1 %v4192_v34 }
 0x395   : >> { %4669 = vmatprep.mubr.f32.mxu1 %v7842_v12 }
 0x396   : >> { %v9569_v4 = vpop.f32.mrb[34].mxu0 }
 0x397   : >> { %10419 = vst [vmem:[#allocation8_spill] sm:$0xff] %v9569_v4  ;;  %v9571_v35 = vpop.f32.mrb[35].mxu0 }
 0x398   : >> { %10420 = vst [vmem:[#allocation9_spill] sm:$0xff] %v9571_v35  ;;  %4670 = vmatmul.mubr.f32.gmra.mrb[160].mxu1 %v4193_v51  ;;  %v4308_v51 = vshrl.u32 %v4307_v29, 7  ;;  %v4198_v29 = vmax.f32 %v3772_v63, 0.0 }
 0x399   : >> { %4675 = vmatprep.mubr.f32.mxu1 %v7842_v12 }
 0x39a   : >> { %v9576_v50 = vpop.f32.mrb[36].mxu0  ;;  %v4313_v14 = vsub.s32 1, %v4308_v51 }
 0x39b   : >> { %10421 = vst [vmem:[#allocation10_spill] sm:$0xff] %v9576_v50  ;;  %v9578_v60 = vpop.f32.mrb[37].mxu0 }
 0x39c   : >> { %10422 = vst [vmem:[#allocation11_spill] sm:$0xff] %v9578_v60  ;;  %4676 = vmatmul.mubr.f32.gmra.mrb[162].mxu1 %v4194_v3 }
 0x39d   : >> { %4681 = vmatprep.mubr.f32.mxu1 %v7842_v12 }
 0x39e   : >> { %v9583_v36 = vpop.f32.mrb[38].mxu0 }
 0x39f   : >> { %10423 = vst [vmem:[#allocation12_spill] sm:$0xff] %v9583_v36  ;;  %v9585_v34 = vpop.f32.mrb[39].mxu0 }
 0x3a0   : >> { %10424 = vst [vmem:[#allocation13_spill] sm:$0xff] %v9585_v34  ;;  %4682 = vmatmul.mubr.f32.gmra.mrb[164].mxu1 %v4195_v62  ;;  %v4309_v62 = vsub.s32 0, %v4308_v51  ;;  %v3782_v51 = vadd.f32 %v9415_v18, %v9224_v30  ;;  %v3787_v18 = vadd.f32 %v9224_v30, %v9424_v16  ;;  %v3792_v16 = vadd.f32 %v9422_v0, %v9224_v30 }
 0x3a1   : >> { %4687 = vmatprep.mubr.f32.mxu1 %v7842_v12  ;;  %v3797_v0 = vadd.f32 %v9224_v30, %v9431_v42  ;;  %v3802_v42 = vadd.f32 %v9429_v32, %v9224_v30  ;;  %v3807_v32 = vadd.f32 %v9224_v30, %v9438_v43  ;;  %v3812_v43 = vadd.f32 %v9436_v19, %v9224_v30 }
 0x3a2   : >> { %v9590_v44 = vpop.f32.mrb[40].mxu0  ;;  %v9609_v13 = vrot.slane %v4305_v17, %v4309_v62  ;;  %v4200_v50 = vmax.f32 %v3782_v51, 0.0  ;;  %v3817_v19 = vadd.f32 %v9224_v30, %v9445_v27  ;;  %v3822_v27 = vadd.f32 %v9443_v21, %v9224_v30 }
 0x3a3   : >> { %10425 = vst [vmem:[#allocation14_spill] sm:$0xff] %v9590_v44  ;;  %v9592_v3 = vpop.f32.mrb[41].mxu0 }
 0x3a4   : >> { %10426 = vst [vmem:[#allocation15_spill] sm:$0xff] %v9592_v3  ;;  %4688 = vmatmul.mubr.f32.gmra.mrb[166].mxu1 %v4196_v48  ;;  %v3777_v48 = vadd.f32 %v9224_v30, %v9417_v56  ;;  %v9702_v30 = vld [vmem:[%s10401_s6] ss:$0 sm:$0xff] }
 0x3a5   : >> { %4693 = vmatprep.mubr.f32.mxu1 %v7842_v12  ;;  %v3827_v21 = vadd.f32 %v9702_v30, %v9452_v53 }
 0x3a6   : >> { %v9597_v36 = vpop.f32.mrb[42].mxu0  ;;  %v4199_v63 = vmax.f32 %v3777_v48, 0.0 }
 0x3a7   : >> { %10427 = vst [vmem:[#allocation16_spill] sm:$0xff] %v9597_v36  ;;  %v9599_v34 = vpop.f32.mrb[43].mxu0 }
 0x3a8   : >> { %10428 = vst [vmem:[#allocation17_spill] sm:$0xff] %v9599_v34  ;;  %4694 = vmatmul.mubr.f32.gmra.mrb[168].mxu1 %v4197_v15  ;;  %v9613_v34 = vrot.slane %v4305_v17, %v4313_v14 }
 0x3a9   : >> { %4699 = vmatprep.mubr.f32.mxu1 %v7842_v12 }
 0x3aa   : >> { %v9607_v44 = vpop.f32.mrb[44].mxu0 }
 0x3ab   : >> { %10429 = vst [vmem:[#allocation18_spill] sm:$0xff] %v9607_v44  ;;  %v9611_v54 = vpop.f32.mrb[45].mxu0  ;;  %v4383_v36 = vpop.f32.mrb[64].mxu1 }
 0x3ac   : >> { %10430 = vst [vmem:[#allocation19_spill] sm:$0xff] %v9611_v54  ;;  %v4385_v3 = vpop.f32.mrb[65].mxu1  ;;  %4700 = vmatmul.mubr.f32.gmra.mrb[170].mxu1 %v4198_v29  ;;  %v4384_v15 = vadd.f32 %v4383_v36, %v9609_v13 }
 0x3ad   : >> { %4705 = vmatprep.mubr.f32.mxu1 %v7842_v12  ;;  %v4386_v62 = vadd.f32 %v4385_v3, %v9613_v34 }
 0x3ae   : >> { %v9619_v56 = vpop.f32.mrb[46].mxu0  ;;  %v5150_v36 = vmax.f32 %v4384_v15, 0.0  ;;  %v4201_v15 = vmax.f32 %v3787_v18, 0.0 }
 0x3af   : >> { %10431 = vst [vmem:[#allocation20_spill] sm:$0xff] %v9619_v56  ;;  %v9622_v44 = vpop.f32.mrb[47].mxu0  ;;  %v4389_v54 = vpop.f32.mrb[66].mxu1  ;;  %v5151_v3 = vmax.f32 %v4386_v62, 0.0 }
 0x3b0   : >> { %10432 = vst [vmem:[#allocation21_spill] sm:$0xff] %v9622_v44  ;;  %v4390_v17 = vadd.f32 %v4389_v54, %v9609_v13  ;;  %v4391_v14 = vpop.f32.mrb[67].mxu1  ;;  %4706 = vmatmul.mubr.f32.gmra.mrb[172].mxu1 %v4199_v63 }
 0x3b1   : >> { %v4392_v29 = vadd.f32 %v4391_v14, %v9613_v34  ;;  %4711 = vmatprep.mubr.f32.mxu1 %v7842_v12 }
 0x3b2   : >> { %v5152_v48 = vmax.f32 %v4390_v17, 0.0  ;;  %v9629_v56 = vpop.f32.mrb[48].mxu0 }
 0x3b3   : >> { %10433 = vst [vmem:[#allocation22_spill] sm:$0xff] %v9629_v56  ;;  %v5153_v60 = vmax.f32 %v4392_v29, 0.0  ;;  %v9631_v44 = vpop.f32.mrb[49].mxu0  ;;  %v4395_v4 = vpop.f32.mrb[68].mxu1 }
 0x3b4   : >> { %v5406_v54 = vadd.f32 %v5152_v48, %v5150_v36  ;;  %v4396_v63 = vadd.f32 %v4395_v4, %v9609_v13  ;;  %v4397_v35 = vpop.f32.mrb[69].mxu1  ;;  %4712 = vmatmul.mubr.f32.gmra.mrb[174].mxu1 %v4200_v50 }
 0x3b5   : >> { %v5427_v14 = vadd.f32 %v5153_v60, %v5151_v3  ;;  %v4398_v51 = vadd.f32 %v4397_v35, %v9613_v34  ;;  %4717 = vmatprep.mubr.f32.mxu1 %v7842_v12  ;;  %v4202_v3 = vmax.f32 %v3792_v16, 0.0  ;;  %v4203_v16 = vmax.f32 %v3797_v0, 0.0 }
 0x3b6   : >> { %v5154_v17 = vmax.f32 %v4396_v63, 0.0  ;;  %v9638_v62 = vpop.f32.mrb[50].mxu0 }
 0x3b7   : >> { %10434 = vst [vmem:[#allocation23_spill] sm:$0xff] %v9638_v62  ;;  %v5155_v29 = vmax.f32 %v4398_v51, 0.0  ;;  %v9640_v56 = vpop.f32.mrb[51].mxu0  ;;  %v4401_v36 = vpop.f32.mrb[70].mxu1 }
 0x3b8   : >> { %v5407_v48 = vadd.f32 %v5406_v54, %v5154_v17  ;;  %v4402_v4 = vadd.f32 %v4401_v36, %v9609_v13  ;;  %v4403_v50 = vpop.f32.mrb[71].mxu1  ;;  %4718 = vmatmul.mubr.f32.gmra.mrb[176].mxu1 %v4201_v15 }
 0x3b9   : >> { %v5428_v60 = vadd.f32 %v5427_v14, %v5155_v29  ;;  %v4404_v35 = vadd.f32 %v4403_v50, %v9613_v34  ;;  %4723 = vmatprep.mubr.f32.mxu1 %v7842_v12 }
 0x3ba   : >> { %v5156_v18 = vmax.f32 %v4402_v4, 0.0  ;;  %v9647_v63 = vpop.f32.mrb[52].mxu0 }
 0x3bb   : >> { %10435 = vst [vmem:[#allocation24_spill] sm:$0xff] %v9647_v63  ;;  %v5157_v51 = vmax.f32 %v4404_v35, 0.0  ;;  %v9649_v62 = vpop.f32.mrb[53].mxu0  ;;  %v4407_v54 = vpop.f32.mrb[72].mxu1 }
 0x3bc   : >> { %v5408_v17 = vadd.f32 %v5407_v48, %v5156_v18  ;;  %v4408_v36 = vadd.f32 %v4407_v54, %v9609_v13  ;;  %v4409_v15 = vpop.f32.mrb[73].mxu1  ;;  %4724 = vmatmul.mubr.f32.gmra.mrb[178].mxu1 %v4202_v3 }
 0x3bd   : >> { %v5429_v14 = vadd.f32 %v5428_v60, %v5157_v51  ;;  %v4410_v29 = vadd.f32 %v4409_v15, %v9613_v34  ;;  %4729 = vmatprep.mubr.f32.mxu1 %v7842_v12  ;;  %v4204_v15 = vmax.f32 %v3802_v42, 0.0  ;;  %v4205_v42 = vmax.f32 %v3807_v32, 0.0 }
 0x3be   : >> { %v5158_v4 = vmax.f32 %v4408_v36, 0.0  ;;  %v9656_v50 = vpop.f32.mrb[54].mxu0 }
 0x3bf   : >> { %10436 = vst [vmem:[#allocation25_spill] sm:$0xff] %v9656_v50  ;;  %v5159_v35 = vmax.f32 %v4410_v29, 0.0  ;;  %v9658_v63 = vpop.f32.mrb[55].mxu0  ;;  %v4413_v48 = vpop.f32.mrb[74].mxu1 }
 0x3c0   : >> { %v5409_v18 = vadd.f32 %v5408_v17, %v5158_v4  ;;  %v4414_v54 = vadd.f32 %v4413_v48, %v9609_v13  ;;  %v4415_v3 = vpop.f32.mrb[75].mxu1  ;;  %4730 = vmatmul.mubr.f32.gmra.mrb[180].mxu1 %v4203_v16 }
 0x3c1   : >> { %v5430_v60 = vadd.f32 %v5429_v14, %v5159_v35  ;;  %v4416_v51 = vadd.f32 %v4415_v3, %v9613_v34  ;;  %4735 = vmatprep.mubr.f32.mxu1 %v7842_v12 }
 0x3c2   : >> { %v5160_v0 = vmax.f32 %v4414_v54, 0.0  ;;  %v9665_v36 = vpop.f32.mrb[56].mxu0 }
 0x3c3   : >> { %10437 = vst [vmem:[#allocation26_spill] sm:$0xff] %v9665_v36  ;;  %v5161_v29 = vmax.f32 %v4416_v51, 0.0  ;;  %v9667_v50 = vpop.f32.mrb[57].mxu0  ;;  %v4419_v17 = vpop.f32.mrb[76].mxu1 }
 0x3c4   : >> { %v5410_v4 = vadd.f32 %v5409_v18, %v5160_v0  ;;  %v4420_v48 = vadd.f32 %v4419_v17, %v9609_v13  ;;  %v4421_v16 = vpop.f32.mrb[77].mxu1  ;;  %4736 = vmatmul.mubr.f32.gmra.mrb[182].mxu1 %v4204_v15 }
 0x3c5   : >> { %v5431_v14 = vadd.f32 %v5430_v60, %v5161_v29  ;;  %v4422_v35 = vadd.f32 %v4421_v16, %v9613_v34  ;;  %4741 = vmatprep.mubr.f32.mxu1 %v7842_v12  ;;  %v4206_v16 = vmax.f32 %v3812_v43, 0.0  ;;  %v4207_v43 = vmax.f32 %v3817_v19, 0.0 }
 0x3c6   : >> { %v5162_v54 = vmax.f32 %v4420_v48, 0.0  ;;  %v9674_v3 = vpop.f32.mrb[58].mxu0 }
 0x3c7   : >> { %10438 = vst [vmem:[#allocation27_spill] sm:$0xff] %v9674_v3  ;;  %v5163_v51 = vmax.f32 %v4422_v35, 0.0  ;;  %v9676_v36 = vpop.f32.mrb[59].mxu0  ;;  %v4425_v18 = vpop.f32.mrb[78].mxu1 }
 0x3c8   : >> { %v5411_v0 = vadd.f32 %v5410_v4, %v5162_v54  ;;  %v4426_v17 = vadd.f32 %v4425_v18, %v9609_v13  ;;  %v4427_v15 = vpop.f32.mrb[79].mxu1  ;;  %4742 = vmatmul.mubr.f32.gmra.mrb[184].mxu1 %v4205_v42 }
 0x3c9   : >> { %v5432_v60 = vadd.f32 %v5431_v14, %v5163_v51  ;;  %v4428_v29 = vadd.f32 %v4427_v15, %v9613_v34  ;;  %4747 = vmatprep.mubr.f32.mxu1 %v7842_v12 }
 0x3ca   : >> { %v5164_v32 = vmax.f32 %v4426_v17, 0.0  ;;  %v9683_v48 = vpop.f32.mrb[60].mxu0 }
 0x3cb   : >> { %10439 = vst [vmem:[#allocation28_spill] sm:$0xff] %v9683_v48  ;;  %v5165_v35 = vmax.f32 %v4428_v29, 0.0  ;;  %v9685_v3 = vpop.f32.mrb[61].mxu0  ;;  %v4431_v4 = vpop.f32.mrb[80].mxu1 }
 0x3cc   : >> { %v5412_v54 = vadd.f32 %v5411_v0, %v5164_v32  ;;  %v4432_v18 = vadd.f32 %v4431_v4, %v9609_v13  ;;  %v4433_v42 = vpop.f32.mrb[81].mxu1  ;;  %4748 = vmatmul.mubr.f32.gmra.mrb[186].mxu1 %v4206_v16 }
 0x3cd   : >> { %v5433_v14 = vadd.f32 %v5432_v60, %v5165_v35  ;;  %v4434_v51 = vadd.f32 %v4433_v42, %v9613_v34  ;;  %4753 = vmatprep.mubr.f32.mxu1 %v7842_v12  ;;  %v4208_v42 = vmax.f32 %v3822_v27, 0.0  ;;  %v3832_v27 = vadd.f32 %v9702_v30, %v9450_v25 }
 0x3ce   : >> { %v5166_v17 = vmax.f32 %v4432_v18, 0.0  ;;  %v9692_v15 = vpop.f32.mrb[62].mxu0 }
 0x3cf   : >> { %10440 = vst [vmem:[#allocation29_spill] sm:$0xff] %v9692_v15  ;;  %v5167_v29 = vmax.f32 %v4434_v51, 0.0  ;;  %v9694_v48 = vpop.f32.mrb[63].mxu0  ;;  %v4437_v0 = vpop.f32.mrb[82].mxu1 }
 0x3d0   : >> { %v5413_v32 = vadd.f32 %v5412_v54, %v5166_v17  ;;  %v4438_v4 = vadd.f32 %v4437_v0, %v9609_v13  ;;  %v4439_v16 = vpop.f32.mrb[83].mxu1  ;;  %4754 = vmatmul.mubr.f32.gmra.mrb[188].mxu1 %v4207_v43  ;;  %v4209_v0 = vmax.f32 %v3827_v21, 0.0 }
 0x3d1   : >> { %v5434_v60 = vadd.f32 %v5433_v14, %v5167_v29  ;;  %v4440_v35 = vadd.f32 %v4439_v16, %v9613_v34  ;;  %4759 = vmatprep.mubr.f32.mxu1 %v7842_v12 }
 0x3d2   : >> { %v5168_v19 = vmax.f32 %v4438_v4, 0.0 }
 0x3d3   : >> { %v5169_v54 = vmax.f32 %v4440_v35, 0.0  ;;  %v4443_v18 = vpop.f32.mrb[84].mxu1 }
 0x3d4   : >> { %v5414_v51 = vadd.f32 %v5413_v32, %v5168_v19  ;;  %v4444_v43 = vadd.f32 %v4443_v18, %v9609_v13  ;;  %v4445_v14 = vpop.f32.mrb[85].mxu1  ;;  %4760 = vmatmul.mubr.f32.gmra.mrb[190].mxu1 %v4208_v42 }
 0x3d5   : >> { %v5435_v17 = vadd.f32 %v5434_v60, %v5169_v54  ;;  %v4446_v29 = vadd.f32 %v4445_v14, %v9613_v34  ;;  %4765 = vmatprep.mubr.f32.mxu1 %v7842_v12  ;;  %v4210_v60 = vmax.f32 %v3832_v27, 0.0  ;;  %v3837_v54 = vadd.f32 %v9702_v30, %v9459_v22 }
 0x3d6   : >> { %v5170_v16 = vmax.f32 %v4444_v43, 0.0 }
 0x3d7   : >> { %v5171_v15 = vmax.f32 %v4446_v29, 0.0  ;;  %v4449_v53 = vpop.f32.mrb[86].mxu1 }
 0x3d8   : >> { %v5415_v4 = vadd.f32 %v5414_v51, %v5170_v16  ;;  %v4450_v35 = vadd.f32 %v4449_v53, %v9609_v13  ;;  %v4451_v32 = vpop.f32.mrb[87].mxu1  ;;  %4766 = vmatmul.mubr.f32.gmra.mrb[192].mxu1 %v4209_v0 }
 0x3d9   : >> { %v5436_v19 = vadd.f32 %v5435_v17, %v5171_v15  ;;  %v4452_v42 = vadd.f32 %v4451_v32, %v9613_v34  ;;  %4771 = vmatprep.mubr.f32.mxu1 %v7842_v12  ;;  %v3842_v15 = vadd.f32 %v9702_v30, %v9457_v59  ;;  %v4211_v17 = vmax.f32 %v3837_v54, 0.0 }
 0x3da   : >> { %v5172_v18 = vmax.f32 %v4450_v35, 0.0 }
 0x3db   : >> { %v5173_v25 = vmax.f32 %v4452_v42, 0.0  ;;  %v4455_v21 = vpop.f32.mrb[88].mxu1 }
 0x3dc   : >> { %v5416_v43 = vadd.f32 %v5415_v4, %v5172_v18  ;;  %v4456_v14 = vadd.f32 %v4455_v21, %v9609_v13  ;;  %v4457_v51 = vpop.f32.mrb[89].mxu1  ;;  %4772 = vmatmul.mubr.f32.gmra.mrb[194].mxu1 %v4210_v60  ;;  %v3847_v60 = vadd.f32 %v9702_v30, %v9466_v46 }
 0x3dd   : >> { %v5437_v29 = vadd.f32 %v5436_v19, %v5173_v25  ;;  %v4458_v0 = vadd.f32 %v4457_v51, %v9613_v34  ;;  %4777 = vmatprep.mubr.f32.mxu1 %v7842_v12  ;;  %v4212_v19 = vmax.f32 %v3842_v15, 0.0 }
 0x3de   : >> { %v5174_v27 = vmax.f32 %v4456_v14, 0.0 }
 0x3df   : >> { %v5175_v16 = vmax.f32 %v4458_v0, 0.0  ;;  %v4461_v22 = vpop.f32.mrb[90].mxu1  ;;  %v4213_v0 = vmax.f32 %v3847_v60, 0.0 }
 0x3e0   : >> { %v5417_v53 = vadd.f32 %v5416_v43, %v5174_v27  ;;  %v4462_v35 = vadd.f32 %v4461_v22, %v9609_v13  ;;  %v4463_v4 = vpop.f32.mrb[91].mxu1  ;;  %4778 = vmatmul.mubr.f32.gmra.mrb[196].mxu1 %v4211_v17 }
 0x3e1   : >> { %v5438_v32 = vadd.f32 %v5437_v29, %v5175_v16  ;;  %v4464_v42 = vadd.f32 %v4463_v4, %v9613_v34  ;;  %4783 = vmatprep.mubr.f32.mxu1 %v7842_v12  ;;  %v3852_v29 = vadd.f32 %v9702_v30, %v9464_v40 }
 0x3e2   : >> { %v5176_v18 = vmax.f32 %v4462_v35, 0.0 }
 0x3e3   : >> { %v5177_v59 = vmax.f32 %v4464_v42, 0.0  ;;  %v4467_v54 = vpop.f32.mrb[92].mxu1  ;;  %v4214_v4 = vmax.f32 %v3852_v29, 0.0 }
 0x3e4   : >> { %v5418_v25 = vadd.f32 %v5417_v53, %v5176_v18  ;;  %v4468_v21 = vadd.f32 %v4467_v54, %v9609_v13  ;;  %v4469_v43 = vpop.f32.mrb[93].mxu1  ;;  %4784 = vmatmul.mubr.f32.gmra.mrb[198].mxu1 %v4212_v19  ;;  %v3862_v54 = vadd.f32 %v9702_v30, %v9471_v9 }
 0x3e5   : >> { %v5439_v14 = vadd.f32 %v5438_v32, %v5177_v59  ;;  %v4470_v51 = vadd.f32 %v4469_v43, %v9613_v34  ;;  %4789 = vmatprep.mubr.f32.mxu1 %v7842_v12  ;;  %v3857_v32 = vadd.f32 %v9702_v30, %v9473_v57 }
 0x3e6   : >> { %v5178_v15 = vmax.f32 %v4468_v21, 0.0 }
 0x3e7   : >> { %v5179_v17 = vmax.f32 %v4470_v51, 0.0  ;;  %v4473_v46 = vpop.f32.mrb[94].mxu1 }
 0x3e8   : >> { %v5419_v27 = vadd.f32 %v5418_v25, %v5178_v15  ;;  %v4474_v16 = vadd.f32 %v4473_v46, %v9609_v13  ;;  %v4475_v22 = vpop.f32.mrb[95].mxu1  ;;  %4790 = vmatmul.mubr.f32.gmra.mrb[200].mxu1 %v4213_v0  ;;  %v4215_v25 = vmax.f32 %v3857_v32, 0.0  ;;  %v4216_v0 = vmax.f32 %v3862_v54, 0.0 }
 0x3e9   : >> { %v5440_v53 = vadd.f32 %v5439_v14, %v5179_v17  ;;  %v4476_v35 = vadd.f32 %v4475_v22, %v9613_v34  ;;  %4795 = vmatprep.mubr.f32.mxu1 %v7842_v12  ;;  %v3867_v15 = vadd.f32 %v9702_v30, %v9480_v1 }
 0x3ea   : >> { %v5180_v42 = vmax.f32 %v4474_v16, 0.0 }
 0x3eb   : >> { %v5181_v40 = vmax.f32 %v4476_v35, 0.0  ;;  %v4479_v19 = vpop.f32.mrb[96].mxu1 }
 0x3ec   : >> { %v9736_v60 = vadd.f32 %v5419_v27, %v5180_v42  ;;  %v4481_v18 = vpop.f32.mrb[97].mxu1  ;;  %4796 = vmatmul.mubr.f32.gmra.mrb[202].mxu1 %v4214_v4  ;;  %v4480_v21 = vadd.f32 %v4479_v19, %v9609_v13  ;;  %v3872_v42 = vadd.f32 %v9702_v30, %v9478_v8 }
 0x3ed   : >> { %v9738_v59 = vadd.f32 %v5440_v53, %v5181_v40  ;;  %4801 = vmatprep.mubr.f32.mxu1 %v7842_v12  ;;  %v4482_v43 = vadd.f32 %v4481_v18, %v9613_v34  ;;  %v4217_v40 = vmax.f32 %v3867_v15, 0.0 }
 0x3ee   : >> { %v5182_v17 = vmax.f32 %v4480_v21, 0.0 }
 0x3ef   : >> { %v4485_v57 = vpop.f32.mrb[98].mxu1  ;;  %v5183_v46 = vmax.f32 %v4482_v43, 0.0 }
 0x3f0   : >> { %v4486_v14 = vadd.f32 %v4485_v57, %v9609_v13  ;;  %v4487_v51 = vpop.f32.mrb[99].mxu1  ;;  %4802 = vmatmul.mubr.f32.gmra.mrb[204].mxu1 %v4215_v25 }
 0x3f1   : >> { %v4488_v29 = vadd.f32 %v4487_v51, %v9613_v34  ;;  %4807 = vmatprep.mubr.f32.mxu1 %v7842_v12  ;;  %v3877_v51 = vadd.f32 %v9702_v30, %v9487_v2 }
 0x3f2   : >> { %v5184_v9 = vmax.f32 %v4486_v14, 0.0  ;;  %v4218_v14 = vmax.f32 %v3872_v42, 0.0 }
 0x3f3   : >> { %v5185_v27 = vmax.f32 %v4488_v29, 0.0  ;;  %v4491_v16 = vpop.f32.mrb[100].mxu1 }
 0x3f4   : >> { %v5448_v22 = vadd.f32 %v5184_v9, %v5182_v17  ;;  %v4492_v53 = vadd.f32 %v4491_v16, %v9609_v13  ;;  %v4493_v35 = vpop.f32.mrb[101].mxu1  ;;  %4808 = vmatmul.mubr.f32.gmra.mrb[206].mxu1 %v4216_v0  ;;  %v3882_v16 = vadd.f32 %v9702_v30, %v9485_v23 }
 0x3f5   : >> { %v5469_v4 = vadd.f32 %v5185_v27, %v5183_v46  ;;  %v4494_v32 = vadd.f32 %v4493_v35, %v9613_v34  ;;  %4813 = vmatprep.mubr.f32.mxu1 %v7842_v12 }
 0x3f6   : >> { %v5186_v1 = vmax.f32 %v4492_v53, 0.0 }
 0x3f7   : >> { %v5187_v19 = vmax.f32 %v4494_v32, 0.0  ;;  %v4497_v18 = vpop.f32.mrb[102].mxu1 }
 0x3f8   : >> { %v5449_v54 = vadd.f32 %v5448_v22, %v5186_v1  ;;  %v4498_v25 = vadd.f32 %v4497_v18, %v9609_v13  ;;  %v4499_v21 = vpop.f32.mrb[103].mxu1  ;;  %4814 = vmatmul.mubr.f32.gmra.mrb[208].mxu1 %v4217_v40  ;;  %v4219_v22 = vmax.f32 %v3877_v51, 0.0  ;;  %v3887_v18 = vadd.f32 %v9702_v30, %v9494_v7 }
 0x3f9   : >> { %v5470_v43 = vadd.f32 %v5469_v4, %v5187_v19  ;;  %v4500_v57 = vadd.f32 %v4499_v21, %v9613_v34  ;;  %4819 = vmatprep.mubr.f32.mxu1 %v7842_v12  ;;  %v4220_v19 = vmax.f32 %v3882_v16, 0.0 }
 0x3fa   : >> { %v5188_v29 = vmax.f32 %v4498_v25, 0.0 }
 0x3fb   : >> { %v5189_v8 = vmax.f32 %v4500_v57, 0.0  ;;  %v4503_v0 = vpop.f32.mrb[104].mxu1 }
 0x3fc   : >> { %v5450_v15 = vadd.f32 %v5449_v54, %v5188_v29  ;;  %v4504_v17 = vadd.f32 %v4503_v0, %v9609_v13  ;;  %v4505_v9 = vpop.f32.mrb[105].mxu1  ;;  %4820 = vmatmul.mubr.f32.gmra.mrb[210].mxu1 %v4218_v14  ;;  %v3892_v29 = vadd.f32 %v9702_v30, %v9492_v11 }
 0x3fd   : >> { %v5471_v46 = vadd.f32 %v5470_v43, %v5189_v8  ;;  %v4506_v27 = vadd.f32 %v4505_v9, %v9613_v34  ;;  %4825 = vmatprep.mubr.f32.mxu1 %v7842_v12  ;;  %v4221_v8 = vmax.f32 %v3887_v18, 0.0 }
 0x3fe   : >> { %v5190_v53 = vmax.f32 %v4504_v17, 0.0 }
 0x3ff   : >> { %v5191_v35 = vmax.f32 %v4506_v27, 0.0  ;;  %v4509_v2 = vpop.f32.mrb[106].mxu1 }
 0x400   : >> { %v5451_v4 = vadd.f32 %v5450_v15, %v5190_v53  ;;  %v4510_v32 = vadd.f32 %v4509_v2, %v9609_v13  ;;  %v4511_v42 = vpop.f32.mrb[107].mxu1  ;;  %4826 = vmatmul.mubr.f32.gmra.mrb[212].mxu1 %v4219_v22  ;;  %v4222_v22 = vmax.f32 %v3892_v29, 0.0  ;;  %v3897_v53 = vadd.f32 %v9702_v30, %v9501_v10 }
 0x401   : >> { %v5472_v40 = vadd.f32 %v5471_v46, %v5191_v35  ;;  %v4512_v1 = vadd.f32 %v4511_v42, %v9613_v34  ;;  %4831 = vmatprep.mubr.f32.mxu1 %v7842_v12  ;;  %v3907_v29 = vadd.f32 %v9702_v30, %v9508_v26 }
 0x402   : >> { %v5192_v54 = vmax.f32 %v4510_v32, 0.0  ;;  %v4223_v18 = vmax.f32 %v3897_v53, 0.0 }
 0x403   : >> { %v5193_v23 = vmax.f32 %v4512_v1, 0.0  ;;  %v4515_v25 = vpop.f32.mrb[108].mxu1 }
 0x404   : >> { %v5452_v21 = vadd.f32 %v5451_v4, %v5192_v54  ;;  %v4516_v43 = vadd.f32 %v4515_v25, %v9609_v13  ;;  %v4517_v57 = vpop.f32.mrb[109].mxu1  ;;  %4832 = vmatmul.mubr.f32.gmra.mrb[214].mxu1 %v4220_v19  ;;  %v3902_v19 = vadd.f32 %v9702_v30, %v9499_v45 }
 0x405   : >> { %v5473_v14 = vadd.f32 %v5472_v40, %v5193_v23  ;;  %v4518_v51 = vadd.f32 %v4517_v57, %v9613_v34  ;;  %4837 = vmatprep.mubr.f32.mxu1 %v7842_v12 }
 0x406   : >> { %v5194_v0 = vmax.f32 %v4516_v43, 0.0 }
 0x407   : >> { %v5195_v15 = vmax.f32 %v4518_v51, 0.0  ;;  %v4521_v7 = vpop.f32.mrb[110].mxu1  ;;  %v4224_v51 = vmax.f32 %v3902_v19, 0.0 }
 0x408   : >> { %v5453_v17 = vadd.f32 %v5452_v21, %v5194_v0  ;;  %v4522_v9 = vadd.f32 %v4521_v7, %v9609_v13  ;;  %v4523_v46 = vpop.f32.mrb[111].mxu1  ;;  %4838 = vmatmul.mubr.f32.gmra.mrb[216].mxu1 %v4221_v8 }
 0x409   : >> { %v5474_v27 = vadd.f32 %v5473_v14, %v5195_v15  ;;  %v4524_v16 = vadd.f32 %v4523_v46, %v9613_v34  ;;  %4843 = vmatprep.mubr.f32.mxu1 %v7842_v12 }
 0x40a   : >> { %v5196_v35 = vmax.f32 %v4522_v9, 0.0 }
 0x40b   : >> { %v5197_v11 = vmax.f32 %v4524_v16, 0.0  ;;  %v4527_v2 = vpop.f32.mrb[112].mxu1  ;;  %v4225_v16 = vmax.f32 %v3907_v29, 0.0 }
 0x40c   : >> { %v5454_v4 = vadd.f32 %v5453_v17, %v5196_v35  ;;  %v4528_v32 = vadd.f32 %v4527_v2, %v9609_v13  ;;  %v4529_v42 = vpop.f32.mrb[113].mxu1  ;;  %4844 = vmatmul.mubr.f32.gmra.mrb[218].mxu1 %v4222_v22 }
 0x40d   : >> { %v5475_v40 = vadd.f32 %v5474_v27, %v5197_v11  ;;  %v4530_v1 = vadd.f32 %v4529_v42, %v9613_v34  ;;  %4849 = vmatprep.mubr.f32.mxu1 %v7842_v12  ;;  %v3912_v27 = vadd.f32 %v9702_v30, %v9506_v39 }
 0x40e   : >> { %v5198_v54 = vmax.f32 %v4528_v32, 0.0 }
 0x40f   : >> { %v5199_v23 = vmax.f32 %v4530_v1, 0.0  ;;  %v4533_v10 = vpop.f32.mrb[114].mxu1  ;;  %v4226_v42 = vmax.f32 %v3912_v27, 0.0 }
 0x410   : >> { %v5455_v25 = vadd.f32 %v5454_v4, %v5198_v54  ;;  %v4534_v21 = vadd.f32 %v4533_v10, %v9609_v13  ;;  %v4535_v43 = vpop.f32.mrb[115].mxu1  ;;  %4850 = vmatmul.mubr.f32.gmra.mrb[220].mxu1 %v4223_v18 }
 0x411   : >> { %v5476_v57 = vadd.f32 %v5475_v40, %v5199_v23  ;;  %v4536_v14 = vadd.f32 %v4535_v43, %v9613_v34  ;;  %4855 = vmatprep.mubr.f32.mxu1 %v7842_v12  ;;  %v3917_v40 = vadd.f32 %v9702_v30, %v9515_v20 }
 0x412   : >> { %v5200_v8 = vmax.f32 %v4534_v21, 0.0  ;;  %v3922_v21 = vadd.f32 %v9702_v30, %v9513_v55 }
 0x413   : >> { %v5201_v45 = vmax.f32 %v4536_v14, 0.0  ;;  %v4539_v0 = vpop.f32.mrb[116].mxu1  ;;  %v4227_v43 = vmax.f32 %v3917_v40, 0.0 }
 0x414   : >> { %v5456_v15 = vadd.f32 %v5455_v25, %v5200_v8  ;;  %v4540_v7 = vadd.f32 %v4539_v0, %v9609_v13  ;;  %v4541_v17 = vpop.f32.mrb[117].mxu1  ;;  %4856 = vmatmul.mubr.f32.gmra.mrb[222].mxu1 %v4224_v51 }
 0x415   : >> { %v5477_v9 = vadd.f32 %v5476_v57, %v5201_v45  ;;  %v4542_v46 = vadd.f32 %v4541_v17, %v9613_v34  ;;  %4861 = vmatprep.mubr.f32.mxu1 %v7842_v12 }
 0x416   : >> { %v5202_v22 = vmax.f32 %v4540_v7, 0.0  ;;  %v3927_v7 = vadd.f32 %v9702_v30, %v9522_v58  ;;  %v3932_v58 = vadd.f32 %v9702_v30, %v9520_v61  ;;  %v3937_v61 = vadd.f32 %v9702_v30, %v9529_v49 }
 0x417   : >> { %v5203_v53 = vmax.f32 %v4542_v46, 0.0  ;;  %v4545_v26 = vpop.f32.mrb[118].mxu1  ;;  %v5421_v46 = vrot.slane %v9736_v60, 4 }
 0x418   : >> { %v5457_v35 = vadd.f32 %v5456_v15, %v5202_v22  ;;  %v4546_v11 = vadd.f32 %v4545_v26, %v9609_v13  ;;  %v4547_v2 = vpop.f32.mrb[119].mxu1  ;;  %4862 = vmatmul.mubr.f32.gmra.mrb[224].mxu1 %v4225_v16  ;;  %v4228_v15 = vmax.f32 %v3922_v21, 0.0 }
 0x419   : >> { %v5478_v4 = vadd.f32 %v5477_v9, %v5203_v53  ;;  %v4548_v32 = vadd.f32 %v4547_v2, %v9613_v34  ;;  %4867 = vmatprep.mubr.f32.mxu1 %v7842_v12  ;;  %v5442_v53 = vrot.slane %v9738_v59, 4 }
 0x41a   : >> { %v5204_v1 = vmax.f32 %v4546_v11, 0.0  ;;  %v4229_v11 = vmax.f32 %v3927_v7, 0.0 }
 0x41b   : >> { %v5205_v39 = vmax.f32 %v4548_v32, 0.0  ;;  %v4551_v19 = vpop.f32.mrb[120].mxu1 }
 0x41c   : >> { %v5458_v18 = vadd.f32 %v5457_v35, %v5204_v1  ;;  %v4552_v54 = vadd.f32 %v4551_v19, %v9609_v13  ;;  %v4553_v23 = vpop.f32.mrb[121].mxu1  ;;  %4868 = vmatmul.mubr.f32.gmra.mrb[226].mxu1 %v4226_v42  ;;  %v5422_v42 = vadd.f32 %v5421_v46, %v9736_v60  ;;  %v5443_v19 = vadd.f32 %v5442_v53, %v9738_v59 }
 0x41d   : >> { %v5479_v10 = vadd.f32 %v5478_v4, %v5205_v39  ;;  %v4554_v25 = vadd.f32 %v4553_v23, %v9613_v34  ;;  %4873 = vmatprep.mubr.f32.mxu1 %v7842_v12  ;;  %v4230_v23 = vmax.f32 %v3932_v58, 0.0 }
 0x41e   : >> { %v5206_v57 = vmax.f32 %v4552_v54, 0.0  ;;  %v5423_v60 = vrot.slane %v5422_v42, 2  ;;  %v5444_v59 = vrot.slane %v5443_v19, 2 }
 0x41f   : >> { %v5207_v14 = vmax.f32 %v4554_v25, 0.0  ;;  %v4557_v20 = vpop.f32.mrb[122].mxu1 }
 0x420   : >> { %v5459_v51 = vadd.f32 %v5458_v18, %v5206_v57  ;;  %v4558_v29 = vadd.f32 %v4557_v20, %v9609_v13  ;;  %v4559_v8 = vpop.f32.mrb[123].mxu1  ;;  %4874 = vmatmul.mubr.f32.gmra.mrb[228].mxu1 %v4227_v43 }
 0x421   : >> { %v5480_v45 = vadd.f32 %v5479_v10, %v5207_v14  ;;  %v4560_v0 = vadd.f32 %v4559_v8, %v9613_v34  ;;  %4879 = vmatprep.mubr.f32.mxu1 %v7842_v12  ;;  %v3942_v14 = vadd.f32 %v9702_v30, %v9527_v38  ;;  %v5445_v38 = vadd.f32 %v5444_v59, %v5443_v19 }
 0x422   : >> { %v5208_v17 = vmax.f32 %v4558_v29, 0.0 }
 0x423   : >> { %v5209_v55 = vmax.f32 %v4560_v0, 0.0  ;;  %v4563_v9 = vpop.f32.mrb[124].mxu1 }
 0x424   : >> { %v5460_v27 = vadd.f32 %v5459_v51, %v5208_v17  ;;  %v4564_v16 = vadd.f32 %v4563_v9, %v9609_v13  ;;  %v4565_v22 = vpop.f32.mrb[125].mxu1  ;;  %4880 = vmatmul.mubr.f32.gmra.mrb[230].mxu1 %v4228_v15  ;;  %v4231_v51 = vmax.f32 %v3937_v61, 0.0  ;;  %v5424_v15 = vadd.f32 %v5423_v60, %v5422_v42 }
 0x425   : >> { %v5481_v26 = vadd.f32 %v5480_v45, %v5209_v55  ;;  %v4566_v35 = vadd.f32 %v4565_v22, %v9613_v34  ;;  %4885 = vmatprep.mubr.f32.mxu1 %v7842_v12  ;;  %v4232_v9 = vmax.f32 %v3942_v14, 0.0 }
 0x426   : >> { %v5210_v2 = vmax.f32 %v4564_v16, 0.0  ;;  %v3947_v16 = vadd.f32 %v9702_v30, %v9536_v47  ;;  %v3952_v47 = vadd.f32 %v9702_v30, %v9534_v6 }
 0x427   : >> { %v5211_v4 = vmax.f32 %v4566_v35, 0.0  ;;  %v4569_v32 = vpop.f32.mrb[126].mxu1 }
 0x428   : >> { %v5461_v40 = vadd.f32 %v5460_v27, %v5210_v2  ;;  %v4570_v1 = vadd.f32 %v4569_v32, %v9609_v13  ;;  %v4571_v39 = vpop.f32.mrb[127].mxu1  ;;  %4886 = vmatmul.mubr.f32.gmra.mrb[232].mxu1 %v4229_v11  ;;  %v4234_v6 = vmax.f32 %v3952_v47, 0.0 }
 0x429   : >> { %v5482_v18 = vadd.f32 %v5481_v26, %v5211_v4  ;;  %v4572_v54 = vadd.f32 %v4571_v39, %v9613_v34  ;;  %4891 = vmatprep.mubr.f32.mxu1 %v7842_v12  ;;  %v5425_v4 = vrot.slane %v5424_v15, 1  ;;  %v5446_v39 = vrot.slane %v5445_v38, 1 }
 0x42a   : >> { %v5212_v10 = vmax.f32 %v4570_v1, 0.0 }
 0x42b   : >> { %v5213_v25 = vmax.f32 %v4572_v54, 0.0  ;;  %v4575_v21 = vpop.f32.mrb[128].mxu1 }
 0x42c   : >> { %v5462_v43 = vadd.f32 %v5461_v40, %v5212_v10  ;;  %v4577_v57 = vpop.f32.mrb[129].mxu1  ;;  %4892 = vmatmul.mubr.f32.gmra.mrb[234].mxu1 %v4230_v23  ;;  %v4576_v8 = vadd.f32 %v4575_v21, %v9609_v13  ;;  %v4233_v23 = vmax.f32 %v3947_v16, 0.0 }
 0x42d   : >> { %v5483_v20 = vadd.f32 %v5482_v18, %v5213_v25  ;;  %4897 = vmatprep.mubr.f32.mxu1 %v7842_v12  ;;  %v4578_v49 = vadd.f32 %v4577_v57, %v9613_v34 }
 0x42e   : >> { %v5463_v29 = vrot.slane %v5462_v43, 4  ;;  %v5214_v53 = vmax.f32 %v4576_v8, 0.0 }
 0x42f   : >> { %v5484_v45 = vrot.slane %v5483_v20, 4  ;;  %v4581_v0 = vpop.f32.mrb[130].mxu1  ;;  %v5215_v58 = vmax.f32 %v4578_v49, 0.0  ;;  %v3957_v49 = vadd.f32 %v9702_v30, %v9543_v52  ;;  %v3962_v52 = vadd.f32 %v9702_v30, %v9541_v5 }
 0x430   : >> { %v5464_v7 = vadd.f32 %v5463_v29, %v5462_v43  ;;  %v4582_v17 = vadd.f32 %v4581_v0, %v9609_v13  ;;  %v4583_v55 = vpop.f32.mrb[131].mxu1  ;;  %4898 = vmatmul.mubr.f32.gmra.mrb[236].mxu1 %v4231_v51  ;;  %v5426_v43 = vadd.f32 %v5425_v4, %v5424_v15  ;;  %v5447_v51 = vadd.f32 %v5446_v39, %v5445_v38 }
 0x431   : >> { %v5485_v46 = vadd.f32 %v5484_v45, %v5483_v20  ;;  %v4584_v27 = vadd.f32 %v4583_v55, %v9613_v34  ;;  %4903 = vmatprep.mubr.f32.mxu1 %v7842_v12 }
 0x432   : >> { %v5465_v22 = vrot.slane %v5464_v7, 2  ;;  %v5216_v26 = vmax.f32 %v4582_v17, 0.0 }
 0x433   : >> { %v5486_v35 = vrot.slane %v5485_v46, 2  ;;  %v5217_v11 = vmax.f32 %v4584_v27, 0.0  ;;  %v4587_v2 = vpop.f32.mrb[132].mxu1 }
 0x434   : >> { %v5466_v32 = vadd.f32 %v5465_v22, %v5464_v7  ;;  %v5490_v42 = vadd.f32 %v5216_v26, %v5214_v53  ;;  %v4588_v40 = vadd.f32 %v4587_v2, %v9609_v13  ;;  %v4589_v1 = vpop.f32.mrb[133].mxu1  ;;  %4904 = vmatmul.mubr.f32.gmra.mrb[238].mxu1 %v4232_v9  ;;  %v4235_v22 = vmax.f32 %v3957_v49, 0.0 }
 0x435   : >> { %v5487_v19 = vadd.f32 %v5486_v35, %v5485_v46  ;;  %v5511_v18 = vadd.f32 %v5217_v11, %v5215_v58  ;;  %v4590_v54 = vadd.f32 %v4589_v1, %v9613_v34  ;;  %4909 = vmatprep.mubr.f32.mxu1 %v7842_v12 }
 0x436   : >> { %v5467_v61 = vrot.slane %v5466_v32, 1  ;;  %v5218_v10 = vmax.f32 %v4588_v40, 0.0  ;;  %v3967_v40 = vadd.f32 %v9702_v30, %v9550_v31 }
 0x437   : >> { %v5488_v25 = vrot.slane %v5487_v19, 1  ;;  %v5219_v21 = vmax.f32 %v4590_v54, 0.0  ;;  %v4593_v60 = vpop.f32.mrb[134].mxu1 }
 0x438   : >> { %v5468_v57 = vadd.f32 %v5467_v61, %v5466_v32  ;;  %v5491_v14 = vadd.f32 %v5490_v42, %v5218_v10  ;;  %v4594_v59 = vadd.f32 %v4593_v60, %v9609_v13  ;;  %v4595_v20 = vpop.f32.mrb[135].mxu1  ;;  %4910 = vmatmul.mubr.f32.gmra.mrb[240].mxu1 %v4233_v23  ;;  %v4236_v42 = vmax.f32 %v3962_v52, 0.0 }
 0x439   : >> { %v5489_v29 = vadd.f32 %v5488_v25, %v5487_v19  ;;  %v5512_v8 = vadd.f32 %v5511_v18, %v5219_v21  ;;  %v4596_v45 = vadd.f32 %v4595_v20, %v9613_v34  ;;  %4915 = vmatprep.mubr.f32.mxu1 %v7842_v12  ;;  %v3972_v61 = vadd.f32 %v9702_v30, %v9548_v28 }
 0x43a   : >> { %v9845_v0 = vsel %vm5758_vm4, %v5468_v57, %v5426_v43  ;;  %v5220_v15 = vmax.f32 %v4594_v59, 0.0  ;;  %v4237_v10 = vmax.f32 %v3967_v40, 0.0 }
 0x43b   : >> { %v9848_v7 = vsel %vm5758_vm4, %v5489_v29, %v5447_v51  ;;  %v5221_v17 = vmax.f32 %v4596_v45, 0.0  ;;  %v4599_v55 = vpop.f32.mrb[136].mxu1  ;;  %v4238_v20 = vmax.f32 %v3972_v61, 0.0  ;;  %v3977_v51 = vadd.f32 %v9702_v30, %v9557_v41 }
 0x43c   : >> { %v5492_v9 = vadd.f32 %v5491_v14, %v5220_v15  ;;  %v4600_v38 = vadd.f32 %v4599_v55, %v9609_v13  ;;  %v4601_v46 = vpop.f32.mrb[137].mxu1  ;;  %4916 = vmatmul.mubr.f32.gmra.mrb[242].mxu1 %v4234_v6  ;;  %v3982_v55 = vadd.f32 %v9702_v30, %v9555_v24 }
 0x43d   : >> { %v5513_v27 = vadd.f32 %v5512_v8, %v5221_v17  ;;  %v4602_v16 = vadd.f32 %v4601_v46, %v9613_v34  ;;  %4921 = vmatprep.mubr.f32.mxu1 %v7842_v12 }
 0x43e   : >> { %v5222_v53 = vmax.f32 %v4600_v38, 0.0 }
 0x43f   : >> { %v5223_v26 = vmax.f32 %v4602_v16, 0.0  ;;  %v4605_v35 = vpop.f32.mrb[138].mxu1 }
 0x440   : >> { %v5493_v58 = vadd.f32 %v5492_v9, %v5222_v53  ;;  %v4606_v11 = vadd.f32 %v4605_v35, %v9609_v13  ;;  %v4607_v2 = vpop.f32.mrb[139].mxu1  ;;  %4922 = vmatmul.mubr.f32.gmra.mrb[244].mxu1 %v4235_v22  ;;  %v4239_v9 = vmax.f32 %v3977_v51, 0.0  ;;  %v3987_v35 = vadd.f32 %v9702_v30, %v9564_v37  ;;  %v10442_v51 = vld [vmem:[#allocation8_spill] sm:$0xff] }
 0x441   : >> { %v5514_v4 = vadd.f32 %v5513_v27, %v5223_v26  ;;  %v4608_v32 = vadd.f32 %v4607_v2, %v9613_v34  ;;  %4927 = vmatprep.mubr.f32.mxu1 %v7842_v12  ;;  %v4240_v26 = vmax.f32 %v3982_v55, 0.0 }
 0x442   : >> { %v5224_v1 = vmax.f32 %v4606_v11, 0.0 }
 0x443   : >> { %v5225_v5 = vmax.f32 %v4608_v32, 0.0  ;;  %v4611_v39 = vpop.f32.mrb[140].mxu1 }
 0x444   : >> { %v5494_v19 = vadd.f32 %v5493_v58, %v5224_v1  ;;  %v4612_v18 = vadd.f32 %v4611_v39, %v9609_v13  ;;  %v4613_v54 = vpop.f32.mrb[141].mxu1  ;;  %4928 = vmatmul.mubr.f32.gmra.mrb[246].mxu1 %v4236_v42  ;;  %v3992_v1 = vadd.f32 %v9702_v30, %v9562_v33 }
 0x445   : >> { %v5515_v47 = vadd.f32 %v5514_v4, %v5225_v5  ;;  %v4614_v23 = vadd.f32 %v4613_v54, %v9613_v34  ;;  %4933 = vmatprep.mubr.f32.mxu1 %v7842_v12  ;;  %v4241_v5 = vmax.f32 %v3987_v35, 0.0 }
 0x446   : >> { %v5226_v25 = vmax.f32 %v4612_v18, 0.0 }
 0x447   : >> { %v5227_v21 = vmax.f32 %v4614_v23, 0.0  ;;  %v4617_v31 = vpop.f32.mrb[142].mxu1 }
 0x448   : >> { %v5495_v60 = vadd.f32 %v5494_v19, %v5226_v25  ;;  %v4618_v43 = vadd.f32 %v4617_v31, %v9609_v13  ;;  %v4619_v57 = vpop.f32.mrb[143].mxu1  ;;  %4934 = vmatmul.mubr.f32.gmra.mrb[248].mxu1 %v4237_v10  ;;  %v4242_v10 = vmax.f32 %v3992_v1, 0.0  ;;  %v10441_v25 = vld [vmem:[#allocation9_spill] sm:$0xff] }
 0x449   : >> { %v5516_v14 = vadd.f32 %v5515_v47, %v5227_v21  ;;  %v4620_v59 = vadd.f32 %v4619_v57, %v9613_v34  ;;  %4939 = vmatprep.mubr.f32.mxu1 %v7842_v12  ;;  %v3997_v21 = vadd.f32 %v9702_v30, %v10441_v25 }
 0x44a   : >> { %v5228_v29 = vmax.f32 %v4618_v43, 0.0 }
 0x44b   : >> { %v5229_v28 = vmax.f32 %v4620_v59, 0.0  ;;  %v4623_v8 = vpop.f32.mrb[144].mxu1 }
 0x44c   : >> { %v5496_v45 = vadd.f32 %v5495_v60, %v5228_v29  ;;  %v4624_v6 = vadd.f32 %v4623_v8, %v9609_v13  ;;  %v4625_v49 = vpop.f32.mrb[145].mxu1  ;;  %4940 = vmatmul.mubr.f32.gmra.mrb[250].mxu1 %v4238_v20  ;;  %v4002_v29 = vadd.f32 %v9702_v30, %v10442_v51 }
 0x44d   : >> { %v5517_v15 = vadd.f32 %v5516_v14, %v5229_v28  ;;  %v4626_v17 = vadd.f32 %v4625_v49, %v9613_v34  ;;  %4945 = vmatprep.mubr.f32.mxu1 %v7842_v12  ;;  %v4243_v28 = vmax.f32 %v3997_v21, 0.0  ;;  %v10446_v21 = vld [vmem:[#allocation12_spill] sm:$0xff] }
 0x44e   : >> { %v5230_v38 = vmax.f32 %v4624_v6, 0.0 }
 0x44f   : >> { %v5231_v46 = vmax.f32 %v4626_v17, 0.0  ;;  %v4629_v41 = vpop.f32.mrb[146].mxu1 }
 0x450   : >> { %v5497_v27 = vadd.f32 %v5496_v45, %v5230_v38  ;;  %v4630_v16 = vadd.f32 %v4629_v41, %v9609_v13  ;;  %v4631_v52 = vpop.f32.mrb[147].mxu1  ;;  %4946 = vmatmul.mubr.f32.gmra.mrb[252].mxu1 %v4239_v9  ;;  %v4244_v38 = vmax.f32 %v4002_v29, 0.0 }
 0x451   : >> { %v5518_v22 = vadd.f32 %v5517_v15, %v5231_v46  ;;  %v4632_v53 = vadd.f32 %v4631_v52, %v9613_v34  ;;  %4951 = vmatprep.mubr.f32.mxu1 %v7842_v12  ;;  %v10443_v46 = vld [vmem:[#allocation11_spill] sm:$0xff] }
 0x452   : >> { %v5232_v58 = vmax.f32 %v4630_v16, 0.0  ;;  %v4007_v41 = vadd.f32 %v9702_v30, %v10443_v46 }
 0x453   : >> { %v5233_v24 = vmax.f32 %v4632_v53, 0.0  ;;  %v4635_v11 = vpop.f32.mrb[148].mxu1 }
 0x454   : >> { %v5498_v2 = vadd.f32 %v5497_v27, %v5232_v58  ;;  %v4636_v4 = vadd.f32 %v4635_v11, %v9609_v13  ;;  %v4637_v32 = vpop.f32.mrb[149].mxu1  ;;  %4952 = vmatmul.mubr.f32.gmra.mrb[254].mxu1 %v4240_v26 }
 0x455   : >> { %v5519_v42 = vadd.f32 %v5518_v22, %v5233_v24  ;;  %v4638_v40 = vadd.f32 %v4637_v32, %v9613_v34  ;;  %4957 = vmatprep.mubr.f32.mxu1 %v7842_v12  ;;  %v10444_v24 = vld [vmem:[#allocation10_spill] sm:$0xff] }
 0x456   : >> { %v5234_v39 = vmax.f32 %v4636_v4, 0.0  ;;  %v4012_v11 = vadd.f32 %v9702_v30, %v10444_v24  ;;  %v10448_v24 = vld [vmem:[#allocation14_spill] sm:$0xff] }
 0x457   : >> { %v5235_v19 = vmax.f32 %v4638_v40, 0.0  ;;  %v4641_v37 = vpop.f32.mrb[150].mxu1 }
 0x458   : >> { %v5499_v18 = vadd.f32 %v5498_v2, %v5234_v39  ;;  %v4642_v54 = vadd.f32 %v4641_v37, %v9609_v13  ;;  %v4643_v47 = vpop.f32.mrb[151].mxu1  ;;  %4958 = vmatmul.mubr.f32.gmra.mrb[0].mxu1 %v4241_v5  ;;  %v4245_v2 = vmax.f32 %v4007_v41, 0.0  ;;  %v4246_v37 = vmax.f32 %v4012_v11, 0.0 }
 0x459   : >> { %v5520_v23 = vadd.f32 %v5519_v42, %v5235_v19  ;;  %v4644_v61 = vadd.f32 %v4643_v47, %v9613_v34  ;;  %4963 = vmatprep.mubr.f32.mxu1 %v7842_v12 }
 0x45a   : >> { %v5236_v31 = vmax.f32 %v4642_v54, 0.0 }
 0x45b   : >> { %v5237_v33 = vmax.f32 %v4644_v61, 0.0  ;;  %v4647_v60 = vpop.f32.mrb[152].mxu1 }
 0x45c   : >> { %v5500_v43 = vadd.f32 %v5499_v18, %v5236_v31  ;;  %v4648_v57 = vadd.f32 %v4647_v60, %v9609_v13  ;;  %v4649_v14 = vpop.f32.mrb[153].mxu1  ;;  %4964 = vmatmul.mubr.f32.gmra.mrb[2].mxu1 %v4242_v10  ;;  %v10445_v18 = vld [vmem:[#allocation13_spill] sm:$0xff]  ;;  %v4022_v31 = vadd.f32 %v9702_v30, %v10446_v21 }
 0x45d   : >> { %v5521_v59 = vadd.f32 %v5520_v23, %v5237_v33  ;;  %v4650_v20 = vadd.f32 %v4649_v14, %v9613_v34  ;;  %4969 = vmatprep.mubr.f32.mxu1 %v7842_v12  ;;  %v4017_v54 = vadd.f32 %v9702_v30, %v10445_v18 }
 0x45e   : >> { %v5238_v8 = vmax.f32 %v4648_v57, 0.0 }
 0x45f   : >> { %v5239_v45 = vmax.f32 %v4650_v20, 0.0  ;;  %v4653_v6 = vpop.f32.mrb[154].mxu1  ;;  %v4247_v60 = vmax.f32 %v4017_v54, 0.0 }
 0x460   : >> { %v5501_v49 = vadd.f32 %v5500_v43, %v5238_v8  ;;  %v4654_v15 = vadd.f32 %v4653_v6, %v9609_v13  ;;  %v4655_v17 = vpop.f32.mrb[155].mxu1  ;;  %4970 = vmatmul.mubr.f32.gmra.mrb[4].mxu1 %v4243_v28  ;;  %v4248_v8 = vmax.f32 %v4022_v31, 0.0 }
 0x461   : >> { %v5522_v55 = vadd.f32 %v5521_v59, %v5239_v45  ;;  %v4656_v9 = vadd.f32 %v4655_v17, %v9613_v34  ;;  %4975 = vmatprep.mubr.f32.mxu1 %v7842_v12 }
 0x462   : >> { %v5240_v27 = vmax.f32 %v4654_v15, 0.0 }
 0x463   : >> { %v5241_v16 = vmax.f32 %v4656_v9, 0.0  ;;  %v4659_v52 = vpop.f32.mrb[156].mxu1 }
 0x464   : >> { %v5502_v22 = vadd.f32 %v5501_v49, %v5240_v27  ;;  %v4660_v53 = vadd.f32 %v4659_v52, %v9609_v13  ;;  %v4661_v26 = vpop.f32.mrb[157].mxu1  ;;  %4976 = vmatmul.mubr.f32.gmra.mrb[6].mxu1 %v4244_v38  ;;  %v10447_v49 = vld [vmem:[#allocation15_spill] sm:$0xff] }
 0x465   : >> { %v5523_v35 = vadd.f32 %v5522_v55, %v5241_v16  ;;  %v4662_v58 = vadd.f32 %v4661_v26, %v9613_v34  ;;  %4981 = vmatprep.mubr.f32.mxu1 %v7842_v12  ;;  %v4027_v15 = vadd.f32 %v9702_v30, %v10447_v49  ;;  %v9926_v30 = vld [vmem:[%s10401_s6] ss:$0 sm:$0xff] }
 0x466   : >> { %v5242_v4 = vmax.f32 %v4660_v53, 0.0  ;;  %v4032_v11 = vadd.f32 %v9926_v30, %v10448_v24 }
 0x467   : >> { %v5243_v32 = vmax.f32 %v4662_v58, 0.0  ;;  %v4665_v42 = vpop.f32.mrb[158].mxu1 }
 0x468   : >> { %v5503_v40 = vadd.f32 %v5502_v22, %v5242_v4  ;;  %v4666_v1 = vadd.f32 %v4665_v42, %v9609_v13  ;;  %v4667_v5 = vpop.f32.mrb[159].mxu1  ;;  %4982 = vmatmul.mubr.f32.gmra.mrb[8].mxu1 %v4245_v2  ;;  %v4249_v2 = vmax.f32 %v4027_v15, 0.0 }
 0x469   : >> { %v5524_v39 = vadd.f32 %v5523_v35, %v5243_v32  ;;  %v4668_v19 = vadd.f32 %v4667_v5, %v9613_v34  ;;  %4987 = vmatprep.mubr.f32.mxu1 %v7842_v12 }
 0x46a   : >> { %v5244_v47 = vmax.f32 %v4666_v1, 0.0 }
 0x46b   : >> { %v5245_v23 = vmax.f32 %v4668_v19, 0.0  ;;  %v4671_v61 = vpop.f32.mrb[160].mxu1 }
 0x46c   : >> { %v5504_v10 = vadd.f32 %v5503_v40, %v5244_v47  ;;  %v4673_v25 = vpop.f32.mrb[161].mxu1  ;;  %4988 = vmatmul.mubr.f32.gmra.mrb[10].mxu1 %v4246_v37  ;;  %v4672_v57 = vadd.f32 %v4671_v61, %v9609_v13  ;;  %v10449_v61 = vld [vmem:[#allocation17_spill] sm:$0xff] }
 0x46d   : >> { %v5525_v33 = vadd.f32 %v5524_v39, %v5245_v23  ;;  %4993 = vmatprep.mubr.f32.mxu1 %v7842_v12  ;;  %v4674_v59 = vadd.f32 %v4673_v25, %v9613_v34  ;;  %v4250_v23 = vmax.f32 %v4032_v11, 0.0 }
 0x46e   : >> { %v5505_v43 = vrot.slane %v5504_v10, 4  ;;  %v5246_v55 = vmax.f32 %v4672_v57, 0.0 }
 0x46f   : >> { %v5526_v14 = vrot.slane %v5525_v33, 4  ;;  %v4677_v20 = vpop.f32.mrb[162].mxu1  ;;  %v5247_v46 = vmax.f32 %v4674_v59, 0.0 }
 0x470   : >> { %v5506_v51 = vadd.f32 %v5505_v43, %v5504_v10  ;;  %v4678_v29 = vadd.f32 %v4677_v20, %v9609_v13  ;;  %v4679_v28 = vpop.f32.mrb[163].mxu1  ;;  %4994 = vmatmul.mubr.f32.gmra.mrb[12].mxu1 %v4247_v60  ;;  %v4037_v10 = vadd.f32 %v9926_v30, %v10449_v61 }
 0x471   : >> { %v5527_v45 = vadd.f32 %v5526_v14, %v5525_v33  ;;  %v4680_v6 = vadd.f32 %v4679_v28, %v9613_v34  ;;  %4999 = vmatprep.mubr.f32.mxu1 %v7842_v12 }
 0x472   : >> { %v5507_v17 = vrot.slane %v5506_v51, 2  ;;  %v5248_v9 = vmax.f32 %v4678_v29, 0.0  ;;  %v4251_v29 = vmax.f32 %v4037_v10, 0.0 }
 0x473   : >> { %v5528_v38 = vrot.slane %v5527_v45, 2  ;;  %v5249_v41 = vmax.f32 %v4680_v6, 0.0  ;;  %v4683_v27 = vpop.f32.mrb[164].mxu1 }
 0x474   : >> { %v5508_v16 = vadd.f32 %v5507_v17, %v5506_v51  ;;  %v5532_v52 = vadd.f32 %v5248_v9, %v5246_v55  ;;  %v4684_v22 = vadd.f32 %v4683_v27, %v9609_v13  ;;  %v4685_v53 = vpop.f32.mrb[165].mxu1  ;;  %5000 = vmatmul.mubr.f32.gmra.mrb[14].mxu1 %v4248_v8  ;;  %v10450_v51 = vld [vmem:[#allocation16_spill] sm:$0xff]  ;;  %v10451_v9 = vld [vmem:[#allocation19_spill] sm:$0xff] }
 0x475   : >> { %v5529_v26 = vadd.f32 %v5528_v38, %v5527_v45  ;;  %v5553_v35 = vadd.f32 %v5249_v41, %v5247_v46  ;;  %v4686_v58 = vadd.f32 %v4685_v53, %v9613_v34  ;;  %5005 = vmatprep.mubr.f32.mxu1 %v7842_v12  ;;  %v4047_v38 = vadd.f32 %v9926_v30, %v10451_v9 }
 0x476   : >> { %v5509_v4 = vrot.slane %v5508_v16, 1  ;;  %v5250_v32 = vmax.f32 %v4684_v22, 0.0 }
 0x477   : >> { %v5530_v42 = vrot.slane %v5529_v26, 1  ;;  %v5251_v40 = vmax.f32 %v4686_v58, 0.0  ;;  %v4689_v1 = vpop.f32.mrb[166].mxu1  ;;  %v4253_v24 = vmax.f32 %v4047_v38, 0.0 }
 0x478   : >> { %v5510_v5 = vadd.f32 %v5509_v4, %v5508_v16  ;;  %v5533_v39 = vadd.f32 %v5532_v52, %v5250_v32  ;;  %v4690_v19 = vadd.f32 %v4689_v1, %v9609_v13  ;;  %v4691_v37 = vpop.f32.mrb[167].mxu1  ;;  %5006 = vmatmul.mubr.f32.gmra.mrb[16].mxu1 %v4249_v2 }
 0x479   : >> { %v5531_v18 = vadd.f32 %v5530_v42, %v5529_v26  ;;  %v5554_v54 = vadd.f32 %v5553_v35, %v5251_v40  ;;  %v4692_v47 = vadd.f32 %v4691_v37, %v9613_v34  ;;  %5011 = vmatprep.mubr.f32.mxu1 %v7842_v12  ;;  %v10452_v35 = vld [vmem:[#allocation18_spill] sm:$0xff] }
 0x47a   : >> { %v9937_v25 = vsel %vm5760_vm5, %v5510_v5, %v9845_v0  ;;  %v5252_v21 = vmax.f32 %v4690_v19, 0.0  ;;  %v4042_v0 = vadd.f32 %v9926_v30, %v10450_v51  ;;  %v4052_v58 = vadd.f32 %v9926_v30, %v10452_v35  ;;  %v10453_v19 = vld [vmem:[#allocation21_spill] sm:$0xff] }
 0x47b   : >> { %v9941_v31 = vsel %vm5760_vm5, %v5531_v18, %v9848_v7  ;;  %v5253_v33 = vmax.f32 %v4692_v47, 0.0  ;;  %v4695_v60 = vpop.f32.mrb[168].mxu1  ;;  %v4057_v37 = vadd.f32 %v9926_v30, %v10453_v19 }
 0x47c   : >> { %v5534_v43 = vadd.f32 %v5533_v39, %v5252_v21  ;;  %v4696_v57 = vadd.f32 %v4695_v60, %v9609_v13  ;;  %v4697_v14 = vpop.f32.mrb[169].mxu1  ;;  %5012 = vmatmul.mubr.f32.gmra.mrb[18].mxu1 %v4250_v23  ;;  %v4252_v55 = vmax.f32 %v4042_v0, 0.0  ;;  %v4254_v39 = vmax.f32 %v4052_v58, 0.0  ;;  %v10454_v60 = vld [vmem:[#allocation20_spill] sm:$0xff] }
 0x47d   : >> { %v5555_v59 = vadd.f32 %v5554_v54, %v5253_v33  ;;  %v4698_v20 = vadd.f32 %v4697_v14, %v9613_v34  ;;  %5017 = vmatprep.mubr.f32.mxu1 %v7842_v12 }
 0x47e   : >> { %v5254_v28 = vmax.f32 %v4696_v57, 0.0  ;;  %v4255_v57 = vmax.f32 %v4057_v37, 0.0  ;;  %v10456_v37 = vld [vmem:[#allocation23_spill] sm:$0xff] }
 0x47f   : >> { %v5255_v8 = vmax.f32 %v4698_v20, 0.0  ;;  %v4701_v7 = vpop.f32.mrb[170].mxu1 }
 0x480   : >> { %v5535_v45 = vadd.f32 %v5534_v43, %v5254_v28  ;;  %v4702_v6 = vadd.f32 %v4701_v7, %v9609_v13  ;;  %v4703_v49 = vpop.f32.mrb[171].mxu1  ;;  %5018 = vmatmul.mubr.f32.gmra.mrb[20].mxu1 %v4251_v29  ;;  %v4062_v43 = vadd.f32 %v9926_v30, %v10454_v60 }
 0x481   : >> { %v5556_v15 = vadd.f32 %v5555_v59, %v5255_v8  ;;  %v4704_v17 = vadd.f32 %v4703_v49, %v9613_v34  ;;  %5023 = vmatprep.mubr.f32.mxu1 %v7842_v12 }
 0x482   : >> { %v5256_v46 = vmax.f32 %v4702_v6, 0.0  ;;  %v4256_v7 = vmax.f32 %v4062_v43, 0.0 }
 0x483   : >> { %v5257_v41 = vmax.f32 %v4704_v17, 0.0  ;;  %v4707_v27 = vpop.f32.mrb[172].mxu1 }
 0x484   : >> { %v5536_v16 = vadd.f32 %v5535_v45, %v5256_v46  ;;  %v4708_v52 = vadd.f32 %v4707_v27, %v9609_v13  ;;  %v4709_v22 = vpop.f32.mrb[173].mxu1  ;;  %5024 = vmatmul.mubr.f32.gmra.mrb[22].mxu1 %v4252_v55  ;;  %v4067_v45 = vadd.f32 %v9926_v30, %v9631_v44 }
 0x485   : >> { %v5557_v53 = vadd.f32 %v5556_v15, %v5257_v41  ;;  %v4710_v26 = vadd.f32 %v4709_v22, %v9613_v34  ;;  %5029 = vmatprep.mubr.f32.mxu1 %v7842_v12  ;;  %v10455_v41 = vld [vmem:[#allocation22_spill] sm:$0xff] }
 0x486   : >> { %v5258_v11 = vmax.f32 %v4708_v52, 0.0  ;;  %v4072_v27 = vadd.f32 %v9926_v30, %v10455_v41 }
 0x487   : >> { %v5259_v2 = vmax.f32 %v4710_v26, 0.0  ;;  %v4713_v4 = vpop.f32.mrb[174].mxu1 }
 0x488   : >> { %v5537_v32 = vadd.f32 %v5536_v16, %v5258_v11  ;;  %v4714_v42 = vadd.f32 %v4713_v4, %v9609_v13  ;;  %v4715_v40 = vpop.f32.mrb[175].mxu1  ;;  %5030 = vmatmul.mubr.f32.gmra.mrb[24].mxu1 %v4253_v24  ;;  %v4257_v16 = vmax.f32 %v4067_v45, 0.0  ;;  %v4258_v11 = vmax.f32 %v4072_v27, 0.0 }
 0x489   : >> { %v5558_v1 = vadd.f32 %v5557_v53, %v5259_v2  ;;  %v4716_v5 = vadd.f32 %v4715_v40, %v9613_v34  ;;  %5035 = vmatprep.mubr.f32.mxu1 %v7842_v12  ;;  %v4077_v2 = vadd.f32 %v9926_v30, %v9640_v56  ;;  %v4097_v27 = vadd.f32 %v9926_v30, %v9658_v63 }
 0x48a   : >> { %v5260_v18 = vmax.f32 %v4714_v42, 0.0 }
 0x48b   : >> { %v5261_v54 = vmax.f32 %v4716_v5, 0.0  ;;  %v4719_v47 = vpop.f32.mrb[176].mxu1 }
 0x48c   : >> { %v5538_v23 = vadd.f32 %v5537_v32, %v5260_v18  ;;  %v4720_v61 = vadd.f32 %v4719_v47, %v9609_v13  ;;  %v4721_v10 = vpop.f32.mrb[177].mxu1  ;;  %5036 = vmatmul.mubr.f32.gmra.mrb[26].mxu1 %v4254_v39  ;;  %v4082_v18 = vadd.f32 %v9926_v30, %v10456_v37  ;;  %v4107_v37 = vadd.f32 %v9926_v30, %v9667_v50  ;;  %v10459_v50 = vld [vmem:[#allocation26_spill] sm:$0xff] }
 0x48d   : >> { %v5559_v21 = vadd.f32 %v5558_v1, %v5261_v54  ;;  %v4722_v33 = vadd.f32 %v4721_v10, %v9613_v34  ;;  %5041 = vmatprep.mubr.f32.mxu1 %v7842_v12  ;;  %v4259_v54 = vmax.f32 %v4077_v2, 0.0 }
 0x48e   : >> { %v5262_v14 = vmax.f32 %v4720_v61, 0.0  ;;  %v4260_v43 = vmax.f32 %v4082_v18, 0.0 }
 0x48f   : >> { %v5263_v59 = vmax.f32 %v4722_v33, 0.0  ;;  %v4725_v20 = vpop.f32.mrb[178].mxu1 }
 0x490   : >> { %v5539_v51 = vadd.f32 %v5538_v23, %v5262_v14  ;;  %v4726_v0 = vadd.f32 %v4725_v20, %v9609_v13  ;;  %v4727_v29 = vpop.f32.mrb[179].mxu1  ;;  %5042 = vmatmul.mubr.f32.gmra.mrb[28].mxu1 %v4255_v57  ;;  %v4087_v57 = vadd.f32 %v9926_v30, %v9649_v62 }
 0x491   : >> { %v5560_v28 = vadd.f32 %v5559_v21, %v5263_v59  ;;  %v4728_v8 = vadd.f32 %v4727_v29, %v9613_v34  ;;  %5047 = vmatprep.mubr.f32.mxu1 %v7842_v12 }
 0x492   : >> { %v5264_v6 = vmax.f32 %v4726_v0, 0.0 }
 0x493   : >> { %v5265_v49 = vmax.f32 %v4728_v8, 0.0  ;;  %v4731_v15 = vpop.f32.mrb[180].mxu1 }
 0x494   : >> { %v5540_v17 = vadd.f32 %v5539_v51, %v5264_v6  ;;  %v4732_v55 = vadd.f32 %v4731_v15, %v9609_v13  ;;  %v4733_v9 = vpop.f32.mrb[181].mxu1  ;;  %5048 = vmatmul.mubr.f32.gmra.mrb[30].mxu1 %v4256_v7  ;;  %v10457_v7 = vld [vmem:[#allocation24_spill] sm:$0xff]  ;;  %v4261_v6 = vmax.f32 %v4087_v57, 0.0 }
 0x495   : >> { %v5561_v38 = vadd.f32 %v5560_v28, %v5265_v49  ;;  %v4734_v46 = vadd.f32 %v4733_v9, %v9613_v34  ;;  %5053 = vmatprep.mubr.f32.mxu1 %v7842_v12  ;;  %v4092_v45 = vadd.f32 %v9926_v30, %v10457_v7 }
 0x496   : >> { %v5266_v52 = vmax.f32 %v4732_v55, 0.0 }
 0x497   : >> { %v5267_v22 = vmax.f32 %v4734_v46, 0.0  ;;  %v4737_v44 = vpop.f32.mrb[182].mxu1  ;;  %v4262_v41 = vmax.f32 %v4092_v45, 0.0 }
 0x498   : >> { %v5541_v53 = vadd.f32 %v5540_v17, %v5266_v52  ;;  %v4738_v26 = vadd.f32 %v4737_v44, %v9609_v13  ;;  %v4739_v35 = vpop.f32.mrb[183].mxu1  ;;  %5054 = vmatmul.mubr.f32.gmra.mrb[32].mxu1 %v4257_v16 }
 0x499   : >> { %v5562_v58 = vadd.f32 %v5561_v38, %v5267_v22  ;;  %v4740_v24 = vadd.f32 %v4739_v35, %v9613_v34  ;;  %5059 = vmatprep.mubr.f32.mxu1 %v7842_v12 }
 0x49a   : >> { %v5268_v4 = vmax.f32 %v4738_v26, 0.0  ;;  %v10458_v26 = vld [vmem:[#allocation25_spill] sm:$0xff] }
 0x49b   : >> { %v5269_v32 = vmax.f32 %v4740_v24, 0.0  ;;  %v4743_v42 = vpop.f32.mrb[184].mxu1  ;;  %v4102_v35 = vadd.f32 %v9926_v30, %v10458_v26  ;;  %v4263_v24 = vmax.f32 %v4097_v27, 0.0 }
 0x49c   : >> { %v5542_v40 = vadd.f32 %v5541_v53, %v5268_v4  ;;  %v4744_v1 = vadd.f32 %v4743_v42, %v9609_v13  ;;  %v4745_v5 = vpop.f32.mrb[185].mxu1  ;;  %5060 = vmatmul.mubr.f32.gmra.mrb[34].mxu1 %v4258_v11 }
 0x49d   : >> { %v5563_v39 = vadd.f32 %v5562_v58, %v5269_v32  ;;  %v4746_v19 = vadd.f32 %v4745_v5, %v9613_v34  ;;  %5065 = vmatprep.mubr.f32.mxu1 %v7842_v12  ;;  %v4264_v5 = vmax.f32 %v4102_v35, 0.0 }
 0x49e   : >> { %v5270_v47 = vmax.f32 %v4744_v1, 0.0 }
 0x49f   : >> { %v5271_v23 = vmax.f32 %v4746_v19, 0.0  ;;  %v4749_v56 = vpop.f32.mrb[186].mxu1 }
 0x4a0   : >> { %v5543_v61 = vadd.f32 %v5542_v40, %v5270_v47  ;;  %v4750_v10 = vadd.f32 %v4749_v56, %v9609_v13  ;;  %v4751_v21 = vpop.f32.mrb[187].mxu1  ;;  %5066 = vmatmul.mubr.f32.gmra.mrb[36].mxu1 %v4259_v54 }
 0x4a1   : >> { %v5564_v33 = vadd.f32 %v5563_v39, %v5271_v23  ;;  %v4752_v60 = vadd.f32 %v4751_v21, %v9613_v34  ;;  %5071 = vmatprep.mubr.f32.mxu1 %v7842_v12 }
 0x4a2   : >> { %v5272_v14 = vmax.f32 %v4750_v10, 0.0 }
 0x4a3   : >> { %v5273_v59 = vmax.f32 %v4752_v60, 0.0  ;;  %v4755_v20 = vpop.f32.mrb[188].mxu1 }
 0x4a4   : >> { %v5544_v51 = vadd.f32 %v5543_v61, %v5272_v14  ;;  %v4756_v0 = vadd.f32 %v4755_v20, %v9609_v13  ;;  %v4757_v29 = vpop.f32.mrb[189].mxu1  ;;  %5072 = vmatmul.mubr.f32.gmra.mrb[38].mxu1 %v4260_v43  ;;  %v4112_v20 = vadd.f32 %v9926_v30, %v10459_v50 }
 0x4a5   : >> { %v5565_v28 = vadd.f32 %v5564_v33, %v5273_v59  ;;  %v4758_v8 = vadd.f32 %v4757_v29, %v9613_v34  ;;  %5077 = vmatprep.mubr.f32.mxu1 %v7842_v12 }
 0x4a6   : >> { %v5274_v49 = vmax.f32 %v4756_v0, 0.0 }
 0x4a7   : >> { %v5275_v15 = vmax.f32 %v4758_v8, 0.0  ;;  %v4761_v62 = vpop.f32.mrb[190].mxu1 }
 0x4a8   : >> { %v5545_v17 = vadd.f32 %v5544_v51, %v5274_v49  ;;  %v4762_v55 = vadd.f32 %v4761_v62, %v9609_v13  ;;  %v4763_v9 = vpop.f32.mrb[191].mxu1  ;;  %5078 = vmatmul.mubr.f32.gmra.mrb[40].mxu1 %v4261_v6  ;;  %v4265_v51 = vmax.f32 %v4107_v37, 0.0 }
 0x4a9   : >> { %v5566_v38 = vadd.f32 %v5565_v28, %v5275_v15  ;;  %v4764_v46 = vadd.f32 %v4763_v9, %v9613_v34  ;;  %5083 = vmatprep.mubr.f32.mxu1 %v7842_v12  ;;  %v4266_v9 = vmax.f32 %v4112_v20, 0.0  ;;  %v4137_v20 = vadd.f32 %v9926_v30, %v9694_v48 }
 0x4aa   : >> { %v5276_v16 = vmax.f32 %v4762_v55, 0.0 }
 0x4ab   : >> { %v5277_v52 = vmax.f32 %v4764_v46, 0.0  ;;  %v4767_v22 = vpop.f32.mrb[192].mxu1 }
 0x4ac   : >> { %v5546_v44 = vadd.f32 %v5545_v17, %v5276_v16  ;;  %v4769_v53 = vpop.f32.mrb[193].mxu1  ;;  %5084 = vmatmul.mubr.f32.gmra.mrb[42].mxu1 %v4262_v41  ;;  %v4768_v2 = vadd.f32 %v4767_v22, %v9609_v13 }
 0x4ad   : >> { %v5567_v58 = vadd.f32 %v5566_v38, %v5277_v52  ;;  %5089 = vmatprep.mubr.f32.mxu1 %v7842_v12  ;;  %v4770_v32 = vadd.f32 %v4769_v53, %v9613_v34  ;;  %v4117_v38 = vadd.f32 %v9926_v30, %v9676_v36  ;;  %v10460_v36 = vld [vmem:[#allocation27_spill] sm:$0xff] }
 0x4ae   : >> { %v5547_v11 = vrot.slane %v5546_v44, 4  ;;  %v5278_v54 = vmax.f32 %v4768_v2, 0.0 }
 0x4af   : >> { %v5568_v4 = vrot.slane %v5567_v58, 4  ;;  %v4773_v63 = vpop.f32.mrb[194].mxu1  ;;  %v5279_v56 = vmax.f32 %v4770_v32, 0.0 }
 0x4b0   : >> { %v5548_v42 = vadd.f32 %v5547_v11, %v5546_v44  ;;  %v4774_v40 = vadd.f32 %v4773_v63, %v9609_v13  ;;  %v4775_v1 = vpop.f32.mrb[195].mxu1  ;;  %5090 = vmatmul.mubr.f32.gmra.mrb[44].mxu1 %v4263_v24 }
 0x4b1   : >> { %v5569_v39 = vadd.f32 %v5568_v4, %v5567_v58  ;;  %v4776_v19 = vadd.f32 %v4775_v1, %v9613_v34  ;;  %5095 = vmatprep.mubr.f32.mxu1 %v7842_v12  ;;  %v4267_v58 = vmax.f32 %v4117_v38, 0.0  ;;  %v4127_v1 = vadd.f32 %v9926_v30, %v9685_v3 }
 0x4b2   : >> { %v5549_v18 = vrot.slane %v5548_v42, 2  ;;  %v5280_v47 = vmax.f32 %v4774_v40, 0.0 }
 0x4b3   : >> { %v5570_v23 = vrot.slane %v5569_v39, 2  ;;  %v5281_v61 = vmax.f32 %v4776_v19, 0.0  ;;  %v4779_v10 = vpop.f32.mrb[196].mxu1 }
 0x4b4   : >> { %v5550_v21 = vadd.f32 %v5549_v18, %v5548_v42  ;;  %v5574_v33 = vadd.f32 %v5280_v47, %v5278_v54  ;;  %v4780_v60 = vadd.f32 %v4779_v10, %v9609_v13  ;;  %v4781_v43 = vpop.f32.mrb[197].mxu1  ;;  %5096 = vmatmul.mubr.f32.gmra.mrb[46].mxu1 %v4264_v5  ;;  %v4269_v10 = vmax.f32 %v4127_v1, 0.0 }
 0x4b5   : >> { %v5571_v57 = vadd.f32 %v5570_v23, %v5569_v39  ;;  %v5595_v14 = vadd.f32 %v5281_v61, %v5279_v56  ;;  %v4782_v59 = vadd.f32 %v4781_v43, %v9613_v34  ;;  %5101 = vmatprep.mubr.f32.mxu1 %v7842_v12  ;;  %v10461_v56 = vld [vmem:[#allocation28_spill] sm:$0xff] }
 0x4b6   : >> { %v5551_v0 = vrot.slane %v5550_v21, 1  ;;  %v5282_v29 = vmax.f32 %v4780_v60, 0.0  ;;  %v4132_v61 = vadd.f32 %v9926_v30, %v10461_v56 }
 0x4b7   : >> { %v5572_v28 = vrot.slane %v5571_v57, 1  ;;  %v5283_v8 = vmax.f32 %v4782_v59, 0.0  ;;  %v4785_v7 = vpop.f32.mrb[198].mxu1 }
 0x4b8   : >> { %v5552_v45 = vadd.f32 %v5551_v0, %v5550_v21  ;;  %v5575_v6 = vadd.f32 %v5574_v33, %v5282_v29  ;;  %v4786_v49 = vadd.f32 %v4785_v7, %v9609_v13  ;;  %v4787_v15 = vpop.f32.mrb[199].mxu1  ;;  %5102 = vmatmul.mubr.f32.gmra.mrb[48].mxu1 %v4265_v51  ;;  %v4270_v50 = vmax.f32 %v4132_v61, 0.0 }
 0x4b9   : >> { %v5573_v62 = vadd.f32 %v5572_v28, %v5571_v57  ;;  %v5596_v17 = vadd.f32 %v5595_v14, %v5283_v8  ;;  %v4788_v55 = vadd.f32 %v4787_v15, %v9613_v34  ;;  %5107 = vmatprep.mubr.f32.mxu1 %v7842_v12 }
 0x4ba   : >> { %v10025_v46 = vsel %vm5762_vm6, %v5552_v45, %v9937_v25  ;;  %v5284_v41 = vmax.f32 %v4786_v49, 0.0  ;;  %v4122_v25 = vadd.f32 %v9926_v30, %v10460_v36  ;;  %v10462_v49 = vld [vmem:[#allocation29_spill] sm:$0xff] }
 0x4bb   : >> { %v10029_v27 = vsel %vm5762_vm6, %v5573_v62, %v9941_v31  ;;  %v5285_v16 = vmax.f32 %v4788_v55, 0.0  ;;  %v4791_v52 = vpop.f32.mrb[200].mxu1  ;;  %v4142_v15 = vadd.f32 %v9926_v30, %v10462_v49  ;;  %v4271_v62 = vmax.f32 %v4137_v20, 0.0 }
 0x4bc   : >> { %v5576_v22 = vadd.f32 %v5575_v6, %v5284_v41  ;;  %v4792_v44 = vadd.f32 %v4791_v52, %v9609_v13  ;;  %v4793_v53 = vpop.f32.mrb[201].mxu1  ;;  %5108 = vmatmul.mubr.f32.gmra.mrb[50].mxu1 %v4266_v9  ;;  %v4268_v40 = vmax.f32 %v4122_v25, 0.0 }
 0x4bd   : >> { %v5597_v26 = vadd.f32 %v5596_v17, %v5285_v16  ;;  %v4794_v35 = vadd.f32 %v4793_v53, %v9613_v34  ;;  %5113 = vmatprep.mubr.f32.mxu1 %v7842_v12 }
 0x4be   : >> { %v5286_v24 = vmax.f32 %v4792_v44, 0.0 }
 0x4bf   : >> { %v5287_v11 = vmax.f32 %v4794_v35, 0.0  ;;  %v4797_v31 = vpop.f32.mrb[202].mxu1 }
 0x4c0   : >> { %v5577_v2 = vadd.f32 %v5576_v22, %v5286_v24  ;;  %v4798_v4 = vadd.f32 %v4797_v31, %v9609_v13  ;;  %v4799_v32 = vpop.f32.mrb[203].mxu1  ;;  %5114 = vmatmul.mubr.f32.gmra.mrb[52].mxu1 %v4267_v58  ;;  %v4272_v22 = vmax.f32 %v4142_v15, 0.0 }
 0x4c1   : >> { %v5598_v63 = vadd.f32 %v5597_v26, %v5287_v11  ;;  %v4800_v42 = vadd.f32 %v4799_v32, %v9613_v34  ;;  %5119 = vmatprep.mubr.f32.mxu1 %v7842_v12 }
 0x4c2   : >> { %v5288_v5 = vmax.f32 %v4798_v4, 0.0 }
 0x4c3   : >> { %v5289_v39 = vmax.f32 %v4800_v42, 0.0  ;;  %v4803_v19 = vpop.f32.mrb[204].mxu1 }
 0x4c4   : >> { %v5578_v37 = vadd.f32 %v5577_v2, %v5288_v5  ;;  %v4804_v18 = vadd.f32 %v4803_v19, %v9609_v13  ;;  %v4805_v54 = vpop.f32.mrb[205].mxu1  ;;  %5120 = vmatmul.mubr.f32.gmra.mrb[54].mxu1 %v4268_v40 }
 0x4c5   : >> { %v5599_v47 = vadd.f32 %v5598_v63, %v5289_v39  ;;  %v4806_v23 = vadd.f32 %v4805_v54, %v9613_v34  ;;  %5125 = vmatprep.mubr.f32.mxu1 %v7842_v12 }
 0x4c6   : >> { %v5290_v21 = vmax.f32 %v4804_v18, 0.0 }
 0x4c7   : >> { %v5291_v33 = vmax.f32 %v4806_v23, 0.0  ;;  %v4809_v3 = vpop.f32.mrb[206].mxu1 }
 0x4c8   : >> { %v5579_v60 = vadd.f32 %v5578_v37, %v5290_v21  ;;  %v4810_v43 = vadd.f32 %v4809_v3, %v9609_v13  ;;  %v4811_v57 = vpop.f32.mrb[207].mxu1  ;;  %5126 = vmatmul.mubr.f32.gmra.mrb[56].mxu1 %v4269_v10 }
 0x4c9   : >> { %v5600_v14 = vadd.f32 %v5599_v47, %v5291_v33  ;;  %v4812_v59 = vadd.f32 %v4811_v57, %v9613_v34  ;;  %5131 = vmatprep.mubr.f32.mxu1 %v7842_v12 }
 0x4ca   : >> { %v5292_v51 = vmax.f32 %v4810_v43, 0.0 }
 0x4cb   : >> { %v5293_v0 = vmax.f32 %v4812_v59, 0.0  ;;  %v4815_v29 = vpop.f32.mrb[208].mxu1 }
 0x4cc   : >> { %v5580_v28 = vadd.f32 %v5579_v60, %v5292_v51  ;;  %v4816_v8 = vadd.f32 %v4815_v29, %v9609_v13  ;;  %v4817_v7 = vpop.f32.mrb[209].mxu1  ;;  %5132 = vmatmul.mubr.f32.gmra.mrb[58].mxu1 %v4270_v50 }
 0x4cd   : >> { %v5601_v45 = vadd.f32 %v5600_v14, %v5293_v0  ;;  %v4818_v6 = vadd.f32 %v4817_v7, %v9613_v34  ;;  %5137 = vmatprep.mubr.f32.mxu1 %v7842_v12 }
 0x4ce   : >> { %v5294_v17 = vmax.f32 %v4816_v8, 0.0 }
 0x4cf   : >> { %v5295_v55 = vmax.f32 %v4818_v6, 0.0  ;;  %v4821_v48 = vpop.f32.mrb[210].mxu1 }
 0x4d0   : >> { %v5581_v9 = vadd.f32 %v5580_v28, %v5294_v17  ;;  %v4822_v38 = vadd.f32 %v4821_v48, %v9609_v13  ;;  %v4823_v41 = vpop.f32.mrb[211].mxu1  ;;  %5138 = vmatmul.mubr.f32.gmra.mrb[60].mxu1 %v4271_v62 }
 0x4d1   : >> { %v5602_v16 = vadd.f32 %v5601_v45, %v5295_v55  ;;  %v4824_v52 = vadd.f32 %v4823_v41, %v9613_v34  ;;  %5143 = vmatprep.mubr.f32.mxu1 %v7842_v12 }
 0x4d2   : >> { %v5296_v44 = vmax.f32 %v4822_v38, 0.0 }
 0x4d3   : >> { %v5297_v53 = vmax.f32 %v4824_v52, 0.0  ;;  %v4827_v26 = vpop.f32.mrb[212].mxu1 }
 0x4d4   : >> { %v5582_v35 = vadd.f32 %v5581_v9, %v5296_v44  ;;  %v4828_v30 = vadd.f32 %v4827_v26, %v9609_v13  ;;  %v4829_v36 = vpop.f32.mrb[213].mxu1  ;;  %5144 = vmatmul.mubr.f32.gmra.mrb[62].mxu1 %v4272_v22 }
 0x4d5   : >> { %v5603_v25 = vadd.f32 %v5602_v16, %v5297_v53  ;;  %v4830_v58 = vadd.f32 %v4829_v36, %v9613_v34 }
 0x4d6   : >> { %v5298_v24 = vmax.f32 %v4828_v30, 0.0 }
 0x4d7   : >> { %v5299_v11 = vmax.f32 %v4830_v58, 0.0  ;;  %v4833_v31 = vpop.f32.mrb[214].mxu1 }
 0x4d8   : >> { %v5583_v2 = vadd.f32 %v5582_v35, %v5298_v24  ;;  %v4834_v4 = vadd.f32 %v4833_v31, %v9609_v13  ;;  %v4835_v32 = vpop.f32.mrb[215].mxu1 }
 0x4d9   : >> { %v5604_v12 = vadd.f32 %v5603_v25, %v5299_v11  ;;  %v4836_v63 = vadd.f32 %v4835_v32, %v9613_v34 }
 0x4da   : >> { %v5300_v42 = vmax.f32 %v4834_v4, 0.0 }
 0x4db   : >> { %v5301_v40 = vmax.f32 %v4836_v63, 0.0  ;;  %v4839_v1 = vpop.f32.mrb[216].mxu1 }
 0x4dc   : >> { %v5584_v5 = vadd.f32 %v5583_v2, %v5300_v42  ;;  %v4840_v39 = vadd.f32 %v4839_v1, %v9609_v13  ;;  %v4841_v19 = vpop.f32.mrb[217].mxu1 }
 0x4dd   : >> { %v5605_v37 = vadd.f32 %v5604_v12, %v5301_v40  ;;  %v4842_v18 = vadd.f32 %v4841_v19, %v9613_v34 }
 0x4de   : >> { %v5302_v54 = vmax.f32 %v4840_v39, 0.0 }
 0x4df   : >> { %v5303_v47 = vmax.f32 %v4842_v18, 0.0  ;;  %v4845_v23 = vpop.f32.mrb[218].mxu1 }
 0x4e0   : >> { %v5585_v56 = vadd.f32 %v5584_v5, %v5302_v54  ;;  %v4846_v61 = vadd.f32 %v4845_v23, %v9609_v13  ;;  %v4847_v10 = vpop.f32.mrb[219].mxu1 }
 0x4e1   : >> { %v5606_v21 = vadd.f32 %v5605_v37, %v5303_v47  ;;  %v4848_v33 = vadd.f32 %v4847_v10, %v9613_v34 }
 0x4e2   : >> { %v5304_v3 = vmax.f32 %v4846_v61, 0.0 }
 0x4e3   : >> { %v5305_v60 = vmax.f32 %v4848_v33, 0.0  ;;  %v4851_v43 = vpop.f32.mrb[220].mxu1 }
 0x4e4   : >> { %v5586_v57 = vadd.f32 %v5585_v56, %v5304_v3  ;;  %v4852_v14 = vadd.f32 %v4851_v43, %v9609_v13  ;;  %v4853_v59 = vpop.f32.mrb[221].mxu1 }
 0x4e5   : >> { %v5607_v50 = vadd.f32 %v5606_v21, %v5305_v60  ;;  %v4854_v20 = vadd.f32 %v4853_v59, %v9613_v34 }
 0x4e6   : >> { %v5306_v51 = vmax.f32 %v4852_v14, 0.0 }
 0x4e7   : >> { %v5307_v0 = vmax.f32 %v4854_v20, 0.0  ;;  %v4857_v29 = vpop.f32.mrb[222].mxu1 }
 0x4e8   : >> { %v5587_v28 = vadd.f32 %v5586_v57, %v5306_v51  ;;  %v4858_v8 = vadd.f32 %v4857_v29, %v9609_v13  ;;  %v4859_v7 = vpop.f32.mrb[223].mxu1 }
 0x4e9   : >> { %v5608_v45 = vadd.f32 %v5607_v50, %v5307_v0  ;;  %v4860_v6 = vadd.f32 %v4859_v7, %v9613_v34 }
 0x4ea   : >> { %v5308_v49 = vmax.f32 %v4858_v8, 0.0 }
 0x4eb   : >> { %v5309_v15 = vmax.f32 %v4860_v6, 0.0  ;;  %v4863_v62 = vpop.f32.mrb[224].mxu1 }
 0x4ec   : >> { %v5588_v17 = vadd.f32 %v5587_v28, %v5308_v49  ;;  %v4865_v55 = vpop.f32.mrb[225].mxu1  ;;  %v4864_v38 = vadd.f32 %v4863_v62, %v9609_v13 }
 0x4ed   : >> { %v5609_v48 = vadd.f32 %v5608_v45, %v5309_v15  ;;  %v4866_v16 = vadd.f32 %v4865_v55, %v9613_v34 }
 0x4ee   : >> { %v5589_v9 = vrot.slane %v5588_v17, 4  ;;  %v5310_v36 = vmax.f32 %v4864_v38, 0.0 }
 0x4ef   : >> { %v5610_v41 = vrot.slane %v5609_v48, 4  ;;  %v4869_v52 = vpop.f32.mrb[226].mxu1  ;;  %v5311_v24 = vmax.f32 %v4866_v16, 0.0 }
 0x4f0   : >> { %v5590_v22 = vadd.f32 %v5589_v9, %v5588_v17  ;;  %v4870_v44 = vadd.f32 %v4869_v52, %v9609_v13  ;;  %v4871_v53 = vpop.f32.mrb[227].mxu1 }
 0x4f1   : >> { %v5611_v26 = vadd.f32 %v5610_v41, %v5609_v48  ;;  %v4872_v35 = vadd.f32 %v4871_v53, %v9613_v34 }
 0x4f2   : >> { %v5591_v30 = vrot.slane %v5590_v22, 2  ;;  %v5312_v25 = vmax.f32 %v4870_v44, 0.0 }
 0x4f3   : >> { %v5612_v58 = vrot.slane %v5611_v26, 2  ;;  %v5313_v11 = vmax.f32 %v4872_v35, 0.0  ;;  %v4875_v31 = vpop.f32.mrb[228].mxu1 }
 0x4f4   : >> { %v5592_v2 = vadd.f32 %v5591_v30, %v5590_v22  ;;  %v5616_v4 = vadd.f32 %v5312_v25, %v5310_v36  ;;  %v4876_v32 = vadd.f32 %v4875_v31, %v9609_v13  ;;  %v4877_v12 = vpop.f32.mrb[229].mxu1 }
 0x4f5   : >> { %v5613_v63 = vadd.f32 %v5612_v58, %v5611_v26  ;;  %v5637_v42 = vadd.f32 %v5313_v11, %v5311_v24  ;;  %v4878_v40 = vadd.f32 %v4877_v12, %v9613_v34 }
 0x4f6   : >> { %v5593_v1 = vrot.slane %v5592_v2, 1  ;;  %v5314_v5 = vmax.f32 %v4876_v32, 0.0 }
 0x4f7   : >> { %v5614_v39 = vrot.slane %v5613_v63, 1  ;;  %v5315_v19 = vmax.f32 %v4878_v40, 0.0  ;;  %v4881_v37 = vpop.f32.mrb[230].mxu1 }
 0x4f8   : >> { %v5594_v18 = vadd.f32 %v5593_v1, %v5592_v2  ;;  %v5617_v54 = vadd.f32 %v5616_v4, %v5314_v5  ;;  %v4882_v47 = vadd.f32 %v4881_v37, %v9609_v13  ;;  %v4883_v23 = vpop.f32.mrb[231].mxu1 }
 0x4f9   : >> { %v5615_v56 = vadd.f32 %v5614_v39, %v5613_v63  ;;  %v5638_v61 = vadd.f32 %v5637_v42, %v5315_v19  ;;  %v4884_v10 = vadd.f32 %v4883_v23, %v9613_v34 }
 0x4fa   : >> { %v10080_v21 = vsel %vm5764_vm7, %v5594_v18, %v10025_v46  ;;  %v5316_v33 = vmax.f32 %v4882_v47, 0.0 }
 0x4fb   : >> { %v10083_v3 = vsel %vm5764_vm7, %v5615_v56, %v10029_v27  ;;  %v5317_v60 = vmax.f32 %v4884_v10, 0.0  ;;  %v4887_v43 = vpop.f32.mrb[232].mxu1 }
 0x4fc   : >> { %v5618_v57 = vadd.f32 %v5617_v54, %v5316_v33  ;;  %v4888_v14 = vadd.f32 %v4887_v43, %v9609_v13  ;;  %v4889_v59 = vpop.f32.mrb[233].mxu1 }
 0x4fd   : >> { %v5639_v50 = vadd.f32 %v5638_v61, %v5317_v60  ;;  %v4890_v20 = vadd.f32 %v4889_v59, %v9613_v34 }
 0x4fe   : >> { %v5318_v51 = vmax.f32 %v4888_v14, 0.0 }
 0x4ff   : >> { %v5319_v0 = vmax.f32 %v4890_v20, 0.0  ;;  %v4893_v29 = vpop.f32.mrb[234].mxu1 }
 0x500   : >> { %v5619_v28 = vadd.f32 %v5618_v57, %v5318_v51  ;;  %v4894_v46 = vadd.f32 %v4893_v29, %v9609_v13  ;;  %v4895_v8 = vpop.f32.mrb[235].mxu1 }
 0x501   : >> { %v5640_v7 = vadd.f32 %v5639_v50, %v5319_v0  ;;  %v4896_v27 = vadd.f32 %v4895_v8, %v9613_v34 }
 0x502   : >> { %v5320_v45 = vmax.f32 %v4894_v46, 0.0 }
 0x503   : >> { %v5321_v6 = vmax.f32 %v4896_v27, 0.0  ;;  %v4899_v49 = vpop.f32.mrb[236].mxu1 }
 0x504   : >> { %v5620_v15 = vadd.f32 %v5619_v28, %v5320_v45  ;;  %v4900_v62 = vadd.f32 %v4899_v49, %v9609_v13  ;;  %v4901_v17 = vpop.f32.mrb[237].mxu1 }
 0x505   : >> { %v5641_v55 = vadd.f32 %v5640_v7, %v5321_v6  ;;  %v4902_v48 = vadd.f32 %v4901_v17, %v9613_v34 }
 0x506   : >> { %v5322_v9 = vmax.f32 %v4900_v62, 0.0 }
 0x507   : >> { %v5323_v38 = vmax.f32 %v4902_v48, 0.0  ;;  %v4905_v41 = vpop.f32.mrb[238].mxu1 }
 0x508   : >> { %v5621_v16 = vadd.f32 %v5620_v15, %v5322_v9  ;;  %v4906_v52 = vadd.f32 %v4905_v41, %v9609_v13  ;;  %v4907_v22 = vpop.f32.mrb[239].mxu1 }
 0x509   : >> { %v5642_v44 = vadd.f32 %v5641_v55, %v5323_v38  ;;  %v4908_v53 = vadd.f32 %v4907_v22, %v9613_v34 }
 0x50a   : >> { %v5324_v26 = vmax.f32 %v4906_v52, 0.0 }
 0x50b   : >> { %v5325_v35 = vmax.f32 %v4908_v53, 0.0  ;;  %v4911_v30 = vpop.f32.mrb[240].mxu1 }
 0x50c   : >> { %v5622_v36 = vadd.f32 %v5621_v16, %v5324_v26  ;;  %v4912_v25 = vadd.f32 %v4911_v30, %v9609_v13  ;;  %v4913_v58 = vpop.f32.mrb[241].mxu1 }
 0x50d   : >> { %v5643_v24 = vadd.f32 %v5642_v44, %v5325_v35  ;;  %v4914_v11 = vadd.f32 %v4913_v58, %v9613_v34 }
 0x50e   : >> { %v5326_v31 = vmax.f32 %v4912_v25, 0.0 }
 0x50f   : >> { %v5327_v2 = vmax.f32 %v4914_v11, 0.0  ;;  %v4917_v4 = vpop.f32.mrb[242].mxu1 }
 0x510   : >> { %v5623_v32 = vadd.f32 %v5622_v36, %v5326_v31  ;;  %v4918_v12 = vadd.f32 %v4917_v4, %v9609_v13  ;;  %v4919_v63 = vpop.f32.mrb[243].mxu1 }
 0x511   : >> { %v5644_v42 = vadd.f32 %v5643_v24, %v5327_v2  ;;  %v4920_v40 = vadd.f32 %v4919_v63, %v9613_v34 }
 0x512   : >> { %v5328_v1 = vmax.f32 %v4918_v12, 0.0 }
 0x513   : >> { %v5329_v5 = vmax.f32 %v4920_v40, 0.0  ;;  %v4923_v39 = vpop.f32.mrb[244].mxu1 }
 0x514   : >> { %v5624_v19 = vadd.f32 %v5623_v32, %v5328_v1  ;;  %v4924_v37 = vadd.f32 %v4923_v39, %v9609_v13  ;;  %v4925_v18 = vpop.f32.mrb[245].mxu1 }
 0x515   : >> { %v5645_v54 = vadd.f32 %v5644_v42, %v5329_v5  ;;  %v4926_v47 = vadd.f32 %v4925_v18, %v9613_v34 }
 0x516   : >> { %v5330_v23 = vmax.f32 %v4924_v37, 0.0 }
 0x517   : >> { %v5331_v56 = vmax.f32 %v4926_v47, 0.0  ;;  %v4929_v61 = vpop.f32.mrb[246].mxu1 }
 0x518   : >> { %v5625_v10 = vadd.f32 %v5624_v19, %v5330_v23  ;;  %v4930_v33 = vadd.f32 %v4929_v61, %v9609_v13  ;;  %v4931_v60 = vpop.f32.mrb[247].mxu1 }
 0x519   : >> { %v5646_v43 = vadd.f32 %v5645_v54, %v5331_v56  ;;  %v4932_v57 = vadd.f32 %v4931_v60, %v9613_v34 }
 0x51a   : >> { %v5332_v14 = vmax.f32 %v4930_v33, 0.0 }
 0x51b   : >> { %v5333_v59 = vmax.f32 %v4932_v57, 0.0  ;;  %v4935_v50 = vpop.f32.mrb[248].mxu1 }
 0x51c   : >> { %v5626_v20 = vadd.f32 %v5625_v10, %v5332_v14  ;;  %v4936_v51 = vadd.f32 %v4935_v50, %v9609_v13  ;;  %v4937_v0 = vpop.f32.mrb[249].mxu1 }
 0x51d   : >> { %v5647_v29 = vadd.f32 %v5646_v43, %v5333_v59  ;;  %v4938_v28 = vadd.f32 %v4937_v0, %v9613_v34 }
 0x51e   : >> { %v5334_v46 = vmax.f32 %v4936_v51, 0.0 }
 0x51f   : >> { %v5335_v8 = vmax.f32 %v4938_v28, 0.0  ;;  %v4941_v7 = vpop.f32.mrb[250].mxu1 }
 0x520   : >> { %v5627_v27 = vadd.f32 %v5626_v20, %v5334_v46  ;;  %v4942_v45 = vadd.f32 %v4941_v7, %v9609_v13  ;;  %v4943_v6 = vpop.f32.mrb[251].mxu1 }
 0x521   : >> { %v5648_v49 = vadd.f32 %v5647_v29, %v5335_v8  ;;  %v4944_v15 = vadd.f32 %v4943_v6, %v9613_v34 }
 0x522   : >> { %v5336_v62 = vmax.f32 %v4942_v45, 0.0 }
 0x523   : >> { %v5337_v17 = vmax.f32 %v4944_v15, 0.0  ;;  %v4947_v55 = vpop.f32.mrb[252].mxu1 }
 0x524   : >> { %v5628_v48 = vadd.f32 %v5627_v27, %v5336_v62  ;;  %v4948_v9 = vadd.f32 %v4947_v55, %v9609_v13  ;;  %v4949_v38 = vpop.f32.mrb[253].mxu1 }
 0x525   : >> { %v5649_v41 = vadd.f32 %v5648_v49, %v5337_v17  ;;  %v4950_v16 = vadd.f32 %v4949_v38, %v9613_v34 }
 0x526   : >> { %v5338_v52 = vmax.f32 %v4948_v9, 0.0 }
 0x527   : >> { %v5339_v22 = vmax.f32 %v4950_v16, 0.0  ;;  %v4953_v44 = vpop.f32.mrb[254].mxu1 }
 0x528   : >> { %v5629_v53 = vadd.f32 %v5628_v48, %v5338_v52  ;;  %v4954_v26 = vadd.f32 %v4953_v44, %v9609_v13  ;;  %v4955_v35 = vpop.f32.mrb[255].mxu1 }
 0x529   : >> { %v5650_v30 = vadd.f32 %v5649_v41, %v5339_v22  ;;  %v4956_v36 = vadd.f32 %v4955_v35, %v9613_v34 }
 0x52a   : >> { %v5340_v25 = vmax.f32 %v4954_v26, 0.0 }
 0x52b   : >> { %v5341_v58 = vmax.f32 %v4956_v36, 0.0  ;;  %v4959_v24 = vpop.f32.mrb[0].mxu1 }
 0x52c   : >> { %v5630_v11 = vadd.f32 %v5629_v53, %v5340_v25  ;;  %v4961_v31 = vpop.f32.mrb[1].mxu1  ;;  %v4960_v32 = vadd.f32 %v4959_v24, %v9609_v13 }
 0x52d   : >> { %v5651_v2 = vadd.f32 %v5650_v30, %v5341_v58  ;;  %v4962_v63 = vadd.f32 %v4961_v31, %v9613_v34 }
 0x52e   : >> { %v5631_v4 = vrot.slane %v5630_v11, 4  ;;  %v5342_v18 = vmax.f32 %v4960_v32, 0.0 }
 0x52f   : >> { %v5652_v12 = vrot.slane %v5651_v2, 4  ;;  %v4965_v42 = vpop.f32.mrb[2].mxu1  ;;  %v5343_v23 = vmax.f32 %v4962_v63, 0.0 }
 0x530   : >> { %v5632_v40 = vadd.f32 %v5631_v4, %v5630_v11  ;;  %v4966_v1 = vadd.f32 %v4965_v42, %v9609_v13  ;;  %v4967_v5 = vpop.f32.mrb[3].mxu1 }
 0x531   : >> { %v5653_v39 = vadd.f32 %v5652_v12, %v5651_v2  ;;  %v4968_v19 = vadd.f32 %v4967_v5, %v9613_v34 }
 0x532   : >> { %v5633_v37 = vrot.slane %v5632_v40, 2  ;;  %v5344_v54 = vmax.f32 %v4966_v1, 0.0 }
 0x533   : >> { %v5654_v47 = vrot.slane %v5653_v39, 2  ;;  %v5345_v56 = vmax.f32 %v4968_v19, 0.0  ;;  %v4971_v61 = vpop.f32.mrb[4].mxu1 }
 0x534   : >> { %v5634_v10 = vadd.f32 %v5633_v37, %v5632_v40  ;;  %v5658_v33 = vadd.f32 %v5344_v54, %v5342_v18  ;;  %v4972_v60 = vadd.f32 %v4971_v61, %v9609_v13  ;;  %v4973_v43 = vpop.f32.mrb[5].mxu1 }
 0x535   : >> { %v5655_v57 = vadd.f32 %v5654_v47, %v5653_v39  ;;  %v5679_v14 = vadd.f32 %v5345_v56, %v5343_v23  ;;  %v4974_v59 = vadd.f32 %v4973_v43, %v9613_v34 }
 0x536   : >> { %v5635_v50 = vrot.slane %v5634_v10, 1  ;;  %v5346_v20 = vmax.f32 %v4972_v60, 0.0 }
 0x537   : >> { %v5656_v51 = vrot.slane %v5655_v57, 1  ;;  %v5347_v0 = vmax.f32 %v4974_v59, 0.0  ;;  %v4977_v29 = vpop.f32.mrb[6].mxu1 }
 0x538   : >> { %v5636_v28 = vadd.f32 %v5635_v50, %v5634_v10  ;;  %v5659_v46 = vadd.f32 %v5658_v33, %v5346_v20  ;;  %v4978_v8 = vadd.f32 %v4977_v29, %v9609_v13  ;;  %v4979_v7 = vpop.f32.mrb[7].mxu1 }
 0x539   : >> { %v5657_v27 = vadd.f32 %v5656_v51, %v5655_v57  ;;  %v5680_v45 = vadd.f32 %v5679_v14, %v5347_v0  ;;  %v4980_v6 = vadd.f32 %v4979_v7, %v9613_v34 }
 0x53a   : >> { %v10118_v49 = vsel %vm5766_vm8, %v5636_v28, %v10080_v21  ;;  %v5348_v15 = vmax.f32 %v4978_v8, 0.0 }
 0x53b   : >> { %v10121_v62 = vsel %vm5766_vm8, %v5657_v27, %v10083_v3  ;;  %v5349_v17 = vmax.f32 %v4980_v6, 0.0  ;;  %v4983_v55 = vpop.f32.mrb[8].mxu1 }
 0x53c   : >> { %v5660_v48 = vadd.f32 %v5659_v46, %v5348_v15  ;;  %v4984_v9 = vadd.f32 %v4983_v55, %v9609_v13  ;;  %v4985_v38 = vpop.f32.mrb[9].mxu1 }
 0x53d   : >> { %v5681_v41 = vadd.f32 %v5680_v45, %v5349_v17  ;;  %v4986_v16 = vadd.f32 %v4985_v38, %v9613_v34 }
 0x53e   : >> { %v5350_v52 = vmax.f32 %v4984_v9, 0.0 }
 0x53f   : >> { %v5351_v22 = vmax.f32 %v4986_v16, 0.0  ;;  %v4989_v44 = vpop.f32.mrb[10].mxu1 }
 0x540   : >> { %v5661_v53 = vadd.f32 %v5660_v48, %v5350_v52  ;;  %v4990_v21 = vadd.f32 %v4989_v44, %v9609_v13  ;;  %v4991_v26 = vpop.f32.mrb[11].mxu1 }
 0x541   : >> { %v5682_v35 = vadd.f32 %v5681_v41, %v5351_v22  ;;  %v4992_v3 = vadd.f32 %v4991_v26, %v9613_v34 }
 0x542   : >> { %v5352_v30 = vmax.f32 %v4990_v21, 0.0 }
 0x543   : >> { %v5353_v36 = vmax.f32 %v4992_v3, 0.0  ;;  %v4995_v25 = vpop.f32.mrb[12].mxu1 }
 0x544   : >> { %v5662_v58 = vadd.f32 %v5661_v53, %v5352_v30  ;;  %v4996_v24 = vadd.f32 %v4995_v25, %v9609_v13  ;;  %v4997_v11 = vpop.f32.mrb[13].mxu1 }
 0x545   : >> { %v5683_v31 = vadd.f32 %v5682_v35, %v5353_v36  ;;  %v4998_v2 = vadd.f32 %v4997_v11, %v9613_v34 }
 0x546   : >> { %v5354_v4 = vmax.f32 %v4996_v24, 0.0 }
 0x547   : >> { %v5355_v32 = vmax.f32 %v4998_v2, 0.0  ;;  %v5001_v12 = vpop.f32.mrb[14].mxu1 }
 0x548   : >> { %v5663_v63 = vadd.f32 %v5662_v58, %v5354_v4  ;;  %v5002_v42 = vadd.f32 %v5001_v12, %v9609_v13  ;;  %v5003_v40 = vpop.f32.mrb[15].mxu1 }
 0x549   : >> { %v5684_v1 = vadd.f32 %v5683_v31, %v5355_v32  ;;  %v5004_v5 = vadd.f32 %v5003_v40, %v9613_v34 }
 0x54a   : >> { %v5356_v39 = vmax.f32 %v5002_v42, 0.0 }
 0x54b   : >> { %v5357_v19 = vmax.f32 %v5004_v5, 0.0  ;;  %v5007_v37 = vpop.f32.mrb[16].mxu1 }
 0x54c   : >> { %v5664_v18 = vadd.f32 %v5663_v63, %v5356_v39  ;;  %v5008_v54 = vadd.f32 %v5007_v37, %v9609_v13  ;;  %v5009_v47 = vpop.f32.mrb[17].mxu1 }
 0x54d   : >> { %v5685_v23 = vadd.f32 %v5684_v1, %v5357_v19  ;;  %v5010_v56 = vadd.f32 %v5009_v47, %v9613_v34 }
 0x54e   : >> { %v5358_v61 = vmax.f32 %v5008_v54, 0.0 }
 0x54f   : >> { %v5359_v10 = vmax.f32 %v5010_v56, 0.0  ;;  %v5013_v33 = vpop.f32.mrb[18].mxu1 }
 0x550   : >> { %v5665_v60 = vadd.f32 %v5664_v18, %v5358_v61  ;;  %v5014_v43 = vadd.f32 %v5013_v33, %v9609_v13  ;;  %v5015_v57 = vpop.f32.mrb[19].mxu1 }
 0x551   : >> { %v5686_v14 = vadd.f32 %v5685_v23, %v5359_v10  ;;  %v5016_v59 = vadd.f32 %v5015_v57, %v9613_v34 }
 0x552   : >> { %v5360_v50 = vmax.f32 %v5014_v43, 0.0 }
 0x553   : >> { %v5361_v20 = vmax.f32 %v5016_v59, 0.0  ;;  %v5019_v51 = vpop.f32.mrb[20].mxu1 }
 0x554   : >> { %v5666_v0 = vadd.f32 %v5665_v60, %v5360_v50  ;;  %v5020_v29 = vadd.f32 %v5019_v51, %v9609_v13  ;;  %v5021_v28 = vpop.f32.mrb[21].mxu1 }
 0x555   : >> { %v5687_v46 = vadd.f32 %v5686_v14, %v5361_v20  ;;  %v5022_v8 = vadd.f32 %v5021_v28, %v9613_v34 }
 0x556   : >> { %v5362_v7 = vmax.f32 %v5020_v29, 0.0 }
 0x557   : >> { %v5363_v27 = vmax.f32 %v5022_v8, 0.0  ;;  %v5025_v45 = vpop.f32.mrb[22].mxu1 }
 0x558   : >> { %v5667_v6 = vadd.f32 %v5666_v0, %v5362_v7  ;;  %v5026_v15 = vadd.f32 %v5025_v45, %v9609_v13  ;;  %v5027_v17 = vpop.f32.mrb[23].mxu1 }
 0x559   : >> { %v5688_v55 = vadd.f32 %v5687_v46, %v5363_v27  ;;  %v5028_v48 = vadd.f32 %v5027_v17, %v9613_v34 }
 0x55a   : >> { %v5364_v9 = vmax.f32 %v5026_v15, 0.0 }
 0x55b   : >> { %v5365_v38 = vmax.f32 %v5028_v48, 0.0  ;;  %v5031_v41 = vpop.f32.mrb[24].mxu1 }
 0x55c   : >> { %v5668_v16 = vadd.f32 %v5667_v6, %v5364_v9  ;;  %v5032_v52 = vadd.f32 %v5031_v41, %v9609_v13  ;;  %v5033_v22 = vpop.f32.mrb[25].mxu1 }
 0x55d   : >> { %v5689_v44 = vadd.f32 %v5688_v55, %v5365_v38  ;;  %v5034_v53 = vadd.f32 %v5033_v22, %v9613_v34 }
 0x55e   : >> { %v5366_v21 = vmax.f32 %v5032_v52, 0.0 }
 0x55f   : >> { %v5367_v26 = vmax.f32 %v5034_v53, 0.0  ;;  %v5037_v35 = vpop.f32.mrb[26].mxu1 }
 0x560   : >> { %v5669_v3 = vadd.f32 %v5668_v16, %v5366_v21  ;;  %v5038_v30 = vadd.f32 %v5037_v35, %v9609_v13  ;;  %v5039_v36 = vpop.f32.mrb[27].mxu1 }
 0x561   : >> { %v5690_v25 = vadd.f32 %v5689_v44, %v5367_v26  ;;  %v5040_v58 = vadd.f32 %v5039_v36, %v9613_v34 }
 0x562   : >> { %v5368_v24 = vmax.f32 %v5038_v30, 0.0 }
 0x563   : >> { %v5369_v11 = vmax.f32 %v5040_v58, 0.0  ;;  %v5043_v31 = vpop.f32.mrb[28].mxu1 }
 0x564   : >> { %v5670_v2 = vadd.f32 %v5669_v3, %v5368_v24  ;;  %v5044_v4 = vadd.f32 %v5043_v31, %v9609_v13  ;;  %v5045_v32 = vpop.f32.mrb[29].mxu1 }
 0x565   : >> { %v5691_v12 = vadd.f32 %v5690_v25, %v5369_v11  ;;  %v5046_v63 = vadd.f32 %v5045_v32, %v9613_v34 }
 0x566   : >> { %v5370_v42 = vmax.f32 %v5044_v4, 0.0 }
 0x567   : >> { %v5371_v40 = vmax.f32 %v5046_v63, 0.0  ;;  %v5049_v1 = vpop.f32.mrb[30].mxu1 }
 0x568   : >> { %v5671_v5 = vadd.f32 %v5670_v2, %v5370_v42  ;;  %v5050_v39 = vadd.f32 %v5049_v1, %v9609_v13  ;;  %v5051_v19 = vpop.f32.mrb[31].mxu1 }
 0x569   : >> { %v5692_v37 = vadd.f32 %v5691_v12, %v5371_v40  ;;  %v5052_v18 = vadd.f32 %v5051_v19, %v9613_v34 }
 0x56a   : >> { %v5372_v54 = vmax.f32 %v5050_v39, 0.0 }
 0x56b   : >> { %v5373_v47 = vmax.f32 %v5052_v18, 0.0  ;;  %v5055_v23 = vpop.f32.mrb[32].mxu1 }
 0x56c   : >> { %v5672_v56 = vadd.f32 %v5671_v5, %v5372_v54  ;;  %v5057_v61 = vpop.f32.mrb[33].mxu1  ;;  %v5056_v60 = vadd.f32 %v5055_v23, %v9609_v13 }
 0x56d   : >> { %v5693_v10 = vadd.f32 %v5692_v37, %v5373_v47  ;;  %v5058_v57 = vadd.f32 %v5057_v61, %v9613_v34 }
 0x56e   : >> { %v5673_v33 = vrot.slane %v5672_v56, 4  ;;  %v5374_v28 = vmax.f32 %v5056_v60, 0.0 }
 0x56f   : >> { %v5694_v43 = vrot.slane %v5693_v10, 4  ;;  %v5061_v14 = vpop.f32.mrb[34].mxu1  ;;  %v5375_v7 = vmax.f32 %v5058_v57, 0.0 }
 0x570   : >> { %v5674_v59 = vadd.f32 %v5673_v33, %v5672_v56  ;;  %v5062_v50 = vadd.f32 %v5061_v14, %v9609_v13  ;;  %v5063_v20 = vpop.f32.mrb[35].mxu1 }
 0x571   : >> { %v5695_v51 = vadd.f32 %v5694_v43, %v5693_v10  ;;  %v5064_v0 = vadd.f32 %v5063_v20, %v9613_v34 }
 0x572   : >> { %v5675_v29 = vrot.slane %v5674_v59, 2  ;;  %v5376_v46 = vmax.f32 %v5062_v50, 0.0 }
 0x573   : >> { %v5696_v8 = vrot.slane %v5695_v51, 2  ;;  %v5377_v27 = vmax.f32 %v5064_v0, 0.0  ;;  %v5067_v45 = vpop.f32.mrb[36].mxu1 }
 0x574   : >> { %v5676_v6 = vadd.f32 %v5675_v29, %v5674_v59  ;;  %v5700_v15 = vadd.f32 %v5376_v46, %v5374_v28  ;;  %v5068_v17 = vadd.f32 %v5067_v45, %v9609_v13  ;;  %v5069_v55 = vpop.f32.mrb[37].mxu1 }
 0x575   : >> { %v5697_v48 = vadd.f32 %v5696_v8, %v5695_v51  ;;  %v5721_v9 = vadd.f32 %v5377_v27, %v5375_v7  ;;  %v5070_v38 = vadd.f32 %v5069_v55, %v9613_v34 }
 0x576   : >> { %v5677_v41 = vrot.slane %v5676_v6, 1  ;;  %v5378_v16 = vmax.f32 %v5068_v17, 0.0 }
 0x577   : >> { %v5698_v52 = vrot.slane %v5697_v48, 1  ;;  %v5379_v22 = vmax.f32 %v5070_v38, 0.0  ;;  %v5073_v44 = vpop.f32.mrb[38].mxu1 }
 0x578   : >> { %v5678_v53 = vadd.f32 %v5677_v41, %v5676_v6  ;;  %v5701_v21 = vadd.f32 %v5700_v15, %v5378_v16  ;;  %v5074_v26 = vadd.f32 %v5073_v44, %v9609_v13  ;;  %v5075_v35 = vpop.f32.mrb[39].mxu1 }
 0x579   : >> { %v5699_v3 = vadd.f32 %v5698_v52, %v5697_v48  ;;  %v5722_v30 = vadd.f32 %v5721_v9, %v5379_v22  ;;  %v5076_v36 = vadd.f32 %v5075_v35, %v9613_v34 }
 0x57a   : >> { %v10156_v25 = vsel %vm5768_vm9, %v5678_v53, %v10118_v49  ;;  %v5380_v58 = vmax.f32 %v5074_v26, 0.0 }
 0x57b   : >> { %v10159_v24 = vsel %vm5768_vm9, %v5699_v3, %v10121_v62  ;;  %v5381_v11 = vmax.f32 %v5076_v36, 0.0  ;;  %v5079_v31 = vpop.f32.mrb[40].mxu1 }
 0x57c   : >> { %v5702_v2 = vadd.f32 %v5701_v21, %v5380_v58  ;;  %v5080_v4 = vadd.f32 %v5079_v31, %v9609_v13  ;;  %v5081_v32 = vpop.f32.mrb[41].mxu1 }
 0x57d   : >> { %v5723_v12 = vadd.f32 %v5722_v30, %v5381_v11  ;;  %v5082_v63 = vadd.f32 %v5081_v32, %v9613_v34 }
 0x57e   : >> { %v5382_v42 = vmax.f32 %v5080_v4, 0.0 }
 0x57f   : >> { %v5383_v40 = vmax.f32 %v5082_v63, 0.0  ;;  %v5085_v1 = vpop.f32.mrb[42].mxu1 }
 0x580   : >> { %v5703_v5 = vadd.f32 %v5702_v2, %v5382_v42  ;;  %v5086_v49 = vadd.f32 %v5085_v1, %v9609_v13  ;;  %v5087_v39 = vpop.f32.mrb[43].mxu1 }
 0x581   : >> { %v5724_v19 = vadd.f32 %v5723_v12, %v5383_v40  ;;  %v5088_v62 = vadd.f32 %v5087_v39, %v9613_v34 }
 0x582   : >> { %v5384_v37 = vmax.f32 %v5086_v49, 0.0 }
 0x583   : >> { %v5385_v18 = vmax.f32 %v5088_v62, 0.0  ;;  %v5091_v54 = vpop.f32.mrb[44].mxu1 }
 0x584   : >> { %v5704_v47 = vadd.f32 %v5703_v5, %v5384_v37  ;;  %v5092_v23 = vadd.f32 %v5091_v54, %v9609_v13  ;;  %v5093_v56 = vpop.f32.mrb[45].mxu1 }
 0x585   : >> { %v5725_v61 = vadd.f32 %v5724_v19, %v5385_v18  ;;  %v5094_v10 = vadd.f32 %v5093_v56, %v9613_v34 }
 0x586   : >> { %v5386_v33 = vmax.f32 %v5092_v23, 0.0 }
 0x587   : >> { %v5387_v60 = vmax.f32 %v5094_v10, 0.0  ;;  %v5097_v43 = vpop.f32.mrb[46].mxu1 }
 0x588   : >> { %v5705_v57 = vadd.f32 %v5704_v47, %v5386_v33  ;;  %v5098_v14 = vadd.f32 %v5097_v43, %v9609_v13  ;;  %v5099_v59 = vpop.f32.mrb[47].mxu1 }
 0x589   : >> { %v5726_v50 = vadd.f32 %v5725_v61, %v5387_v60  ;;  %v5100_v20 = vadd.f32 %v5099_v59, %v9613_v34 }
 0x58a   : >> { %v5388_v51 = vmax.f32 %v5098_v14, 0.0 }
 0x58b   : >> { %v5389_v0 = vmax.f32 %v5100_v20, 0.0  ;;  %v5103_v29 = vpop.f32.mrb[48].mxu1 }
 0x58c   : >> { %v5706_v28 = vadd.f32 %v5705_v57, %v5388_v51  ;;  %v5104_v46 = vadd.f32 %v5103_v29, %v9609_v13  ;;  %v5105_v8 = vpop.f32.mrb[49].mxu1 }
 0x58d   : >> { %v5727_v7 = vadd.f32 %v5726_v50, %v5389_v0  ;;  %v5106_v27 = vadd.f32 %v5105_v8, %v9613_v34 }
 0x58e   : >> { %v5390_v45 = vmax.f32 %v5104_v46, 0.0 }
 0x58f   : >> { %v5391_v6 = vmax.f32 %v5106_v27, 0.0  ;;  %v5109_v15 = vpop.f32.mrb[50].mxu1 }
 0x590   : >> { %v5707_v17 = vadd.f32 %v5706_v28, %v5390_v45  ;;  %v5110_v55 = vadd.f32 %v5109_v15, %v9609_v13  ;;  %v5111_v48 = vpop.f32.mrb[51].mxu1 }
 0x591   : >> { %v5728_v9 = vadd.f32 %v5727_v7, %v5391_v6  ;;  %v5112_v38 = vadd.f32 %v5111_v48, %v9613_v34 }
 0x592   : >> { %v5392_v41 = vmax.f32 %v5110_v55, 0.0 }
 0x593   : >> { %v5393_v16 = vmax.f32 %v5112_v38, 0.0  ;;  %v5115_v52 = vpop.f32.mrb[52].mxu1 }
 0x594   : >> { %v5708_v22 = vadd.f32 %v5707_v17, %v5392_v41  ;;  %v5116_v44 = vadd.f32 %v5115_v52, %v9609_v13  ;;  %v5117_v53 = vpop.f32.mrb[53].mxu1 }
 0x595   : >> { %v5729_v21 = vadd.f32 %v5728_v9, %v5393_v16  ;;  %v5118_v26 = vadd.f32 %v5117_v53, %v9613_v34  ;;  %v5807_v53 = vld [vmem:[%s10404_s9 + $0x88] sm:$0xff] (%p446_p11) }
 0x596   : >> { %v5394_v35 = vmax.f32 %v5116_v44, 0.0  ;;  %v5806_v44 = vld [vmem:[%s10404_s9 + $0x80] sm:$0xff] (%p446_p11) }
 0x597   : >> { %v5395_v3 = vmax.f32 %v5118_v26, 0.0  ;;  %v5121_v30 = vpop.f32.mrb[54].mxu1  ;;  %v5808_v26 = vld [vmem:[%s10404_s9 + $0x90] sm:$0xff] (%p446_p11) }
 0x598   : >> { %v5709_v36 = vadd.f32 %v5708_v22, %v5394_v35  ;;  %v5122_v58 = vadd.f32 %v5121_v30, %v9609_v13  ;;  %v5123_v11 = vpop.f32.mrb[55].mxu1  ;;  %v5809_v35 = vld [vmem:[%s10404_s9 + $0x98] sm:$0xff] (%p446_p11) }
 0x599   : >> { %v5730_v31 = vadd.f32 %v5729_v21, %v5395_v3  ;;  %v5124_v2 = vadd.f32 %v5123_v11, %v9613_v34  ;;  %v5791_v21 = vld [vmem:[%s10404_s9 + $0x8] sm:$0xff] (%p446_p11)  ;;  %v7652_v30 = vpack.c.bf16 (%p446_p11), %v5809_v35, %v5808_v26  ;;  %v5810_v11 = vld [vmem:[%s10404_s9 + $0xa0] sm:$0xff] (%p446_p11) }
 0x59a   : >> { %v5396_v4 = vmax.f32 %v5122_v58, 0.0  ;;  %v5793_v58 = vld [vmem:[%s10404_s9 + $0x18] sm:$0xff] (%p446_p11)  ;;  %v5918_v35 = vld [vmem:[%s10406_s11 + $0x60] sm:$0xff] (%p446_p11) }
 0x59b   : >> { %v5397_v32 = vmax.f32 %v5124_v2, 0.0  ;;  %v5127_v12 = vpop.f32.mrb[56].mxu1 }
 0x59c   : >> { %v5710_v63 = vadd.f32 %v5709_v36, %v5396_v4  ;;  %v5128_v42 = vadd.f32 %v5127_v12, %v9609_v13  ;;  %v5129_v40 = vpop.f32.mrb[57].mxu1  ;;  %v5792_v36 = vld [vmem:[%s10404_s9 + $0x10] sm:$0xff] (%p446_p11)  ;;  %v5795_v12 = vld [vmem:[%s10404_s9 + $0x28] sm:$0xff] (%p446_p11) }
 0x59d   : >> { %v5731_v1 = vadd.f32 %v5730_v31, %v5397_v32  ;;  %v5130_v5 = vadd.f32 %v5129_v40, %v9613_v34  ;;  %v5811_v31 = vld [vmem:[%s10404_s9 + $0xa8] sm:$0xff] (%p446_p11)  ;;  %v7654_v2 = vpack.c.bf16 (%p446_p11), %v5793_v58, %v5792_v36  ;;  %v5794_v32 = vld [vmem:[%s10404_s9 + $0x20] sm:$0xff] (%p446_p11)  ;;  %v5920_v36 = vld [vmem:[%s10406_s11 + $0x70] sm:$0xff] (%p446_p11) }
 0x59e   : >> { %v5398_v49 = vmax.f32 %v5128_v42, 0.0  ;;  %v7656_v4 = vpack.c.bf16 (%p446_p11), %v5811_v31, %v5810_v11  ;;  %v5813_v42 = vld [vmem:[%s10404_s9 + $0xb8] sm:$0xff] (%p446_p11)  ;;  %v7658_v40 = vpack.c.bf16 (%p446_p11), %v5795_v12, %v5794_v32 }
 0x59f   : >> { %v5399_v39 = vmax.f32 %v5130_v5, 0.0  ;;  %v5133_v19 = vpop.f32.mrb[58].mxu1  ;;  %v5796_v5 = vld [vmem:[%s10404_s9 + $0x30] sm:$0xff] (%p446_p11)  ;;  %v5921_v58 = vld [vmem:[%s10406_s11 + $0x78] sm:$0xff] (%p446_p11) }
 0x5a0   : >> { %v5711_v62 = vadd.f32 %v5710_v63, %v5398_v49  ;;  %v5134_v37 = vadd.f32 %v5133_v19, %v9609_v13  ;;  %v5135_v18 = vpop.f32.mrb[59].mxu1  ;;  %v5812_v63 = vld [vmem:[%s10404_s9 + $0xb0] sm:$0xff] (%p446_p11)  ;;  %v5797_v49 = vld [vmem:[%s10404_s9 + $0x38] sm:$0xff] (%p446_p11)  ;;  %v5815_v19 = vld [vmem:[%s10404_s9 + $0xc8] sm:$0xff] (%p446_p11)  ;;  %v7708_v11 = vpack.c.bf16 (%p446_p11), %v5921_v58, %v5920_v36 }
 0x5a1   : >> { %v5732_v54 = vadd.f32 %v5731_v1, %v5399_v39  ;;  %v5136_v47 = vadd.f32 %v5135_v18, %v9613_v34  ;;  %v7660_v1 = vpack.c.bf16 (%p446_p11), %v5813_v42, %v5812_v63  ;;  %v5814_v39 = vld [vmem:[%s10404_s9 + $0xc0] sm:$0xff] (%p446_p11)  ;;  %v7662_v18 = vpack.c.bf16 (%p446_p11), %v5797_v49, %v5796_v5 }
 0x5a2   : >> { %v5400_v23 = vmax.f32 %v5134_v37, 0.0  ;;  %v5798_v37 = vld [vmem:[%s10404_s9 + $0x40] sm:$0xff] (%p446_p11) }
 0x5a3   : >> { %v5401_v56 = vmax.f32 %v5136_v47, 0.0  ;;  %v5139_v61 = vpop.f32.mrb[60].mxu1  ;;  %v5907_v47 = vld [vmem:[%s10406_s11 + $0x8] sm:$0xff] (%p446_p11) }
 0x5a4   : >> { %v5712_v10 = vadd.f32 %v5711_v62, %v5400_v23  ;;  %v5140_v33 = vadd.f32 %v5139_v61, %v9609_v13  ;;  %v5141_v60 = vpop.f32.mrb[61].mxu1  ;;  %v5908_v23 = vld [vmem:[%s10406_s11 + $0x10] sm:$0xff] (%p446_p11)  ;;  %v5799_v61 = vld [vmem:[%s10404_s9 + $0x48] sm:$0xff] (%p446_p11) }
 0x5a5   : >> { %v5733_v43 = vadd.f32 %v5732_v54, %v5401_v56  ;;  %v5142_v57 = vadd.f32 %v5141_v60, %v9613_v34  ;;  %v5906_v54 = vld [vmem:[%s10406_s11] sm:$0xff] (%p446_p11)  ;;  %v7664_v56 = vpack.c.bf16 (%p446_p11), %v5815_v19, %v5814_v39  ;;  %v5909_v60 = vld [vmem:[%s10406_s11 + $0x18] sm:$0xff] (%p446_p11) }
 0x5a6   : >> { %v5402_v14 = vmax.f32 %v5140_v33, 0.0  ;;  %v7680_v33 = vpack.c.bf16 (%p446_p11), %v5907_v47, %v5906_v54  ;;  %v6492_v39 = vld [vmem:[%s10407_s12] ss:$0 sm:$0xff] (%p446_p11) }
 0x5a7   : >> { %v5403_v59 = vmax.f32 %v5142_v57, 0.0  ;;  %v5145_v50 = vpop.f32.mrb[62].mxu1  ;;  %v7684_v57 = vpack.c.bf16 (%p446_p11), %v5909_v60, %v5908_v23 }
 0x5a8   : >> { %v5713_v20 = vadd.f32 %v5712_v10, %v5402_v14  ;;  %v5146_v51 = vadd.f32 %v5145_v50, %v9609_v13  ;;  %v5147_v0 = vpop.f32.mrb[63].mxu1  ;;  %v5816_v10 = vld [vmem:[%s10404_s9 + $0xd0] sm:$0xff] (%p446_p11)  ;;  %v5910_v14 = vld [vmem:[%s10406_s11 + $0x20] sm:$0xff] (%p446_p11)  ;;  %7681 = vmatprep.subr.bf16.mxu1 (%p446_p11), %v7680_v33  ;;  %v7666_v50 = vpack.c.bf16 (%p446_p11), %v5799_v61, %v5798_v37 }
 0x5a9   : >> { %v5734_v29 = vadd.f32 %v5733_v43, %v5403_v59  ;;  %v5148_v28 = vadd.f32 %v5147_v0, %v9613_v34  ;;  %v5817_v43 = vld [vmem:[%s10404_s9 + $0xd8] sm:$0xff] (%p446_p11)  ;;  %v5911_v59 = vld [vmem:[%s10406_s11 + $0x28] sm:$0xff] (%p446_p11)  ;;  %7683 = vmatpush3.bf16.msra.mxu1 (%p446_p11), %v7680_v33 }
 0x5aa   : >> { %v5404_v46 = vmax.f32 %v5146_v51, 0.0  ;;  %v5800_v51 = vld [vmem:[%s10404_s9 + $0x50] sm:$0xff] (%p446_p11)  ;;  %v5801_v0 = vld [vmem:[%s10404_s9 + $0x58] sm:$0xff] (%p446_p11)  ;;  %7685 = vmatprep.subr.bf16.mxu1 (%p446_p11), %v7684_v57 }
 0x5ab   : >> { %v5405_v8 = vmax.f32 %v5148_v28, 0.0  ;;  %v7688_v28 = vpack.c.bf16 (%p446_p11), %v5911_v59, %v5910_v14 }
 0x5ac   : >> { %v5714_v7 = vadd.f32 %v5713_v20, %v5404_v46  ;;  %v7668_v20 = vpack.c.bf16 (%p446_p11), %v5817_v43, %v5816_v10  ;;  %v5819_v46 = vld [vmem:[%s10404_s9 + $0xe8] sm:$0xff] (%p446_p11) }
 0x5ad   : >> { %v5735_v27 = vadd.f32 %v5734_v29, %v5405_v8  ;;  %v5818_v29 = vld [vmem:[%s10404_s9 + $0xe0] sm:$0xff] (%p446_p11)  ;;  %v5912_v8 = vld [vmem:[%s10406_s11 + $0x30] sm:$0xff] (%p446_p11)  ;;  %7687 = vmatpush3.bf16.msra.mxu1 (%p446_p11), %v7684_v57 }
 0x5ae   : >> { %v5715_v45 = vrot.slane %v5714_v7, 4  ;;  %7689 = vmatprep.subr.bf16.mxu1 (%p446_p11), %v7688_v28 }
 0x5af   : >> { %v5736_v6 = vrot.slane %v5735_v27, 4 }
 0x5b0   : >> { %v5716_v15 = vadd.f32 %v5715_v45, %v5714_v7  ;;  %v5913_v7 = vld [vmem:[%s10406_s11 + $0x38] sm:$0xff] (%p446_p11)  ;;  %v7672_v45 = vpack.c.bf16 (%p446_p11), %v5819_v46, %v5818_v29 }
 0x5b1   : >> { %v5737_v17 = vadd.f32 %v5736_v6, %v5735_v27  ;;  %v7670_v27 = vpack.c.bf16 (%p446_p11), %v5801_v0, %v5800_v51  ;;  %v5802_v6 = vld [vmem:[%s10404_s9 + $0x60] sm:$0xff] (%p446_p11)  ;;  %7691 = vmatpush3.bf16.msra.mxu1 (%p446_p11), %v7688_v28 }
 0x5b2   : >> { %v5717_v55 = vrot.slane %v5716_v15, 2 }
 0x5b3   : >> { %v5738_v48 = vrot.slane %v5737_v17, 2 }
 0x5b4   : >> { %v5718_v9 = vadd.f32 %v5717_v55, %v5716_v15  ;;  %v5803_v15 = vld [vmem:[%s10404_s9 + $0x68] sm:$0xff] (%p446_p11)  ;;  %v7692_v55 = vpack.c.bf16 (%p446_p11), %v5913_v7, %v5912_v8 }
 0x5b5   : >> { %v5739_v38 = vadd.f32 %v5738_v48, %v5737_v17  ;;  %v5820_v17 = vld [vmem:[%s10404_s9 + $0xf0] sm:$0xff] (%p446_p11)  ;;  %v5821_v48 = vld [vmem:[%s10404_s9 + $0xf8] sm:$0xff] (%p446_p11) }
 0x5b6   : >> { %v5719_v41 = vrot.slane %v5718_v9, 1  ;;  %448 = sbr.rel (!%p446_p11) target bundleno = 28 (0x1c), region = 116  ;;  %7693 = vmatprep.subr.bf16.mxu1 (%p446_p11), %v7692_v55 }
 0x5b7   : >> { %v5740_v13 = vrot.slane %v5739_v38, 1  ;;  %7695 = vmatpush3.bf16.msra.mxu1 (%p446_p11), %v7692_v55 }
 0x5b8   : >> { %v5720_v16 = vadd.f32 %v5719_v41, %v5718_v9  ;;  %v5914_v9 = vld [vmem:[%s10406_s11 + $0x40] sm:$0xff] (%p446_p11)  ;;  %v7674_v41 = vpack.c.bf16 (%p446_p11), %v5803_v15, %v5802_v6 }
 0x5b9   : >> { %v5741_v52 = vadd.f32 %v5740_v13, %v5739_v38  ;;  %v5915_v38 = vld [vmem:[%s10406_s11 + $0x48] sm:$0xff] (%p446_p11)  ;;  %v7676_v13 = vpack.c.bf16 (%p446_p11), %v5821_v48, %v5820_v17 }
 0x5ba   : >> { %v5771_v34 = vsel %vm5770_vm10, %v5720_v16, %v10156_v25  ;;  %v5790_v25 = vld [vmem:[%s10404_s9] sm:$0xff] (%p446_p11)  ;;  %v5804_v16 = vld [vmem:[%s10404_s9 + $0x70] sm:$0xff] (%p446_p11) }
 0x5bb   : >> { %5784 = vst [vmem:[%s5783_s30] sm:$0xff] %v5771_v34  ;;  %v5778_v22 = vsel %vm5770_vm10, %v5741_v52, %v10159_v24  ;;  %v7648_v24 = vpack.c.bf16 (%p446_p11), %v5807_v53, %v5806_v44  ;;  %v7650_v3 = vpack.c.bf16 (%p446_p11), %v5791_v21, %v5790_v25  ;;  %v5805_v52 = vld [vmem:[%s10404_s9 + $0x78] sm:$0xff] (%p446_p11)  ;;  %v7696_v34 = vpack.c.bf16 (%p446_p11), %v5915_v38, %v5914_v9 }
 0x5bc   : >> { %5785 = vst [vmem:[%s5783_s30 + $0x8] sm:$0xff] %v5778_v22  ;;  %v7678_v22 = vpack.c.bf16 (%p446_p11), %v5805_v52, %v5804_v16  ;;  %v5917_v21 = vld [vmem:[%s10406_s11 + $0x58] sm:$0xff] (%p446_p11)  ;;  %s7843_s30 = smov (%p446_p11), [#allocation3]  }
 0x5bd   : > { %7649 = vmatprep.subr.bf16.mxu0 %v7648_v24  ;;  %7697 = vmatprep.subr.bf16.mxu1 %v7696_v34  ;;  %v5916_v24 = vld [vmem:[%s10406_s11 + $0x50] sm:$0xff]  ;;  %s7774_s17 = sshll.u32 %s7843_s30, 4  ;;  %s7775_s17 = int_to_ptr.vmem [resolvable:$false] %s7774_s17 }
 0x5be   : > { %7651 = vmatpush3.bf16.msra.mxu0 %v7650_v3  ;;  %7699 = vmatpush3.bf16.msra.mxu1 %v7696_v34  ;;  %v7700_v26 = vpack.c.bf16 %v5917_v21, %v5916_v24  ;;  %v5919_v3 = vld [vmem:[%s10406_s11 + $0x68] sm:$0xff]  ;;  %s7776_s15 = scalar_lea.vmem %s7775_s17, 512  ;;  %p7777_p1 = scmp.lt.s32.totalorder %s10348_s20, %s7775_s17 }
 0x5bf   : > { %7653 = vmatprep.subr.bf16.mxu0 %v7652_v30  ;;  %v7704_v30 = vpack.c.bf16 %v5919_v3, %v5918_v35  ;;  %p7778_p2 = scmp.lt.s32.totalorder %s7776_s15, %s7770_s29 }
 0x5c0   : > { %7701 = vmatprep.subr.bf16.mxu1 %v7700_v26 }
 0x5c1   : > { %p7779_p3 = por %p7778_p2, %p7777_p1 }
 0x5c2   : > { %7655 = vmatpush3.bf16.msra.mxu0 %v7654_v2  ;;  %7703 = vmatpush3.bf16.msra.mxu1 %v7700_v26 }
 0x5c3   : > { %7657 = vmatprep.subr.bf16.mxu0 %v7656_v4  ;;  %v5787_v62 = vld [vmem:[#allocation2 + $0x8] sm:$0xff]  ;;  %v5786_v44 = vld [vmem:[#allocation2] sm:$0xff]  ;;  %v5789_v53 = vld [vmem:[#allocation2 + $0x18] sm:$0xff]  ;;  %7705 = vmatprep.subr.bf16.mxu1 %v7704_v30  ;;  %p7780_p4 = pnand %p7779_p3, %p7773_p0 }
 0x5c4   : > { %5893 = vmatprep.mubr.f32.mxu0 %v5787_v62  ;;  %v5788_v25 = vld [vmem:[#allocation2 + $0x10] sm:$0xff]  ;;  %v6491_v4 = vld [vmem:[%s10405_s10] ss:$0 sm:$0xff] }
 0x5c6   : > { %7659 = vmatpush3.bf16.msra.mxu0 %v7658_v40  ;;  %7707 = vmatpush3.bf16.msra.mxu1 %v7704_v30 }
 0x5c7   : > { %7661 = vmatprep.subr.bf16.mxu0 %v7660_v1  ;;  %7709 = vmatprep.subr.bf16.mxu1 %v7708_v11 }
 0x5ca   : > { %7663 = vmatpush3.bf16.msra.mxu0 %v7662_v18  ;;  %7711 = vmatpush3.bf16.msra.mxu1 %v7708_v11 }
 0x5cb   : > { %7665 = vmatprep.subr.bf16.mxu0 %v7664_v56 }
 0x5ce   : > { %7667 = vmatpush3.bf16.msra.mxu0 %v7666_v50 }
 0x5cf   : > { %7669 = vmatprep.subr.bf16.mxu0 %v7668_v20 }
 0x5d2   : > { %7671 = vmatpush3.bf16.msra.mxu0 %v7670_v27 }
 0x5d3   : > { %7673 = vmatprep.subr.bf16.mxu0 %v7672_v45 }
 0x5d6   : > { %7675 = vmatpush3.bf16.msra.mxu0 %v7674_v41 }
 0x5d7   : > { %7677 = vmatprep.subr.bf16.mxu0 %v7676_v13 }
 0x5da   : > { %7679 = vmatpush3.bf16.msra.mxu0 %v7678_v22 }
 0x5dd   : > { %5894 = vmatmul.mubr.f32.vlgmr.msra.gmra.mrb[0].mxu0 %v5786_v44 }
 0x5de   : > { %5898 = vmatprep.mubr.f32.mxu0 %v5789_v53 }
 0x5e1   : > { %5899 = vmatmul.mubr.f32.gmra.mrb[2].mxu0 %v5788_v25 }
 0x6b0   : > { %v6931_v31 = vpop.f32.mrb[0].mxu0 }
 0x6b1   : > { %v6932_v2 = vpop.f32.mrb[1].mxu0 }
 0x6b2   : > { %v6933_v32 = vadd.f32 %v6932_v2, %v6931_v31 }
 0x6b4   : > { %v6934_v12 = vpop.f32.mrb[2].mxu0  ;;  %v5896_v63 = vadd.f32 %v6933_v32, %v6491_v4 }
 0x6b5   : > { %v6935_v42 = vpop.f32.mrb[3].mxu0 }
 0x6b6   : > { %v6936_v40 = vadd.f32 %v6935_v42, %v6934_v12  ;;  %v5904_v1 = vmax.f32 %v5896_v63, 0.0 }
 0x6b8   : > { %v5901_v5 = vadd.f32 %v6936_v40, %v6491_v4  ;;  %7589 = vmatprep.mubr.f32.mxu1 %v5904_v1 }
 0x6ba   : > { %v5905_v49 = vmax.f32 %v5901_v5, 0.0 }
 0x6bc   : > { %7590 = vmatmul.mubr.f32.vlgmr.msra.gmra.mrb[0].mxu1 %v5905_v49 }
 0x78f   : > { %v7591_v19 = vpop.f32.mrb[0].mxu1 }
 0x790   : > { %v6001_v62 = vadd.f32 %v7591_v19, %v6492_v39  ;;  %v5995_v37 = vpop.f32.mrb[1].mxu1 }
 0x791   : > { %v5996_v18 = vadd.f32 %v6492_v39, %v5995_v37 }
 0x792   : > { %6005 = vst [vmem:[%s7973_s16 + $0x8] sm:$0xff] %v6001_v62 }
 0x793   : > { %6004 = vst [vmem:[%s7973_s16] sm:$0xff] %v5996_v18 }
 0x794   : > { %7783 = shalt.err (!%p7780_p4)
}
 0x795   : > { %s7784_s16 = scalar_lea.hbm %s10346_s22, 256  ;;  %s7788_s21 = scalar_lea.hbm %s10408_s13, 512 }
 0x796   : > { %p7785_p7 = scmp.ne.s32.totalorder %s10346_s22, %s7784_s16  ;;  %p7789_p10 = scmp.lt.u32.totalorder %s10346_s22, %s10408_s13 }
 0x797   : > { %p7790_p11 = scmp.lt.u32.totalorder %s7788_s21, %s7784_s16  ;;  %p7792_p13 = scmp.lt.u32.totalorder %s7784_s16, %s10346_s22 }
 0x798   : > { %p7786_p8 = pnand %p7785_p7, %p7954_p5 }
 0x799   : > { %p7791_p12 = por %p7790_p11, %p7789_p10 }
 0x79a   : > { %p7787_p9 = pneg %p7786_p8 }
 0x79b   : > { %p7793_p0 = por %p7792_p13, %p7791_p12 }
 0x79d   : > { %p7794_p1 = pnand %p7793_p0, %p7787_p9 }
 0x79f   : > { %7797 = shalt.err (!%p7794_p1)
}
 0x7a0   : > { %s7844_s29 = smov 128   ;;  %s7845_s30 = smov 8  }
 0x7a1   : > { %7716 = dma.vmem_to_hbm [thread:$0]  (%p7954_p5), %s10348_s20, 256, %s10346_s22, %s10354_s1, %s7844_s29, %s7844_s29, %s7845_s30  }
 0x7a2 PF: > { %p7722_p2 = scmp.ge.s32.totalorder %s7836_s28, 2  ;;  %s6035_s17 = sand.u32 1, %s7824_s25  }
 0x7a3   : > { %s6036_s15 = scalar_lea.sflag [#allocation4], %s6035_s17 }
 0x7a4   : > { %p7719_p3 = pnand %p7722_p2, %p7958_p6 }
 0x7a6   : > { %7819 = dma.done.wait (!%p7719_p3), %s6036_s15, 256  }
 0x7a7   : > { %7821 = vsyncadd (!%p7719_p3), %s6036_s15, 4294967040  ;;  %s10464_s16 = sld [smem:[#allocation6_spill]]  ;;  %s10465_s27 = sld [smem:[#allocation7_spill]] }
 0x7a8   : > { %p23_p4 = scmp.ge.s32.totalorder %s7941_s14, 4   ;;  %s10466_s25 = smov %s7828_s26 }
 0x7a9   : > { %s10468_s28 = smov %s7941_s14 }
 0x7aa   :  { %25 = sbr.rel (!%p23_p4) target bundleno = 6 (0x6), region = 127 }
 0x7ad   : > { %s10467_s26 = smov %s10464_s16 }
 0x7b1   :  { %6041 = vsyncpa [#allocation4], 1 }
 0x7b2   :  { %6043 = vsyncpa [#allocation4 + $0x1], 1 }

</bundles_post_ra>
